<compile_context>
chip_gen: v7x
topology: tpu7x:2x2x1
jax: 0.10.0
libtpu: 0.0.40
codegen_flags: <defaults>
</compile_context>

<pallas_src>
import jax
import jax.numpy as jnp
from jax.experimental import pallas as pl
from jax.experimental.pallas import tpu as pltpu


def _bottleneck_kernel(x_ref, w1_ref, b1_ref, w2_ref, b2_ref, w3_ref, b3_ref,
                       out_ref, pad_ref, col_ref):
    _, H, W, Cin = x_ref.shape
    P = w1_ref.shape[1]
    Cout = w3_ref.shape[1]
    M = H * W

    x = x_ref[...].reshape(M, Cin)                       # f32, reused for skip

    # --- conv1 (1x1, BN scale folded into w1) + bias + ReLU -----------------
    h1 = jnp.dot(x.astype(jnp.bfloat16), w1_ref[...],
                 preferred_element_type=jnp.float32)
    h1 = jnp.maximum(h1 + b1_ref[...], 0.0)              # (M, P) f32

    # --- conv2 (3x3, stride=1, pad=1) as one im2col MXU matmul --------------
    # Zero only the 1-element border; the interior is fully overwritten every
    # step with a single store of h1.
    zrow = jnp.zeros((1, W + 2, P), jnp.float32)
    zcol = jnp.zeros((H, 1, P), jnp.float32)
    pad_ref[0:1, :, :] = zrow
    pad_ref[H + 1:H + 2, :, :] = zrow
    pad_ref[1:H + 1, 0:1, :] = zcol
    pad_ref[1:H + 1, W + 1:W + 2, :] = zcol
    pad_ref[1:H + 1, 1:W + 1, :] = h1.reshape(H, W, P)

    # Pack the 9 shifted taps into the (M, 9*P) bf16 column buffer, then one
    # matmul with K = 9*P.  With P a multiple of 128 each column-block store
    # is a full-lane unmasked vst.
    for ky in range(3):
        for kx in range(3):
            t = ky * 3 + kx
            tap = pad_ref[ky:ky + H, kx:kx + W, :].reshape(M, P)
            col_ref[:, t * P:(t + 1) * P] = tap.astype(jnp.bfloat16)

    h2 = jnp.dot(col_ref[...], w2_ref[...],
                 preferred_element_type=jnp.float32)
    h2 = jnp.maximum(h2 + b2_ref[...], 0.0)              # (M, P) f32

    # --- conv3 (1x1) + bias + identity skip + ReLU ---------------------------
    h3 = jnp.dot(h2.astype(jnp.bfloat16), w3_ref[...],
                 preferred_element_type=jnp.float32)
    h3 = h3 + b3_ref[...] + x                            # identity skip (f32)
    out_ref[...] = jnp.maximum(h3, 0.0).reshape(1, H, W, Cout)


def bottleneck_forward(x_nchw, params):
    """x_nchw: (N, C, H, W) float32, matching the PyTorch module's input.

    params = (w1 (Cin,P), s1, b1, w2 (3,3,P,P) HWIO, s2, b2, w3 (P,4P), s3, b3)
    where s*/b* are the eval-mode folded BatchNorm scale/bias.
    """
    w1, s1, b1, w2, s2, b2, w3, s3, b3 = params
    N, C, H, W = x_nchw.shape
    P = w1.shape[1]
    Cout = w3.shape[1]
    assert C == Cout, "downsample=None requires inplanes == planes * expansion"

    # Fold BN scales into the conv weights; cast matmul operands to bf16.
    w1f = (w1 * s1[None, :]).astype(jnp.bfloat16)                        # (Cin, P)
    w2f = (w2 * s2[None, None, None, :]).reshape(9 * P, P).astype(jnp.bfloat16)
    w3f = (w3 * s3[None, :]).astype(jnp.bfloat16)                        # (P, Cout)
    b1f = b1.reshape(1, P).astype(jnp.float32)
    b2f = b2.reshape(1, P).astype(jnp.float32)
    b3f = b3.reshape(1, Cout).astype(jnp.float32)

    x = jnp.transpose(x_nchw, (0, 2, 3, 1))  # -> NHWC (layout plumbing)

    grid_spec = pltpu.PrefetchScalarGridSpec(
        num_scalar_prefetch=0,
        grid=(N,),
        in_specs=[
            pl.BlockSpec((1, H, W, C), lambda n: (n, 0, 0, 0)),   # x (pipelined)
            pl.BlockSpec((C, P), lambda n: (0, 0)),               # w1 (resident)
            pl.BlockSpec((1, P), lambda n: (0, 0)),               # b1
            pl.BlockSpec((9 * P, P), lambda n: (0, 0)),           # w2 (im2col form)
            pl.BlockSpec((1, P), lambda n: (0, 0)),               # b2
            pl.BlockSpec((P, Cout), lambda n: (0, 0)),            # w3
            pl.BlockSpec((1, Cout), lambda n: (0, 0)),            # b3
        ],
        out_specs=pl.BlockSpec((1, H, W, Cout), lambda n: (n, 0, 0, 0)),
        scratch_shapes=[
            pltpu.VMEM((H + 2, W + 2, P), jnp.float32),           # padded h1
            pltpu.VMEM((H * W, 9 * P), jnp.bfloat16),             # im2col buffer
        ],
    )

    out = pl.pallas_call(
        _bottleneck_kernel,
        out_shape=jax.ShapeDtypeStruct((N, H, W, Cout), jnp.float32),
        grid_spec=grid_spec,
        compiler_params=pltpu.CompilerParams(
            dimension_semantics=("parallel",),      # megacore splits the batch
            vmem_limit_bytes=32 * 1024 * 1024,      # safe on v5e/v6e/v7x
        ),
    )(x, w1f, b1f, w2f, b2f, w3f, b3f)

    return jnp.transpose(out, (0, 3, 1, 2))  # back to NCHW


def _ref_bottleneck_nhwc(x, params):
    """Pure-JAX f32 reference (NHWC), for correctness checking."""
    w1, s1, b1, w2, s2, b2, w3, s3, b3 = params
    dn = ('NHWC', 'HWIO', 'NHWC')
    prec = jax.lax.Precision.HIGHEST
    h = jax.lax.conv_general_dilated(
        x, w1.reshape(1, 1, *w1.shape), (1, 1), 'VALID',
        dimension_numbers=dn, precision=prec)
    h = jnp.maximum(h * s1 + b1, 0.0)
    h = jax.lax.conv_general_dilated(
        h, w2, (1, 1), ((1, 1), (1, 1)), dimension_numbers=dn, precision=prec)
    h = jnp.maximum(h * s2 + b2, 0.0)
    h = jax.lax.conv_general_dilated(
        h, w3.reshape(1, 1, *w3.shape), (1, 1), 'VALID',
        dimension_numbers=dn, precision=prec)
    h = h * s3 + b3 + x
    return jnp.maximum(h, 0.0)


if __name__ == "__main__":
    key = jax.random.PRNGKey(0)
    # Lane-dense demo: planes = 128 so the bottleneck width P and Cin = Cout =
    # planes*4 = 512 are multiples of 128 (identity skip valid, downsample=None),
    # matching real ResNet bottleneck proportions.
    N, planes, H, W = 2, 128, 16, 16
    inplanes = planes * 4
    Cout = planes * 4
    eps = 1e-5

    ks = jax.random.split(key, 8)
    x = jax.random.normal(ks[0], (N, inplanes, H, W), jnp.float32)

    # Conv weights (bias=False) in matmul/HWIO-friendly form:
    #   conv1: (Cin, P), conv2: (3, 3, P, P), conv3: (P, 4P)
    w1 = (1.0 / jnp.sqrt(inplanes)) * jax.random.normal(
        ks[1], (inplanes, planes), jnp.float32)
    w2 = (1.0 / jnp.sqrt(9.0 * planes)) * jax.random.normal(
        ks[2], (3, 3, planes, planes), jnp.float32)
    w3 = (1.0 / jnp.sqrt(planes)) * jax.random.normal(
        ks[3], (planes, Cout), jnp.float32)

    def bn_fold(k, c):
        kg, kb, km, kv = jax.random.split(k, 4)
        gamma = 1.0 + 0.1 * jax.random.normal(kg, (c,), jnp.float32)
        beta = 0.1 * jax.random.normal(kb, (c,), jnp.float32)
        mean = 0.1 * jax.random.normal(km, (c,), jnp.float32)
        var = jnp.abs(jax.random.normal(kv, (c,), jnp.float32)) + 0.5
        scale = gamma / jnp.sqrt(var + eps)
        bias = beta - mean * scale
        return scale, bias

    s1, b1 = bn_fold(ks[4], planes)
    s2, b2 = bn_fold(ks[5], planes)
    s3, b3 = bn_fold(ks[6], Cout)
    params = (w1, s1, b1, w2, s2, b2, w3, s3, b3)

    y = bottleneck_forward(x, params)
    y = jax.block_until_ready(y)

    x_nhwc = jnp.transpose(x, (0, 2, 3, 1))
    y_ref = jnp.transpose(_ref_bottleneck_nhwc(x_nhwc, params), (0, 3, 1, 2))

    assert y.shape == (N, Cout, H, W), y.shape
    # bf16 MXU operands vs an f32 reference: check relative Frobenius error
    # (tight, statistical) plus a loose max-abs bound.
    diff = y - y_ref
    rel_fro = float(jnp.sqrt(jnp.sum(diff * diff)) /
                    jnp.sqrt(jnp.sum(y_ref * y_ref)))
    max_abs = float(jnp.max(jnp.abs(diff)))
    assert rel_fro < 2e-2, rel_fro
    assert max_abs < 1.5e-1, max_abs
    print("KERNEL_OK")
</pallas_src>

<mosaic_0001>
module attributes {stable_mosaic.version = 11 : i64} {
  func.func @_bottleneck_kernel(%arg0: i32, %arg1: memref<1x16x16x512xf32, #tpu.memory_space<vmem>>, %arg2: memref<512x128xbf16, #tpu.memory_space<vmem>>, %arg3: memref<1x128xf32, #tpu.memory_space<vmem>>, %arg4: memref<1152x128xbf16, #tpu.memory_space<vmem>>, %arg5: memref<1x128xf32, #tpu.memory_space<vmem>>, %arg6: memref<128x512xbf16, #tpu.memory_space<vmem>>, %arg7: memref<1x512xf32, #tpu.memory_space<vmem>>, %arg8: memref<1x16x16x512xf32, #tpu.memory_space<vmem>>, %arg9: memref<18x18x128xf32, #tpu.memory_space<vmem>>, %arg10: memref<256x1152xbf16, #tpu.memory_space<vmem>>) attributes {dimension_semantics = [#tpu.dimension_semantics<parallel>], iteration_bounds = array<i64: 2>, scalar_prefetch = 0 : i64, scratch_operands = 2 : i64, tpu.core_type = #tpu.core_type<tc>, window_params = [{transform_indices = @transform_0, window_bounds = array<i64: 1, 16, 16, 512>}, {pipeline_mode = #tpu.pipeline_mode<synchronous>, transform_indices = @transform_1, window_bounds = array<i64: 512, 128>}, {pipeline_mode = #tpu.pipeline_mode<synchronous>, transform_indices = @transform_2, window_bounds = array<i64: 1, 128>}, {pipeline_mode = #tpu.pipeline_mode<synchronous>, transform_indices = @transform_3, window_bounds = array<i64: 1152, 128>}, {pipeline_mode = #tpu.pipeline_mode<synchronous>, transform_indices = @transform_4, window_bounds = array<i64: 1, 128>}, {pipeline_mode = #tpu.pipeline_mode<synchronous>, transform_indices = @transform_5, window_bounds = array<i64: 128, 512>}, {pipeline_mode = #tpu.pipeline_mode<synchronous>, transform_indices = @transform_6, window_bounds = array<i64: 1, 512>}, {transform_indices = @transform_7, window_bounds = array<i64: 1, 16, 16, 512>}]} {
    %c0 = arith.constant 0 : index
    %c0_0 = arith.constant 0 : index
    %c0_1 = arith.constant 0 : index
    %c0_2 = arith.constant 0 : index
    %0 = vector.load %arg1[%c0, %c0_0, %c0_1, %c0_2] : memref<1x16x16x512xf32, #tpu.memory_space<vmem>>, vector<1x16x16x512xf32>
    %1 = vector.shape_cast %0 : vector<1x16x16x512xf32> to vector<256x512xf32>
    %2 = arith.truncf %1 : vector<256x512xf32> to vector<256x512xbf16>
    %c0_3 = arith.constant 0 : index
    %c0_4 = arith.constant 0 : index
    %3 = vector.load %arg2[%c0_3, %c0_4] : memref<512x128xbf16, #tpu.memory_space<vmem>>, vector<512x128xbf16>
    %cst = arith.constant dense<0.000000e+00> : vector<256x128xf32>
    %4 = tpu.matmul %2, %3, %cst {dimension_numbers = #tpu.dot_dimension_numbers<[1], [0], [0], [1], [0, 0, 1, 1], [], []>} : vector<256x512xbf16>, vector<512x128xbf16>, vector<256x128xf32> -> vector<256x128xf32>
    %c0_5 = arith.constant 0 : index
    %c0_6 = arith.constant 0 : index
    %5 = vector.load %arg3[%c0_5, %c0_6] : memref<1x128xf32, #tpu.memory_space<vmem>>, vector<1x128xf32>
    %6 = vector.broadcast %5 : vector<1x128xf32> to vector<256x128xf32>
    %7 = arith.addf %4, %6 : vector<256x128xf32>
    %cst_7 = arith.constant 0.000000e+00 : f32
    %8 = vector.broadcast %cst_7 : f32 to vector<256x128xf32>
    %9 = arith.maximumf %7, %8 : vector<256x128xf32>
    %cst_8 = arith.constant 0.000000e+00 : f32
    %10 = vector.broadcast %cst_8 : f32 to vector<1x18x128xf32>
    %cst_9 = arith.constant 0.000000e+00 : f32
    %11 = vector.broadcast %cst_9 : f32 to vector<16x1x128xf32>
    %c0_10 = arith.constant 0 : index
    %c0_11 = arith.constant 0 : index
    %c0_12 = arith.constant 0 : index
    %12 = vector.load %arg9[%c0_10, %c0_11, %c0_12] : memref<18x18x128xf32, #tpu.memory_space<vmem>>, vector<1x18x128xf32>
    tpu.vector_store %arg9[%c0_10, %c0_11, %c0_12], %10 {strides = array<i32>} : memref<18x18x128xf32, #tpu.memory_space<vmem>>, vector<1x18x128xf32>,
    %c17 = arith.constant 17 : index
    %c0_13 = arith.constant 0 : index
    %c0_14 = arith.constant 0 : index
    %13 = vector.load %arg9[%c17, %c0_13, %c0_14] : memref<18x18x128xf32, #tpu.memory_space<vmem>>, vector<1x18x128xf32>
    tpu.vector_store %arg9[%c17, %c0_13, %c0_14], %10 {strides = array<i32>} : memref<18x18x128xf32, #tpu.memory_space<vmem>>, vector<1x18x128xf32>,
    %c1 = arith.constant 1 : index
    %c0_15 = arith.constant 0 : index
    %c0_16 = arith.constant 0 : index
    %14 = vector.load %arg9[%c1, %c0_15, %c0_16] : memref<18x18x128xf32, #tpu.memory_space<vmem>>, vector<16x1x128xf32>
    tpu.vector_store %arg9[%c1, %c0_15, %c0_16], %11 {strides = array<i32>} : memref<18x18x128xf32, #tpu.memory_space<vmem>>, vector<16x1x128xf32>,
    %c1_17 = arith.constant 1 : index
    %c17_18 = arith.constant 17 : index
    %c0_19 = arith.constant 0 : index
    %15 = vector.load %arg9[%c1_17, %c17_18, %c0_19] : memref<18x18x128xf32, #tpu.memory_space<vmem>>, vector<16x1x128xf32>
    tpu.vector_store %arg9[%c1_17, %c17_18, %c0_19], %11 {strides = array<i32>} : memref<18x18x128xf32, #tpu.memory_space<vmem>>, vector<16x1x128xf32>,
    %16 = vector.shape_cast %9 : vector<256x128xf32> to vector<16x16x128xf32>
    %c1_20 = arith.constant 1 : index
    %c1_21 = arith.constant 1 : index
    %c0_22 = arith.constant 0 : index
    %17 = vector.load %arg9[%c1_20, %c1_21, %c0_22] : memref<18x18x128xf32, #tpu.memory_space<vmem>>, vector<16x16x128xf32>
    tpu.vector_store %arg9[%c1_20, %c1_21, %c0_22], %16 {strides = array<i32>} : memref<18x18x128xf32, #tpu.memory_space<vmem>>, vector<16x16x128xf32>,
    %c0_23 = arith.constant 0 : index
    %c0_24 = arith.constant 0 : index
    %c0_25 = arith.constant 0 : index
    %18 = vector.load %arg9[%c0_23, %c0_24, %c0_25] : memref<18x18x128xf32, #tpu.memory_space<vmem>>, vector<16x16x128xf32>
    %19 = vector.shape_cast %18 : vector<16x16x128xf32> to vector<256x128xf32>
    %20 = arith.truncf %19 : vector<256x128xf32> to vector<256x128xbf16>
    %c0_26 = arith.constant 0 : index
    %c0_27 = arith.constant 0 : index
    %21 = vector.load %arg10[%c0_26, %c0_27] : memref<256x1152xbf16, #tpu.memory_space<vmem>>, vector<256x128xbf16>
    tpu.vector_store %arg10[%c0_26, %c0_27], %20 {strides = array<i32>} : memref<256x1152xbf16, #tpu.memory_space<vmem>>, vector<256x128xbf16>,
    %c0_28 = arith.constant 0 : index
    %c1_29 = arith.constant 1 : index
    %c0_30 = arith.constant 0 : index
    %22 = vector.load %arg9[%c0_28, %c1_29, %c0_30] : memref<18x18x128xf32, #tpu.memory_space<vmem>>, vector<16x16x128xf32>
    %23 = vector.shape_cast %22 : vector<16x16x128xf32> to vector<256x128xf32>
    %24 = arith.truncf %23 : vector<256x128xf32> to vector<256x128xbf16>
    %c0_31 = arith.constant 0 : index
    %c128 = arith.constant 128 : index
    %25 = vector.load %arg10[%c0_31, %c128] : memref<256x1152xbf16, #tpu.memory_space<vmem>>, vector<256x128xbf16>
    tpu.vector_store %arg10[%c0_31, %c128], %24 {strides = array<i32>} : memref<256x1152xbf16, #tpu.memory_space<vmem>>, vector<256x128xbf16>,
    %c0_32 = arith.constant 0 : index
    %c2 = arith.constant 2 : index
    %c0_33 = arith.constant 0 : index
    %26 = vector.load %arg9[%c0_32, %c2, %c0_33] : memref<18x18x128xf32, #tpu.memory_space<vmem>>, vector<16x16x128xf32>
    %27 = vector.shape_cast %26 : vector<16x16x128xf32> to vector<256x128xf32>
    %28 = arith.truncf %27 : vector<256x128xf32> to vector<256x128xbf16>
    %c0_34 = arith.constant 0 : index
    %c256 = arith.constant 256 : index
    %29 = vector.load %arg10[%c0_34, %c256] : memref<256x1152xbf16, #tpu.memory_space<vmem>>, vector<256x128xbf16>
    tpu.vector_store %arg10[%c0_34, %c256], %28 {strides = array<i32>} : memref<256x1152xbf16, #tpu.memory_space<vmem>>, vector<256x128xbf16>,
    %c1_35 = arith.constant 1 : index
    %c0_36 = arith.constant 0 : index
    %c0_37 = arith.constant 0 : index
    %30 = vector.load %arg9[%c1_35, %c0_36, %c0_37] : memref<18x18x128xf32, #tpu.memory_space<vmem>>, vector<16x16x128xf32>
    %31 = vector.shape_cast %30 : vector<16x16x128xf32> to vector<256x128xf32>
    %32 = arith.truncf %31 : vector<256x128xf32> to vector<256x128xbf16>
    %c0_38 = arith.constant 0 : index
    %c384 = arith.constant 384 : index
    %33 = vector.load %arg10[%c0_38, %c384] : memref<256x1152xbf16, #tpu.memory_space<vmem>>, vector<256x128xbf16>
    tpu.vector_store %arg10[%c0_38, %c384], %32 {strides = array<i32>} : memref<256x1152xbf16, #tpu.memory_space<vmem>>, vector<256x128xbf16>,
    %c1_39 = arith.constant 1 : index
    %c1_40 = arith.constant 1 : index
    %c0_41 = arith.constant 0 : index
    %34 = vector.load %arg9[%c1_39, %c1_40, %c0_41] : memref<18x18x128xf32, #tpu.memory_space<vmem>>, vector<16x16x128xf32>
    %35 = vector.shape_cast %34 : vector<16x16x128xf32> to vector<256x128xf32>
    %36 = arith.truncf %35 : vector<256x128xf32> to vector<256x128xbf16>
    %c0_42 = arith.constant 0 : index
    %c512 = arith.constant 512 : index
    %37 = vector.load %arg10[%c0_42, %c512] : memref<256x1152xbf16, #tpu.memory_space<vmem>>, vector<256x128xbf16>
    tpu.vector_store %arg10[%c0_42, %c512], %36 {strides = array<i32>} : memref<256x1152xbf16, #tpu.memory_space<vmem>>, vector<256x128xbf16>,
    %c1_43 = arith.constant 1 : index
    %c2_44 = arith.constant 2 : index
    %c0_45 = arith.constant 0 : index
    %38 = vector.load %arg9[%c1_43, %c2_44, %c0_45] : memref<18x18x128xf32, #tpu.memory_space<vmem>>, vector<16x16x128xf32>
    %39 = vector.shape_cast %38 : vector<16x16x128xf32> to vector<256x128xf32>
    %40 = arith.truncf %39 : vector<256x128xf32> to vector<256x128xbf16>
    %c0_46 = arith.constant 0 : index
    %c640 = arith.constant 640 : index
    %41 = vector.load %arg10[%c0_46, %c640] : memref<256x1152xbf16, #tpu.memory_space<vmem>>, vector<256x128xbf16>
    tpu.vector_store %arg10[%c0_46, %c640], %40 {strides = array<i32>} : memref<256x1152xbf16, #tpu.memory_space<vmem>>, vector<256x128xbf16>,
    %c2_47 = arith.constant 2 : index
    %c0_48 = arith.constant 0 : index
    %c0_49 = arith.constant 0 : index
    %42 = vector.load %arg9[%c2_47, %c0_48, %c0_49] : memref<18x18x128xf32, #tpu.memory_space<vmem>>, vector<16x16x128xf32>
    %43 = vector.shape_cast %42 : vector<16x16x128xf32> to vector<256x128xf32>
    %44 = arith.truncf %43 : vector<256x128xf32> to vector<256x128xbf16>
    %c0_50 = arith.constant 0 : index
    %c768 = arith.constant 768 : index
    %45 = vector.load %arg10[%c0_50, %c768] : memref<256x1152xbf16, #tpu.memory_space<vmem>>, vector<256x128xbf16>
    tpu.vector_store %arg10[%c0_50, %c768], %44 {strides = array<i32>} : memref<256x1152xbf16, #tpu.memory_space<vmem>>, vector<256x128xbf16>,
    %c2_51 = arith.constant 2 : index
    %c1_52 = arith.constant 1 : index
    %c0_53 = arith.constant 0 : index
    %46 = vector.load %arg9[%c2_51, %c1_52, %c0_53] : memref<18x18x128xf32, #tpu.memory_space<vmem>>, vector<16x16x128xf32>
    %47 = vector.shape_cast %46 : vector<16x16x128xf32> to vector<256x128xf32>
    %48 = arith.truncf %47 : vector<256x128xf32> to vector<256x128xbf16>
    %c0_54 = arith.constant 0 : index
    %c896 = arith.constant 896 : index
    %49 = vector.load %arg10[%c0_54, %c896] : memref<256x1152xbf16, #tpu.memory_space<vmem>>, vector<256x128xbf16>
    tpu.vector_store %arg10[%c0_54, %c896], %48 {strides = array<i32>} : memref<256x1152xbf16, #tpu.memory_space<vmem>>, vector<256x128xbf16>,
    %c2_55 = arith.constant 2 : index
    %c2_56 = arith.constant 2 : index
    %c0_57 = arith.constant 0 : index
    %50 = vector.load %arg9[%c2_55, %c2_56, %c0_57] : memref<18x18x128xf32, #tpu.memory_space<vmem>>, vector<16x16x128xf32>
    %51 = vector.shape_cast %50 : vector<16x16x128xf32> to vector<256x128xf32>
    %52 = arith.truncf %51 : vector<256x128xf32> to vector<256x128xbf16>
    %c0_58 = arith.constant 0 : index
    %c1024 = arith.constant 1024 : index
    %53 = vector.load %arg10[%c0_58, %c1024] : memref<256x1152xbf16, #tpu.memory_space<vmem>>, vector<256x128xbf16>
    tpu.vector_store %arg10[%c0_58, %c1024], %52 {strides = array<i32>} : memref<256x1152xbf16, #tpu.memory_space<vmem>>, vector<256x128xbf16>,
    %c0_59 = arith.constant 0 : index
    %c0_60 = arith.constant 0 : index
    %54 = vector.load %arg10[%c0_59, %c0_60] : memref<256x1152xbf16, #tpu.memory_space<vmem>>, vector<256x1152xbf16>
    %c0_61 = arith.constant 0 : index
    %c0_62 = arith.constant 0 : index
    %55 = vector.load %arg4[%c0_61, %c0_62] : memref<1152x128xbf16, #tpu.memory_space<vmem>>, vector<1152x128xbf16>
    %cst_63 = arith.constant dense<0.000000e+00> : vector<256x128xf32>
    %56 = tpu.matmul %54, %55, %cst_63 {dimension_numbers = #tpu.dot_dimension_numbers<[1], [0], [0], [1], [0, 0, 1, 1], [], []>} : vector<256x1152xbf16>, vector<1152x128xbf16>, vector<256x128xf32> -> vector<256x128xf32>
    %c0_64 = arith.constant 0 : index
    %c0_65 = arith.constant 0 : index
    %57 = vector.load %arg5[%c0_64, %c0_65] : memref<1x128xf32, #tpu.memory_space<vmem>>, vector<1x128xf32>
    %58 = vector.broadcast %57 : vector<1x128xf32> to vector<256x128xf32>
    %59 = arith.addf %56, %58 : vector<256x128xf32>
    %cst_66 = arith.constant 0.000000e+00 : f32
    %60 = vector.broadcast %cst_66 : f32 to vector<256x128xf32>
    %61 = arith.maximumf %59, %60 : vector<256x128xf32>
    %62 = arith.truncf %61 : vector<256x128xf32> to vector<256x128xbf16>
    %c0_67 = arith.constant 0 : index
    %c0_68 = arith.constant 0 : index
    %63 = vector.load %arg6[%c0_67, %c0_68] : memref<128x512xbf16, #tpu.memory_space<vmem>>, vector<128x512xbf16>
    %cst_69 = arith.constant dense<0.000000e+00> : vector<256x512xf32>
    %64 = tpu.matmul %62, %63, %cst_69 {dimension_numbers = #tpu.dot_dimension_numbers<[1], [0], [0], [1], [0, 0, 1, 1], [], []>} : vector<256x128xbf16>, vector<128x512xbf16>, vector<256x512xf32> -> vector<256x512xf32>
    %c0_70 = arith.constant 0 : index
    %c0_71 = arith.constant 0 : index
    %65 = vector.load %arg7[%c0_70, %c0_71] : memref<1x512xf32, #tpu.memory_space<vmem>>, vector<1x512xf32>
    %66 = vector.broadcast %65 : vector<1x512xf32> to vector<256x512xf32>
    %67 = arith.addf %64, %66 : vector<256x512xf32>
    %68 = arith.addf %67, %1 : vector<256x512xf32>
    %cst_72 = arith.constant 0.000000e+00 : f32
    %69 = vector.broadcast %cst_72 : f32 to vector<256x512xf32>
    %70 = arith.maximumf %68, %69 : vector<256x512xf32>
    %71 = vector.shape_cast %70 : vector<256x512xf32> to vector<1x16x16x512xf32>
    %c0_73 = arith.constant 0 : index
    %c0_74 = arith.constant 0 : index
    %c0_75 = arith.constant 0 : index
    %c0_76 = arith.constant 0 : index
    %72 = vector.load %arg8[%c0_73, %c0_74, %c0_75, %c0_76] : memref<1x16x16x512xf32, #tpu.memory_space<vmem>>, vector<1x16x16x512xf32>
    tpu.vector_store %arg8[%c0_73, %c0_74, %c0_75, %c0_76], %71 {strides = array<i32>} : memref<1x16x16x512xf32, #tpu.memory_space<vmem>>, vector<1x16x16x512xf32>,
    return
  }
  func.func @transform_0(%arg0: i32) -> (i32, i32, i32, i32) {
    %c0_i32 = arith.constant 0 : i32
    %c0_i32_0 = arith.constant 0 : i32
    %c0_i32_1 = arith.constant 0 : i32
    %c0_i32_2 = arith.constant 0 : i32
    return %arg0, %c0_i32, %c0_i32_0, %c0_i32_1 : i32, i32, i32, i32
  }
  func.func @transform_1(%arg0: i32) -> (i32, i32) {
    %c0_i32 = arith.constant 0 : i32
    %c0_i32_0 = arith.constant 0 : i32
    %c0_i32_1 = arith.constant 0 : i32
    return %c0_i32, %c0_i32_0 : i32, i32
  }
  func.func @transform_2(%arg0: i32) -> (i32, i32) {
    %c0_i32 = arith.constant 0 : i32
    %c0_i32_0 = arith.constant 0 : i32
    %c0_i32_1 = arith.constant 0 : i32
    return %c0_i32, %c0_i32_0 : i32, i32
  }
  func.func @transform_3(%arg0: i32) -> (i32, i32) {
    %c0_i32 = arith.constant 0 : i32
    %c0_i32_0 = arith.constant 0 : i32
    %c0_i32_1 = arith.constant 0 : i32
    return %c0_i32, %c0_i32_0 : i32, i32
  }
  func.func @transform_4(%arg0: i32) -> (i32, i32) {
    %c0_i32 = arith.constant 0 : i32
    %c0_i32_0 = arith.constant 0 : i32
    %c0_i32_1 = arith.constant 0 : i32
    return %c0_i32, %c0_i32_0 : i32, i32
  }
  func.func @transform_5(%arg0: i32) -> (i32, i32) {
    %c0_i32 = arith.constant 0 : i32
    %c0_i32_0 = arith.constant 0 : i32
    %c0_i32_1 = arith.constant 0 : i32
    return %c0_i32, %c0_i32_0 : i32, i32
  }
  func.func @transform_6(%arg0: i32) -> (i32, i32) {
    %c0_i32 = arith.constant 0 : i32
    %c0_i32_0 = arith.constant 0 : i32
    %c0_i32_1 = arith.constant 0 : i32
    return %c0_i32, %c0_i32_0 : i32, i32
  }
  func.func @transform_7(%arg0: i32) -> (i32, i32, i32, i32) {
    %c0_i32 = arith.constant 0 : i32
    %c0_i32_0 = arith.constant 0 : i32
    %c0_i32_1 = arith.constant 0 : i32
    %c0_i32_2 = arith.constant 0 : i32
    return %arg0, %c0_i32, %c0_i32_0, %c0_i32_1 : i32, i32, i32, i32
  }
}

</mosaic_0001>

<bundles_post_ra>
// kernel: tpu_custom_call.1
= control target key start
LH: loop header
LB: loop body
LE: loop exit
PB: predicated region body
PF: predicated region fallthrough
CT: control target
= control target key end

     0   :  { %12 = vsyncpa [#allocation5], 0  ;;  %s7358_s0 = inlined_call_operand.hbm [shape: f32[2,16,16,512], index: 0, kind: input, shape index: {}]   ;;  %s7359_s1 = inlined_call_operand.hbm [shape: bf16[512,128], index: 1, kind: input, shape index: {}]   ;;  %s7360_s2 = inlined_call_operand.vmem [shape: f32[1,128], index: 2, kind: input, shape index: {}]   ;;  %s7361_s3 = inlined_call_operand.hbm [shape: bf16[1152,128], index: 3, kind: input, shape index: {}]   ;;  %s7362_s4 = inlined_call_operand.vmem [shape: f32[1,128], index: 4, kind: input, shape index: {}]   ;;  %s7363_s5 = inlined_call_operand.hbm [shape: bf16[128,512], index: 5, kind: input, shape index: {}]   ;;  %s7364_s6 = inlined_call_operand.vmem [shape: f32[1,512], index: 6, kind: input, shape index: {}]   ;;  %s7365_s7 = inlined_call_operand.hbm [shape: f32[2,16,16,512], index: 7, kind: output, shape index: {}]  }
   0x1   :  { %14 = vsyncpa [#allocation5 + $0x1], 0 }
   0x2   :  { %15 = vsyncpa [#allocation8], 0 }
   0x3   :  { %16 = vsyncpa [#allocation11], 0 }
   0x4   :  { %17 = vsyncpa [#allocation6], 0 }
   0x5   :  { %19 = vsyncpa [#allocation6 + $0x1], 0  ;;  %s6014_s24 = smov 0   ;;  %s6016_s25 = smov 0  }
   0x6   :  { %s6018_s26 = smov 0   ;;  %s6020_s27 = smov 0  }
   0x7 LB: > { %s6035_s28 = sadd.s32 4294967295, %s5956_s27   ;;  %s4480_s29 = sadd.s32 4294967294, %s5956_s27   ;;  %s5956_s27 = sphi %s6020_s27, %s7391_s27   ;;  %s5952_s26 = sphi %s6018_s26, %s7390_s26   ;;  %s5948_s25 = sphi %s6016_s25, %s7389_s25   ;;  %s5944_s24 = sphi %s6014_s24, %s7388_s24  }
   0x8   : > { %p45_p0 = scmp.ne.s32.totalorder %s5948_s25, %s5944_s24  ;;  %p7366_p1 = scmp.eq.s32.totalorder %s6035_s28, 0 }
   0x9   : > { %p201_p3 = scmp.eq.s32.totalorder %s4480_s29, 1  ;;  %p4481_p5 = scmp.ge.s32.totalorder %s5956_s27, 1 }
   0xa   : > { %p6044_p4 = por %p7366_p1, %p45_p0  ;;  %p208_p7 = scmp.lt.s32.totalorder %s5956_s27, 3 }
   0xb   : > { %p6049_p6 = por %p201_p3, %p45_p0  ;;  %s5958_s10 = smov [#allocation7]  }
   0xc   : > { %s7370_s30 = scalar_select %p6044_p4, 1, 0 }
   0xd   : > { %s7371_s8 = scalar_select %p6049_p6, 1, 0 }
   0xe   : > { %p6054_p8 = pnand %p4481_p5, %p208_p7  ;;  %s220_s11 = sshll.u32 %s5958_s10, 4  ;;  %s6058_s11 = int_to_ptr.vmem [resolvable:$true] %s220_s11 }
   0xf   : > { %7372 = sst [smem:[#allocation17_spill]] %s7371_s8  ;;  %s5959_s13 = smov [#allocation9]  }
  0x10   : > { %s7373_s9 = scalar_select %p6054_p8, 1, 0 }
  0x11   : > { %p5416_p9 = pneg %p6054_p8  ;;  %s236_s14 = sshll.u32 %s5959_s13, 4  ;;  %s6069_s14 = int_to_ptr.vmem [resolvable:$true] %s236_s14 }
  0x12   : > { %s5960_s15 = smov [#allocation10]   ;;  %s5768_s19 = scalar_lea.hbm %s7359_s1, 4096 }
  0x13   : > { %p6065_p11 = pnand %p5416_p9, %p7366_p1  ;;  %s6071_s16 = sshll.u32 %s5960_s15, 4  ;;  %s253_s16 = int_to_ptr.vmem [resolvable:$true] %s6071_s16 }
  0x14   : > { %p5769_p12 = scmp.ne.s32.totalorder %s7359_s1, %s5768_s19  ;;  %p5775_p5 = scmp.lt.u32.totalorder %s5768_s19, %s7359_s1 }
  0x15   : > { %p6081_p13 = pneg %p6065_p11 }
  0x17   : > { %p5771_p0 = pnand %p6081_p13, %p5769_p12 }
  0x19   : > { %p5772_p3 = pneg %p5771_p0 }
  0x1b   : > { %p5777_p7 = pnand %p5775_p5, %p5772_p3 }
  0x1d   : > { %5780 = shalt.err (!%p5777_p7)
}
  0x1e   : > { %s5781_s10 = scalar_lea.vmem %s6058_s11, 4096  ;;  %p5789_p2 = scmp.lt.s32.totalorder %s6058_s11, %s6058_s11 }
  0x1f   : > { %p5782_p9 = scmp.ne.s32.totalorder %s6058_s11, %s5781_s10  ;;  %p5790_p6 = scmp.lt.s32.totalorder %s5781_s10, %s5781_s10 }
  0x21   : > { %p5784_p10 = pnand %p5782_p9, %p6081_p13  ;;  %p5791_p12 = por %p5790_p6, %p5789_p2 }
  0x23   : > { %p5785_p1 = pneg %p5784_p10 }
  0x25   : > { %p5792_p0 = pnand %p5791_p12, %p5785_p1 }
  0x27   : > { %5795 = shalt.err (!%p5792_p0)
}
  0x28   : > { %s5961_s13 = smov 64   ;;  %s5962_s15 = smov 4  }
  0x29   : > { %5419 = dma.hbm_to_vmem [thread:$0]  (!%p6065_p11), %s7359_s1, 4096, %s6058_s11, [#allocation8], %s5961_s13, %s5961_s13, %s5962_s15  }
  0x2a   : > { %s5796_s21 = scalar_lea.hbm %s7361_s3, 9216 }
  0x2b   : > { %p5797_p2 = scmp.ne.s32.totalorder %s7361_s3, %s5796_s21  ;;  %p5803_p10 = scmp.lt.u32.totalorder %s5796_s21, %s7361_s3 }
  0x2d   : > { %p5799_p1 = pnand %p5797_p2, %p6081_p13 }
  0x2f   : > { %p5800_p6 = pneg %p5799_p1 }
  0x31   : > { %p5805_p3 = pnand %p5803_p10, %p5800_p6 }
  0x33   : > { %5808 = shalt.err (!%p5805_p3)
}
  0x34   : > { %s5809_s11 = scalar_lea.vmem %s6069_s14, 9216  ;;  %p5817_p12 = scmp.lt.s32.totalorder %s6069_s14, %s6069_s14 }
  0x35   : > { %p5810_p5 = scmp.ne.s32.totalorder %s6069_s14, %s5809_s11  ;;  %p5818_p0 = scmp.lt.s32.totalorder %s5809_s11, %s5809_s11 }
  0x37   : > { %p5812_p7 = pnand %p5810_p5, %p6081_p13  ;;  %p5819_p2 = por %p5818_p0, %p5817_p12 }
  0x39   : > { %p5813_p9 = pneg %p5812_p7 }
  0x3b   : > { %p5820_p1 = pnand %p5819_p2, %p5813_p9 }
  0x3d   : > { %5823 = shalt.err (!%p5820_p1)
}
  0x3e   : > { %5422 = dma.hbm_to_vmem [thread:$0]  (!%p6065_p11), %s7361_s3, 9216, %s6069_s14, [#allocation8], %s5961_s13, %s5961_s13, %s5962_s15  }
  0x3f   : > { %s5824_s20 = scalar_lea.hbm %s7363_s5, 4096 }
  0x40   : > { %p5825_p6 = scmp.ne.s32.totalorder %s7363_s5, %s5824_s20  ;;  %p5831_p5 = scmp.lt.u32.totalorder %s5824_s20, %s7363_s5 }
  0x42   : > { %p5827_p10 = pnand %p5825_p6, %p6081_p13 }
  0x44   : > { %p5828_p3 = pneg %p5827_p10 }
  0x46   : > { %p5833_p7 = pnand %p5831_p5, %p5828_p3 }
  0x48   : > { %5836 = shalt.err (!%p5833_p7)
}
  0x49   : > { %s5837_s11 = scalar_lea.vmem %s253_s16, 4096  ;;  %p5845_p2 = scmp.lt.s32.totalorder %s253_s16, %s253_s16 }
  0x4a   : > { %p5838_p9 = scmp.ne.s32.totalorder %s253_s16, %s5837_s11  ;;  %p5846_p1 = scmp.lt.s32.totalorder %s5837_s11, %s5837_s11 }
  0x4c   : > { %p5840_p12 = pnand %p5838_p9, %p6081_p13  ;;  %p5847_p4 = por %p5846_p1, %p5845_p2 }
  0x4e   : > { %p5841_p0 = pneg %p5840_p12 }
  0x50   : > { %p5848_p8 = pnand %p5847_p4, %p5841_p0 }
  0x52   : > { %5851 = shalt.err (!%p5848_p8)
}
  0x53   : > { %s5963_s14 = smov 256   ;;  %s5964_s22 = smov 16  }
  0x54   : > { %5425 = dma.hbm_to_vmem [thread:$0]  (!%p6065_p11), %s7363_s5, 4096, %s253_s16, [#allocation11], %s5963_s14, %s5963_s14, %s5964_s22  }
  0x55   : > { %s6145_s8 = sadd.s32 1, %s5956_s27   ;;  %s32_s18 = sadd.s32 1, %s5952_s26 }
  0x56   : > { %s29_s17 = ssub.s32 %s5956_s27, %s6145_s8  ;;  %p39_p8 = scmp.ne.s32.totalorder %s5952_s26, %s5948_s25 }
  0x57   : > { %p30_p4 = scmp.eq.s32.totalorder %s29_s17, 0  ;;  %p40_p13 = scmp.eq.s32.totalorder %s5956_s27, 0 }
  0x58   : > { %p5437_p6 = scmp.lt.s32.totalorder %s5956_s27, 2  ;;  %p7376_p3 = scmp.eq.s32.totalorder %s6035_s28, 1 }
  0x59   : > { %s6155_s19 = scalar_select %p30_p4, %s5952_s26, %s32_s18  }
  0x5a   : > { %p41_p10 = por %p40_p13, %p39_p8  ;;  %p6159_p5 = por %p7376_p3, %p39_p8 }
  0x5b   : > { %s269_s12 = sand.u32 1, %s5952_s26   ;;  %s4638_s21 = sshll.u32 %s5956_s27, 14 }
  0x5c   : > { %s4486_s16 = sshll.u32 %s269_s12, 10  ;;  %s6168_s10 = scalar_lea.hbm %s7358_s0, %s4638_s21 }
  0x5d   : > { %s273_s11 = scalar_lea.vmem [#allocation4], %s4486_s16  ;;  %p6170_p11 = pnand %p5437_p6, %p41_p10 }
  0x5e   : > { %s280_s14 = sshll.u32 %s273_s11, 4  ;;  %s6176_s13 = scalar_lea.sflag [#allocation5], %s269_s12  ;;  %s6174_s14 = int_to_ptr.vmem [resolvable:$true] %s280_s14 }
  0x5f   : > { %s5852_s15 = scalar_lea.hbm %s6168_s10, 16384  ;;  %p5854_p9 = pneg %p6170_p11 }
  0x60   : > { %p5853_p7 = scmp.ne.s32.totalorder %s6168_s10, %s5852_s15  ;;  %s5857_s21 = scalar_lea.hbm %s7358_s0, 32768 }
  0x61   : > { %p5858_p2 = scmp.lt.u32.totalorder %s6168_s10, %s7358_s0  ;;  %p5859_p1 = scmp.lt.u32.totalorder %s5857_s21, %s5852_s15 }
  0x62   : > { %p5855_p12 = pnand %p5854_p9, %p5853_p7  ;;  %p5861_p8 = scmp.lt.u32.totalorder %s5852_s15, %s6168_s10 }
  0x63   : > { %p5860_p4 = por %p5859_p1, %p5858_p2 }
  0x64   : > { %p5856_p0 = pneg %p5855_p12 }
  0x65   : > { %p5862_p13 = por %p5861_p8, %p5860_p4 }
  0x67   : > { %p5863_p6 = pnand %p5862_p13, %p5856_p0 }
  0x69   : > { %5866 = shalt.err (!%p5863_p6)
}
  0x6a   : > { %s5867_s12 = scalar_lea.vmem %s6174_s14, 16384  ;;  %s5965_s29 = smov [#allocation4]  }
  0x6b   : > { %p5868_p10 = scmp.ne.s32.totalorder %s6174_s14, %s5867_s12  ;;  %s5872_s11 = sshll.u32 %s5965_s29, 4  ;;  %s5873_s11 = int_to_ptr.vmem [resolvable:$false] %s5872_s11 }
  0x6c   : > { %s5874_s17 = scalar_lea.vmem %s5873_s11, 32768  ;;  %p5875_p12 = scmp.lt.s32.totalorder %s6174_s14, %s5873_s11 }
  0x6d   : > { %p5870_p3 = pnand %p5868_p10, %p5854_p9  ;;  %p5876_p2 = scmp.lt.s32.totalorder %s5874_s17, %s5867_s12 }
  0x6f   : > { %p5871_p7 = pneg %p5870_p3  ;;  %p5877_p1 = por %p5876_p2, %p5875_p12 }
  0x71   : > { %p5878_p4 = pnand %p5877_p1, %p5871_p7 }
  0x73   : > { %5881 = shalt.err (!%p5878_p4)
}
  0x74   : > { %s5966_s15 = smov 512   ;;  %s5967_s18 = smov 32  }
  0x75   : > { %5429 = dma.hbm_to_vmem [thread:$0]  (!%p6170_p11), %s6168_s10, 16384, %s6174_s14, %s6176_s13, %s5966_s15, %s5966_s15, %s5967_s18  }
  0x76   : > { %p7379_p9 = scmp.ne.s32.totalorder %s7373_s9, 0 }
  0x77   : > { %s6207_s21 = sand.u32 (!%p7379_p9), 1, %s5948_s25   ;;  %p7380_p0 = scmp.ne.s32.totalorder (!%p7379_p9), %s7370_s30, 0 }
  0x78   : > { %292 = sbr.rel (%p7379_p9) target bundleno = 1258 (0x4ea), region = 48  ;;  %s4490_s16 = sshll.u32 (!%p7379_p9), %s6207_s21, 10 }
  0x79   : > { %s295_s23 = scalar_lea.sflag (!%p7379_p9), [#allocation5], %s6207_s21  ;;  %s6213_s12 = scalar_lea.vmem (!%p7379_p9), [#allocation4], %s4490_s16 }
  0x7f   : > { %5927 = dma.done.wait (%p7380_p0), %s295_s23, 16384  }
  0x80   : > { %5929 = vsyncadd (%p7380_p0), %s295_s23, 4294950912  ;;  %p7381_p11 = scmp.eq.s32.totalorder %s6035_s28, 0 }
  0x82   : > { %5931 = dma.done.wait (%p7381_p11), [#allocation8], 13312   ;;  %p7382_p8 = pmov %p7381_p11 }
  0x84   : > { %5933 = vsyncadd (%p7382_p8), [#allocation8], 4294953984  ;;  %p7383_p13 = pmov %p7382_p8 }
  0x85   : > { %p7384_p6 = pmov %p7382_p8 }
  0x86   : > { %5935 = dma.done.wait (%p7383_p13), [#allocation11], 4096  }
  0x87   : > { %5937 = vsyncadd (%p7384_p6), [#allocation11], 4294963200  ;;  %v5487_v0 = vld [vmem:[#allocation7 + $0x40] sm:$0xff]   ;;  %v5489_v2 = vld [vmem:[#allocation7 + $0x48] sm:$0xff]   ;;  %s6937_s29 = scalar_lea.vmem [#allocation12], %s4490_s16  ;;  %s4639_s11 = sshll.u32 %s6035_s28, 14 }
  0x88   : > { %v5488_v1 = vld [vmem:[#allocation7] sm:$0xff]   ;;  %5384 = vmatprep.subr.bf16.mxu1 %v5487_v0  ;;  %4640 = vmatprep.subr.bf16.mxu0 %v5487_v0  ;;  %v5490_v3 = vld [vmem:[#allocation7 + $0x8] sm:$0xff]   ;;  %v5491_v4 = vld [vmem:[#allocation7 + $0x50] sm:$0xff]   ;;  %s4378_s17 = sshll.u32 %s6937_s29, 4  ;;  %s7306_s18 = scalar_lea.hbm %s7365_s7, %s4639_s11  ;;  %s7308_s17 = int_to_ptr.vmem [resolvable:$true] %s4378_s17 }
  0x89   : > { %5392 = vmatpush3.bf16.msra.mxu1 %v5488_v1  ;;  %4641 = vmatpush3.bf16.msra.mxu0 %v5488_v1  ;;  %v5492_v5 = vld [vmem:[#allocation7 + $0x10] sm:$0xff]   ;;  %v5493_v6 = vld [vmem:[#allocation7 + $0x58] sm:$0xff]   ;;  %v5495_v8 = vld [vmem:[#allocation7 + $0x60] sm:$0xff]   ;;  %s4365_s16 = scalar_lea.sflag [#allocation6], %s6207_s21  ;;  %s5882_s23 = scalar_lea.vmem %s7308_s17, 16384 }
  0x8a   : > { %5385 = vmatprep.subr.bf16.mxu1 %v5489_v2  ;;  %4642 = vmatprep.subr.bf16.mxu0 %v5489_v2  ;;  %v5494_v7 = vld [vmem:[#allocation7 + $0x18] sm:$0xff]   ;;  %v5496_v9 = vld [vmem:[#allocation7 + $0x20] sm:$0xff]   ;;  %v5497_v10 = vld [vmem:[#allocation7 + $0x68] sm:$0xff]   ;;  %p5883_p10 = scmp.ne.s32.totalorder %s7308_s17, %s5882_s23 }
  0x8b   : > { %v439_v11 = vld [vmem:[%s6213_s12 + $0x308] sm:$0xff]  ;;  %v5499_v15 = vld [vmem:[#allocation7 + $0x70] sm:$0xff]   ;;  %v5501_v17 = vld [vmem:[#allocation7 + $0x78] sm:$0xff]  }
  0x8c   : > { %v443_v12 = vld [vmem:[%s6213_s12 + $0x328] sm:$0xff]  ;;  %v5500_v16 = vld [vmem:[#allocation7 + $0x30] sm:$0xff]   ;;  %v5502_v18 = vld [vmem:[#allocation7 + $0x38] sm:$0xff]   ;;  %p5884_p3 = pnand %p5883_p10, %p6159_p5 }
  0x8d   : > { %5393 = vmatpush3.bf16.msra.mxu1 %v5490_v3  ;;  %4643 = vmatpush3.bf16.msra.mxu0 %v5490_v3  ;;  %v519_v13 = vpack.c.bf16 %v443_v12, %v439_v11  ;;  %v5498_v14 = vld [vmem:[#allocation7 + $0x28] sm:$0xff]   ;;  %v438_v19 = vld [vmem:[%s6213_s12 + $0x300] sm:$0xff]  ;;  %v5507_v31 = vld [vmem:[#allocation7 + $0xd0] sm:$0xff]  }
  0x8e   : > { %5386 = vmatprep.subr.bf16.mxu1 %v5491_v4  ;;  %4644 = vmatprep.subr.bf16.mxu0 %v5491_v4  ;;  %v442_v20 = vld [vmem:[%s6213_s12 + $0x320] sm:$0xff]  ;;  %v447_v22 = vld [vmem:[%s6213_s12 + $0x348] sm:$0xff]  ;;  %v5508_v41 = vld [vmem:[#allocation7 + $0x90] sm:$0xff]   ;;  %p5885_p7 = pneg %p5884_p3 }
  0x8f   : > { %925 = vmatprep.mubr.bf16.mxu1 %v519_v13  ;;  %v5503_v21 = vld [vmem:[#allocation7 + $0xc0] sm:$0xff]   ;;  %v451_v23 = vld [vmem:[%s6213_s12 + $0x368] sm:$0xff]  ;;  %v518_v24 = vpack.c.bf16 %v442_v20, %v438_v19  ;;  %v5509_v42 = vld [vmem:[#allocation7 + $0xd8] sm:$0xff]  }
  0x90   : > { %v5504_v25 = vld [vmem:[#allocation7 + $0x80] sm:$0xff]   ;;  %v523_v26 = vpack.c.bf16 %v451_v23, %v447_v22  ;;  %v5505_v27 = vld [vmem:[#allocation7 + $0xc8] sm:$0xff]   ;;  %v5510_v49 = vld [vmem:[#allocation7 + $0x98] sm:$0xff]  }
  0x91   : > { %5394 = vmatpush3.bf16.msra.mxu1 %v5492_v5  ;;  %4645 = vmatpush3.bf16.msra.mxu0 %v5492_v5  ;;  %v5506_v28 = vld [vmem:[#allocation7 + $0x88] sm:$0xff]   ;;  %v446_v29 = vld [vmem:[%s6213_s12 + $0x340] sm:$0xff]  ;;  %v5516_v12 = vld [vmem:[#allocation7 + $0xb0] sm:$0xff]  }
  0x92   : > { %5387 = vmatprep.subr.bf16.mxu1 %v5493_v6  ;;  %4646 = vmatprep.subr.bf16.mxu0 %v5493_v6  ;;  %v450_v30 = vld [vmem:[%s6213_s12 + $0x360] sm:$0xff]  ;;  %v455_v32 = vld [vmem:[%s6213_s12 + $0x388] sm:$0xff]  ;;  %v5518_v19 = vld [vmem:[#allocation7 + $0xb8] sm:$0xff]  }
  0x93   : > { %v459_v33 = vld [vmem:[%s6213_s12 + $0x3a8] sm:$0xff]  ;;  %v342_v37 = vld [vmem:[%s6213_s12] sm:$0xff]  ;;  %v522_v40 = vpack.c.bf16 %v450_v30, %v446_v29  ;;  %v344_v20 = vld [vmem:[%s6213_s12 + $0x10] sm:$0xff] }
  0x94   : > { %v343_v34 = vld [vmem:[%s6213_s12 + $0x8] sm:$0xff]  ;;  %v346_v38 = vld [vmem:[%s6213_s12 + $0x20] sm:$0xff]  ;;  %v527_v43 = vpack.c.bf16 %v459_v33, %v455_v32  ;;  %v353_v23 = vld [vmem:[%s6213_s12 + $0x58] sm:$0xff] }
  0x95   : > { %5395 = vmatpush3.bf16.msra.mxu1 %v5494_v7  ;;  %4647 = vmatpush3.bf16.msra.mxu0 %v5494_v7  ;;  %v347_v35 = vld [vmem:[%s6213_s12 + $0x28] sm:$0xff]  ;;  %v470_v39 = vpack.c.bf16 %v346_v38, %v342_v37  ;;  %v350_v46 = vld [vmem:[%s6213_s12 + $0x40] sm:$0xff]  ;;  %v5515_v7 = vld [vmem:[#allocation7 + $0xf0] sm:$0xff]  }
  0x96   : > { %5388 = vmatprep.subr.bf16.mxu1 %v5495_v8  ;;  %4648 = vmatprep.subr.bf16.mxu0 %v5495_v8  ;;  %v471_v36 = vpack.c.bf16 %v347_v35, %v343_v34  ;;  %v351_v44 = vld [vmem:[%s6213_s12 + $0x48] sm:$0xff]  ;;  %v354_v48 = vld [vmem:[%s6213_s12 + $0x60] sm:$0xff]  ;;  %v345_v8 = vld [vmem:[%s6213_s12 + $0x18] sm:$0xff] }
  0x97   : > { %v355_v45 = vld [vmem:[%s6213_s12 + $0x68] sm:$0xff]  ;;  %v454_v51 = vld [vmem:[%s6213_s12 + $0x380] sm:$0xff]  ;;  %v474_v53 = vpack.c.bf16 %v354_v48, %v350_v46  ;;  %v352_v32 = vld [vmem:[%s6213_s12 + $0x50] sm:$0xff] }
  0x98   : > { %829 = vmatprep.mubr.bf16.mxu0 %v471_v36  ;;  %v475_v47 = vpack.c.bf16 %v355_v45, %v351_v44  ;;  %v359_v50 = vld [vmem:[%s6213_s12 + $0x88] sm:$0xff]  ;;  %v458_v52 = vld [vmem:[%s6213_s12 + $0x3a0] sm:$0xff]  ;;  %v356_v33 = vld [vmem:[%s6213_s12 + $0x70] sm:$0xff] }
  0x99   : > { %5396 = vmatpush3.bf16.msra.mxu1 %v5496_v9  ;;  %4649 = vmatpush3.bf16.msra.mxu0 %v5496_v9  ;;  %v363_v54 = vld [vmem:[%s6213_s12 + $0xa8] sm:$0xff]  ;;  %v5511_v55 = vld [vmem:[#allocation7 + $0xe0] sm:$0xff]   ;;  %v526_v59 = vpack.c.bf16 %v458_v52, %v454_v51  ;;  %v349_v9 = vld [vmem:[%s6213_s12 + $0x38] sm:$0xff]  ;;  %v476_v38 = vpack.c.bf16 %v356_v33, %v352_v32 }
  0x9a   : > { %5389 = vmatprep.subr.bf16.mxu1 %v5497_v10  ;;  %4650 = vmatprep.subr.bf16.mxu0 %v5497_v10  ;;  %v463_v56 = vld [vmem:[%s6213_s12 + $0x3c8] sm:$0xff]  ;;  %v479_v58 = vpack.c.bf16 %v363_v54, %v359_v50  ;;  %v5512_v60 = vld [vmem:[#allocation7 + $0xa0] sm:$0xff]   ;;  %v473_v13 = vpack.c.bf16 %v349_v9, %v345_v8  ;;  %v361_v35 = vld [vmem:[%s6213_s12 + $0x98] sm:$0xff] }
  0x9b   : > { %v467_v57 = vld [vmem:[%s6213_s12 + $0x3e8] sm:$0xff]  ;;  %v358_v63 = vld [vmem:[%s6213_s12 + $0x80] sm:$0xff]  ;;  %v365_v36 = vld [vmem:[%s6213_s12 + $0xb8] sm:$0xff] }
  0x9c   : > { %v531_v61 = vpack.c.bf16 %v467_v57, %v463_v56  ;;  %v5513_v62 = vld [vmem:[#allocation7 + $0xe8] sm:$0xff]   ;;  %v362_v0 = vld [vmem:[%s6213_s12 + $0xa0] sm:$0xff]  ;;  %v369_v46 = vld [vmem:[%s6213_s12 + $0xd8] sm:$0xff] }
  0x9d   : > { %5397 = vmatpush3.bf16.msra.mxu1 %v5498_v14  ;;  %4651 = vmatpush3.bf16.msra.mxu0 %v5498_v14  ;;  %v367_v1 = vld [vmem:[%s6213_s12 + $0xc8] sm:$0xff]  ;;  %v462_v4 = vld [vmem:[%s6213_s12 + $0x3c0] sm:$0xff]  ;;  %v478_v6 = vpack.c.bf16 %v362_v0, %v358_v63  ;;  %v5517_v14 = vld [vmem:[#allocation7 + $0xf8] sm:$0xff]  }
  0x9e   : > { %5390 = vmatprep.subr.bf16.mxu1 %v5499_v15  ;;  %4652 = vmatprep.subr.bf16.mxu0 %v5499_v15  ;;  %v371_v2 = vld [vmem:[%s6213_s12 + $0xe8] sm:$0xff]  ;;  %v466_v5 = vld [vmem:[%s6213_s12 + $0x3e0] sm:$0xff]  ;;  %v377_v63 = vld [vmem:[%s6213_s12 + $0x118] sm:$0xff] }
  0x9f   : > { %v5514_v3 = vld [vmem:[#allocation7 + $0xa8] sm:$0xff]   ;;  %v483_v10 = vpack.c.bf16 %v371_v2, %v367_v1  ;;  %v530_v11 = vpack.c.bf16 %v466_v5, %v462_v4  ;;  %v366_v15 = vld [vmem:[%s6213_s12 + $0xc0] sm:$0xff]  ;;  %v381_v0 = vld [vmem:[%s6213_s12 + $0x138] sm:$0xff] }
  0xa0   : > { %v378_v29 = vld [vmem:[%s6213_s12 + $0x120] sm:$0xff]  ;;  %v383_v30 = vld [vmem:[%s6213_s12 + $0x148] sm:$0xff]  ;;  %v5524_v1 = vld [vmem:[#allocation9 + $0x10] sm:$0xff]  }
  0xa1   : > { %5398 = vmatpush3.bf16.msra.mxu1 %v5500_v16  ;;  %4653 = vmatpush3.bf16.msra.mxu0 %v5500_v16  ;;  %v370_v16 = vld [vmem:[%s6213_s12 + $0xe0] sm:$0xff]  ;;  %v391_v44 = vld [vmem:[%s6213_s12 + $0x188] sm:$0xff]  ;;  %v5526_v5 = vld [vmem:[#allocation9 + $0x18] sm:$0xff]  }
  0xa2   : > { %5391 = vmatprep.subr.bf16.mxu1 %v5501_v17  ;;  %4654 = vmatprep.subr.bf16.mxu0 %v5501_v17  ;;  %v375_v17 = vld [vmem:[%s6213_s12 + $0x108] sm:$0xff]  ;;  %v482_v22 = vpack.c.bf16 %v370_v16, %v366_v15  ;;  %v5520_v51 = vld [vmem:[#allocation9] sm:$0xff]   ;;  %v380_v15 = vld [vmem:[%s6213_s12 + $0x130] sm:$0xff] }
  0xa3   : > { %v395_v45 = vld [vmem:[%s6213_s12 + $0x1a8] sm:$0xff]  ;;  %v390_v54 = vld [vmem:[%s6213_s12 + $0x180] sm:$0xff]  ;;  %v385_v16 = vld [vmem:[%s6213_s12 + $0x158] sm:$0xff] }
  0xa4   : > { %v495_v50 = vpack.c.bf16 %v395_v45, %v391_v44  ;;  %v5521_v52 = vld [vmem:[#allocation9 + $0x48] sm:$0xff]   ;;  %v398_v8 = vld [vmem:[%s6213_s12 + $0x1c0] sm:$0xff] }
  0xa5   : > { %5399 = vmatpush3.bf16.msra.mxu1 %v5502_v18  ;;  %4655 = vmatpush3.bf16.msra.mxu0 %v5502_v18  ;;  %v379_v18 = vld [vmem:[%s6213_s12 + $0x128] sm:$0xff]  ;;  %v402_v9 = vld [vmem:[%s6213_s12 + $0x1e0] sm:$0xff] }
  0xa6   : > { %4752 = vmatprep.subr.bf16.mxu1 %v5503_v21  ;;  %v348_v21 = vld [vmem:[%s6213_s12 + $0x30] sm:$0xff]  ;;  %v5522_v56 = vld [vmem:[#allocation9 + $0x8] sm:$0xff]   ;;  %v414_v33 = vld [vmem:[%s6213_s12 + $0x240] sm:$0xff] }
  0xa7   : > { %v422_v45 = vld [vmem:[%s6213_s12 + $0x280] sm:$0xff] }
  0xa8   : > { %926 = vmatmul.mubr.bf16.vlgmr.msra.gmra.mrb[0].mxu1 %v518_v24  ;;  %830 = vmatmul.mubr.bf16.vlgmr.msra.gmra.mrb[0].mxu0 %v470_v39  ;;  %v357_v24 = vld [vmem:[%s6213_s12 + $0x78] sm:$0xff]  ;;  %v481_v39 = vpack.c.bf16 %v365_v36, %v361_v35  ;;  %v423_v36 = vld [vmem:[%s6213_s12 + $0x288] sm:$0xff] }
  0xa9   : > { %4753 = vmatpush3.bf16.msra.mxu1 %v5504_v25  ;;  %933 = vmatprep.mubr.bf16.mxu1 %v523_v26  ;;  %v487_v25 = vpack.c.bf16 %v379_v18, %v375_v17  ;;  %v472_v26 = vpack.c.bf16 %v348_v21, %v344_v20  ;;  %v389_v17 = vld [vmem:[%s6213_s12 + $0x178] sm:$0xff]  ;;  %v498_v18 = vpack.c.bf16 %v402_v9, %v398_v8  ;;  %v406_v21 = vld [vmem:[%s6213_s12 + $0x200] sm:$0xff] }
  0xaa   : > { %4754 = vmatprep.subr.bf16.mxu1 %v5505_v27  ;;  %837 = vmatprep.mubr.bf16.mxu0 %v475_v47  ;;  %v477_v27 = vpack.c.bf16 %v357_v24, %v353_v23  ;;  %v373_v47 = vld [vmem:[%s6213_s12 + $0xf8] sm:$0xff]  ;;  %v493_v23 = vpack.c.bf16 %v389_v17, %v385_v16  ;;  %v415_v24 = vld [vmem:[%s6213_s12 + $0x248] sm:$0xff]  ;;  %v428_v16 = vld [vmem:[%s6213_s12 + $0x2b0] sm:$0xff] }
  0xab   : > { %v485_v57 = vpack.c.bf16 %v373_v47, %v369_v46  ;;  %v426_v46 = vld [vmem:[%s6213_s12 + $0x2a0] sm:$0xff]  ;;  %v429_v8 = vld [vmem:[%s6213_s12 + $0x2b8] sm:$0xff] }
  0xac   : > { %v433_v17 = vld [vmem:[%s6213_s12 + $0x2d8] sm:$0xff] }
  0xad   : > { %4755 = vmatpush3.bf16.msra.mxu1 %v5506_v28  ;;  %v374_v28 = vld [vmem:[%s6213_s12 + $0x100] sm:$0xff] }
  0xae   : > { %4756 = vmatprep.subr.bf16.mxu1 %v5507_v31  ;;  %v387_v31 = vld [vmem:[%s6213_s12 + $0x168] sm:$0xff]  ;;  %v486_v34 = vpack.c.bf16 %v378_v29, %v374_v28  ;;  %v393_v28 = vld [vmem:[%s6213_s12 + $0x198] sm:$0xff] }
  0xaf   : > { %v491_v37 = vpack.c.bf16 %v387_v31, %v383_v30  ;;  %v397_v29 = vld [vmem:[%s6213_s12 + $0x1b8] sm:$0xff] }
  0xb0   : > { %934 = vmatmul.mubr.bf16.gmra.mrb[4].mxu1 %v522_v40  ;;  %838 = vmatmul.mubr.bf16.gmra.mrb[4].mxu0 %v474_v53  ;;  %v382_v40 = vld [vmem:[%s6213_s12 + $0x140] sm:$0xff]  ;;  %v497_v35 = vpack.c.bf16 %v397_v29, %v393_v28  ;;  %v441_v28 = vld [vmem:[%s6213_s12 + $0x318] sm:$0xff] }
  0xb1   : > { %4757 = vmatpush3.bf16.msra.mxu1 %v5508_v41  ;;  %941 = vmatprep.mubr.bf16.mxu1 %v527_v43  ;;  %v386_v41 = vld [vmem:[%s6213_s12 + $0x160] sm:$0xff]  ;;  %v364_v43 = vld [vmem:[%s6213_s12 + $0xb0] sm:$0xff]  ;;  %v445_v29 = vld [vmem:[%s6213_s12 + $0x338] sm:$0xff] }
  0xb2   : > { %4758 = vmatprep.subr.bf16.mxu1 %v5509_v42  ;;  %845 = vmatprep.mubr.bf16.mxu0 %v479_v58  ;;  %v360_v42 = vld [vmem:[%s6213_s12 + $0x90] sm:$0xff]  ;;  %v490_v48 = vpack.c.bf16 %v386_v41, %v382_v40  ;;  %v401_v40 = vld [vmem:[%s6213_s12 + $0x1d8] sm:$0xff] }
  0xb3   : > { %v480_v53 = vpack.c.bf16 %v364_v43, %v360_v42  ;;  %v5523_v58 = vld [vmem:[#allocation9 + $0x50] sm:$0xff]   ;;  %v405_v41 = vld [vmem:[%s6213_s12 + $0x1f8] sm:$0xff] }
  0xb4   : > { %v501_v47 = vpack.c.bf16 %v405_v41, %v401_v40  ;;  %v440_v40 = vld [vmem:[%s6213_s12 + $0x310] sm:$0xff] }
  0xb5   : > { %4759 = vmatpush3.bf16.msra.mxu1 %v5510_v49  ;;  %v5519_v49 = vld [vmem:[#allocation9 + $0x40] sm:$0xff]   ;;  %v444_v41 = vld [vmem:[%s6213_s12 + $0x330] sm:$0xff] }
  0xb6   : > { %4760 = vmatprep.subr.bf16.mxu1 %v5511_v55  ;;  %4864 = vmatprep.subr.bf16.mxu0 %v5519_v49  ;;  %v394_v55 = vld [vmem:[%s6213_s12 + $0x1a0] sm:$0xff]  ;;  %v435_v49 = vld [vmem:[%s6213_s12 + $0x2e8] sm:$0xff] }
  0xb7   : > { %4865 = vmatpush3.bf16.msra.mxu0 %v5520_v51  ;;  %v494_v2 = vpack.c.bf16 %v394_v55, %v390_v54  ;;  %v404_v51 = vld [vmem:[%s6213_s12 + $0x1f0] sm:$0xff]  ;;  %v510_v54 = vpack.c.bf16 %v426_v46, %v422_v45  ;;  %v5545_v45 = vld [vmem:[#allocation9 + $0xe8] sm:$0xff]  }
  0xb8   : > { %942 = vmatmul.mubr.bf16.gmra.mrb[8].mxu1 %v526_v59  ;;  %846 = vmatmul.mubr.bf16.gmra.mrb[8].mxu0 %v478_v6  ;;  %v399_v59 = vld [vmem:[%s6213_s12 + $0x1c8] sm:$0xff]  ;;  %v5527_v6 = vld [vmem:[#allocation9 + $0x60] sm:$0xff]  }
  0xb9   : > { %4761 = vmatpush3.bf16.msra.mxu1 %v5512_v60  ;;  %949 = vmatprep.mubr.bf16.mxu1 %v531_v61  ;;  %v368_v60 = vld [vmem:[%s6213_s12 + $0xd0] sm:$0xff]  ;;  %v5546_v46 = vld [vmem:[#allocation9 + $0xa8] sm:$0xff]  }
  0xba   : > { %4762 = vmatprep.subr.bf16.mxu1 %v5513_v62  ;;  %853 = vmatprep.mubr.bf16.mxu0 %v483_v10  ;;  %v372_v61 = vld [vmem:[%s6213_s12 + $0xf0] sm:$0xff]  ;;  %v403_v62 = vld [vmem:[%s6213_s12 + $0x1e8] sm:$0xff]  ;;  %v489_v10 = vpack.c.bf16 %v381_v0, %v377_v63  ;;  %v421_v63 = vld [vmem:[%s6213_s12 + $0x278] sm:$0xff] }
  0xbb   : > { %4866 = vmatprep.subr.bf16.mxu0 %v5521_v52  ;;  %v499_v4 = vpack.c.bf16 %v403_v62, %v399_v59  ;;  %v409_v52 = vld [vmem:[%s6213_s12 + $0x218] sm:$0xff]  ;;  %v434_v59 = vld [vmem:[%s6213_s12 + $0x2e0] sm:$0xff] }
  0xbc   : > { %4867 = vmatpush3.bf16.msra.mxu0 %v5522_v56  ;;  %v417_v62 = vld [vmem:[%s6213_s12 + $0x258] sm:$0xff] }
  0xbd   : > { %4763 = vmatpush3.bf16.msra.mxu1 %v5514_v3  ;;  %4868 = vmatprep.subr.bf16.mxu0 %v5523_v58  ;;  %v5525_v3 = vld [vmem:[#allocation9 + $0x58] sm:$0xff]  }
  0xbe   : > { %4764 = vmatprep.subr.bf16.mxu1 %v5515_v7  ;;  %v484_v7 = vpack.c.bf16 %v372_v61, %v368_v60  ;;  %v408_v60 = vld [vmem:[%s6213_s12 + $0x210] sm:$0xff] }
  0xbf   : > { %v412_v61 = vld [vmem:[%s6213_s12 + $0x230] sm:$0xff] }
  0xc0   : > { %950 = vmatmul.mubr.bf16.gmra.mrb[12].mxu1 %v530_v11  ;;  %854 = vmatmul.mubr.bf16.gmra.mrb[12].mxu0 %v482_v22  ;;  %v407_v11 = vld [vmem:[%s6213_s12 + $0x208] sm:$0xff]  ;;  %v410_v22 = vld [vmem:[%s6213_s12 + $0x220] sm:$0xff] }
  0xc1   : > { %4765 = vmatpush3.bf16.msra.mxu1 %v5516_v12  ;;  %990 = vmatprep.mubr.bf16.mxu1 %v473_v13  ;;  %v411_v12 = vld [vmem:[%s6213_s12 + $0x228] sm:$0xff]  ;;  %v5528_v13 = vld [vmem:[#allocation9 + $0x20] sm:$0xff]   ;;  %v502_v30 = vpack.c.bf16 %v410_v22, %v406_v21 }
  0xc2   : > { %4766 = vmatprep.subr.bf16.mxu1 %v5517_v14  ;;  %861 = vmatprep.mubr.bf16.mxu0 %v487_v25  ;;  %v376_v14 = vld [vmem:[%s6213_s12 + $0x110] sm:$0xff]  ;;  %v419_v25 = vld [vmem:[%s6213_s12 + $0x268] sm:$0xff] }
  0xc3   : > { %4869 = vmatpush3.bf16.msra.mxu0 %v5524_v1  ;;  %v488_v20 = vpack.c.bf16 %v380_v15, %v376_v14  ;;  %v507_v31 = vpack.c.bf16 %v419_v25, %v415_v24  ;;  %v504_v1 = vpack.c.bf16 %v412_v61, %v408_v60  ;;  %v5534_v14 = vld [vmem:[#allocation9 + $0x80] sm:$0xff]   ;;  %v424_v15 = vld [vmem:[%s6213_s12 + $0x290] sm:$0xff] }
  0xc4   : > { %4870 = vmatprep.subr.bf16.mxu0 %v5525_v3  ;;  %v5529_v3 = vld [vmem:[#allocation9 + $0x68] sm:$0xff]   ;;  %v512_v21 = vpack.c.bf16 %v428_v16, %v424_v15  ;;  %v5538_v24 = vld [vmem:[#allocation9 + $0x90] sm:$0xff]   ;;  %v5548_v60 = vld [vmem:[#allocation9 + $0x140] sm:$0xff]  }
  0xc5   : > { %4767 = vmatpush3.bf16.msra.mxu1 %v5518_v19  ;;  %v503_v19 = vpack.c.bf16 %v411_v12, %v407_v11  ;;  %v5532_v11 = vld [vmem:[#allocation9 + $0xc0] sm:$0xff]   ;;  %v5531_v12 = vld [vmem:[#allocation9 + $0x70] sm:$0xff]  }
  0xc6   : > { %4976 = vmatprep.subr.bf16.mxu1 %v5532_v11  ;;  %v432_v25 = vld [vmem:[%s6213_s12 + $0x2d0] sm:$0xff]  ;;  %v5550_v61 = vld [vmem:[#allocation9 + $0x100] sm:$0xff]   ;;  %v5557_v11 = vld [vmem:[#allocation9 + $0x158] sm:$0xff]  }
  0xc7   : > { %4871 = vmatpush3.bf16.msra.mxu0 %v5526_v5  ;;  %v416_v5 = vld [vmem:[%s6213_s12 + $0x250] sm:$0xff] }
  0xc8   : > { %991 = vmatmul.mubr.bf16.vlgmr.msra.gmra.mrb[16].mxu1 %v472_v26  ;;  %862 = vmatmul.mubr.bf16.gmra.mrb[16].mxu0 %v486_v34  ;;  %v384_v26 = vld [vmem:[%s6213_s12 + $0x150] sm:$0xff]  ;;  %v418_v34 = vld [vmem:[%s6213_s12 + $0x260] sm:$0xff] }
  0xc9   : > { %998 = vmatprep.mubr.bf16.mxu1 %v477_v27  ;;  %869 = vmatprep.mubr.bf16.mxu0 %v491_v37  ;;  %v388_v27 = vld [vmem:[%s6213_s12 + $0x170] sm:$0xff]  ;;  %v427_v37 = vld [vmem:[%s6213_s12 + $0x2a8] sm:$0xff]  ;;  %v506_v42 = vpack.c.bf16 %v418_v34, %v414_v33  ;;  %v521_v33 = vpack.c.bf16 %v445_v29, %v441_v28  ;;  %v5539_v34 = vld [vmem:[#allocation9 + $0x78] sm:$0xff]  }
  0xca   : > { %4872 = vmatprep.subr.bf16.mxu0 %v5527_v6  ;;  %v492_v32 = vpack.c.bf16 %v388_v27, %v384_v26  ;;  %v511_v43 = vpack.c.bf16 %v427_v37, %v423_v36  ;;  %v420_v6 = vld [vmem:[%s6213_s12 + $0x270] sm:$0xff]  ;;  %4977 = vmatpush3.bf16.msra.mxu1 %v5534_v14  ;;  %v5968_v27 = vmov 0.0   ;;  %v5541_v36 = vld [vmem:[#allocation9 + $0x38] sm:$0xff]   ;;  %v5544_v37 = vld [vmem:[#allocation9 + $0xa0] sm:$0xff]  }
  0xcb   : > { %4873 = vmatpush3.bf16.msra.mxu0 %v5528_v13  ;;  %v508_v9 = vpack.c.bf16 %v420_v6, %v416_v5  ;;  %v5533_v13 = vld [vmem:[#allocation9 + $0x30] sm:$0xff]   ;;  %1151 = vst [vmem:[#allocation2] sm:$0xff] %v5968_v27  ;;  %1152 = vst [vmem:[#allocation2 + $0x8] sm:$0xff] %v5968_v27  ;;  %v5560_v14 = vld [vmem:[#allocation9 + $0x120] sm:$0xff]  }
  0xcc   : > { %4874 = vmatprep.subr.bf16.mxu0 %v5529_v3  ;;  %v436_v26 = vld [vmem:[%s6213_s12 + $0x2f0] sm:$0xff]  ;;  %1153 = vst [vmem:[#allocation2 + $0x10] sm:$0x3] %v5968_v27  ;;  %1155 = vst [vmem:[#allocation2 + $0x198] sm:$0xff] %v5968_v27 }
  0xcd   : > { %1156 = vst [vmem:[#allocation2 + $0x1a0] sm:$0xff] %v5968_v27  ;;  %1157 = vst [vmem:[#allocation2 + $0x1a8] sm:$0x3] %v5968_v27  ;;  %v468_v5 = vld [vmem:[%s6213_s12 + $0x3f0] sm:$0xff] }
  0xce   : > { %1159 = vst [vmem:[#allocation2 + $0x18] sm:$0x1] %v5968_v27  ;;  %1160 = vst [vmem:[#allocation2 + $0x30] sm:$0x1] %v5968_v27 }
  0xcf   : > { %1161 = vst [vmem:[#allocation2 + $0x48] sm:$0x1] %v5968_v27  ;;  %1162 = vst [vmem:[#allocation2 + $0x60] sm:$0x1] %v5968_v27 }
  0xd0   : > { %999 = vmatmul.mubr.bf16.gmra.mrb[20].mxu1 %v476_v38  ;;  %870 = vmatmul.mubr.bf16.gmra.mrb[20].mxu0 %v490_v48  ;;  %v392_v38 = vld [vmem:[%s6213_s12 + $0x190] sm:$0xff]  ;;  %v431_v48 = vld [vmem:[%s6213_s12 + $0x2c8] sm:$0xff]  ;;  %1163 = vst [vmem:[#allocation2 + $0x78] sm:$0x1] %v5968_v27  ;;  %1164 = vst [vmem:[#allocation2 + $0x90] sm:$0x1] %v5968_v27 }
  0xd1   : > { %1006 = vmatprep.mubr.bf16.mxu1 %v481_v39  ;;  %877 = vmatprep.mubr.bf16.mxu0 %v495_v50  ;;  %v396_v39 = vld [vmem:[%s6213_s12 + $0x1b0] sm:$0xff]  ;;  %v515_v55 = vpack.c.bf16 %v435_v49, %v431_v48  ;;  %1165 = vst [vmem:[#allocation2 + $0xa8] sm:$0x1] %v5968_v27  ;;  %1166 = vst [vmem:[#allocation2 + $0xc0] sm:$0x1] %v5968_v27  ;;  %v5969_v48 = vmov 0.0|0.0  }
  0xd2   : > { %v496_v44 = vpack.c.bf16 %v396_v39, %v392_v38  ;;  %v400_v50 = vld [vmem:[%s6213_s12 + $0x1d0] sm:$0xff]  ;;  %1167 = vst [vmem:[#allocation2 + $0xd8] sm:$0x1] %v5968_v27  ;;  %1168 = vst [vmem:[#allocation2 + $0xf0] sm:$0x1] %v5968_v27 }
  0xd3   : > { %v500_v56 = vpack.c.bf16 %v404_v51, %v400_v50  ;;  %1169 = vst [vmem:[#allocation2 + $0x108] sm:$0x1] %v5968_v27  ;;  %1170 = vst [vmem:[#allocation2 + $0x120] sm:$0x1] %v5968_v27  ;;  %v1287_v38 = vld [vmem:[#allocation2 + $0x1] sm:$0xff]  ;;  %v1288_v39 = vld [vmem:[#allocation2 + $0x9] sm:$0xff] }
  0xd4   : > { %1171 = vst [vmem:[#allocation2 + $0x138] sm:$0x1] %v5968_v27  ;;  %1172 = vst [vmem:[#allocation2 + $0x150] sm:$0x1] %v5968_v27  ;;  %v5547_v50 = vld [vmem:[#allocation9 + $0xf0] sm:$0xff]  }
  0xd5   : > { %1173 = vst [vmem:[#allocation2 + $0x168] sm:$0x1] %v5968_v27  ;;  %1174 = vst [vmem:[#allocation2 + $0x180] sm:$0x1] %v5968_v27  ;;  %v5549_v51 = vld [vmem:[#allocation9 + $0xb0] sm:$0xff]  }
  0xd6   : > { %1175 = vst [vmem:[#allocation2 + $0x29] sm:$0x1] %v5968_v27  ;;  %1176 = vst [vmem:[#allocation2 + $0x41] sm:$0x1] %v5968_v27 }
  0xd7   : > { %1177 = vst [vmem:[#allocation2 + $0x59] sm:$0x1] %v5968_v27  ;;  %1178 = vst [vmem:[#allocation2 + $0x71] sm:$0x1] %v5968_v27 }
  0xd8   : > { %1007 = vmatmul.mubr.bf16.gmra.mrb[24].mxu1 %v480_v53  ;;  %878 = vmatmul.mubr.bf16.gmra.mrb[24].mxu0 %v494_v2  ;;  %v413_v53 = vld [vmem:[%s6213_s12 + $0x238] sm:$0xff]  ;;  %v509_v2 = vpack.c.bf16 %v421_v63, %v417_v62  ;;  %1179 = vst [vmem:[#allocation2 + $0x89] sm:$0x1] %v5968_v27  ;;  %1180 = vst [vmem:[#allocation2 + $0xa1] sm:$0x1] %v5968_v27  ;;  %v456_v62 = vld [vmem:[%s6213_s12 + $0x390] sm:$0xff] }
  0xd9   : > { %1014 = vmatprep.mubr.bf16.mxu1 %v485_v57  ;;  %885 = vmatprep.mubr.bf16.mxu0 %v499_v4  ;;  %v430_v57 = vld [vmem:[%s6213_s12 + $0x2c0] sm:$0xff]  ;;  %v505_v58 = vpack.c.bf16 %v413_v53, %v409_v52  ;;  %v5530_v4 = vld [vmem:[#allocation9 + $0x28] sm:$0xff]   ;;  %1181 = vst [vmem:[#allocation2 + $0xb9] sm:$0x1] %v5968_v27  ;;  %1182 = vst [vmem:[#allocation2 + $0xd1] sm:$0x1] %v5968_v27 }
  0xda   : > { %v514_v0 = vpack.c.bf16 %v434_v59, %v430_v57  ;;  %4875 = vmatpush3.bf16.msra.mxu0 %v5530_v4  ;;  %1183 = vst [vmem:[#allocation2 + $0xe9] sm:$0x1] %v5968_v27  ;;  %1184 = vst [vmem:[#allocation2 + $0x101] sm:$0x1] %v5968_v27  ;;  %v448_v52 = vld [vmem:[%s6213_s12 + $0x350] sm:$0xff]  ;;  %v5552_v57 = vld [vmem:[#allocation9 + $0xb8] sm:$0xff]  }
  0xdb   : > { %4876 = vmatprep.subr.bf16.mxu0 %v5531_v12  ;;  %1185 = vst [vmem:[#allocation2 + $0x119] sm:$0x1] %v5968_v27  ;;  %1186 = vst [vmem:[#allocation2 + $0x131] sm:$0x1] %v5968_v27  ;;  %v452_v53 = vld [vmem:[%s6213_s12 + $0x370] sm:$0xff]  ;;  %v5558_v12 = vld [vmem:[#allocation9 + $0x118] sm:$0xff]  }
  0xdc   : > { %1187 = vst [vmem:[#allocation2 + $0x149] sm:$0x1] %v5968_v27  ;;  %1188 = vst [vmem:[#allocation2 + $0x161] sm:$0x1] %v5968_v27  ;;  %v460_v63 = vld [vmem:[%s6213_s12 + $0x3b0] sm:$0xff] }
  0xdd   : > { %1189 = vst [vmem:[#allocation2 + $0x179] sm:$0x1] %v5968_v27  ;;  %1190 = vst [vmem:[#allocation2 + $0x191] sm:$0x1] %v5968_v27  ;;  %v464_v4 = vld [vmem:[%s6213_s12 + $0x3d0] sm:$0xff] }
  0xde   : > { %4877 = vmatpush3.bf16.msra.mxu0 %v5533_v13  ;;  %v532_v6 = vpack.c.bf16 %v468_v5, %v464_v4  ;;  %v5559_v13 = vld [vmem:[#allocation9 + $0x160] sm:$0xff]  }
  0xdf   : > { %4878 = vmatprep.subr.bf16.mxu0 %v5539_v34 }
  0xe0   : > { %1015 = vmatmul.mubr.bf16.gmra.mrb[28].mxu1 %v484_v7  ;;  %886 = vmatmul.mubr.bf16.gmra.mrb[28].mxu0 %v498_v18  ;;  %v425_v7 = vld [vmem:[%s6213_s12 + $0x298] sm:$0xff] }
  0xe1   : > { %1022 = vmatprep.mubr.bf16.mxu1 %v489_v10  ;;  %893 = vmatprep.mubr.bf16.mxu0 %v503_v19  ;;  %v513_v10 = vpack.c.bf16 %v429_v8, %v425_v7  ;;  %v437_v18 = vld [vmem:[%s6213_s12 + $0x2f8] sm:$0xff]  ;;  %v5535_v19 = vld [vmem:[#allocation9 + $0xc8] sm:$0xff]  }
  0xe2   : > { %4978 = vmatprep.subr.bf16.mxu1 %v5535_v19  ;;  %v517_v22 = vpack.c.bf16 %v437_v18, %v433_v17  ;;  %4879 = vmatpush3.bf16.msra.mxu0 %v5541_v36  ;;  %v5553_v7 = vld [vmem:[#allocation9 + $0x148] sm:$0xff]  }
  0xe3   : > { %5088 = vmatprep.subr.bf16.mxu0 %v5548_v60  ;;  %v5554_v8 = vld [vmem:[#allocation9 + $0x108] sm:$0xff]  }
  0xe4   : > { %v5561_v19 = vld [vmem:[#allocation9 + $0x168] sm:$0xff]  }
  0xe8   : > { %1023 = vmatmul.mubr.bf16.gmra.mrb[32].mxu1 %v488_v20  ;;  %894 = vmatmul.mubr.bf16.gmra.mrb[32].mxu0 %v502_v30  ;;  %v5536_v20 = vld [vmem:[#allocation9 + $0x88] sm:$0xff]   ;;  %v5540_v30 = vld [vmem:[#allocation9 + $0xd8] sm:$0xff]  }
  0xe9   : > { %1030 = vmatprep.mubr.bf16.mxu1 %v493_v23  ;;  %901 = vmatprep.mubr.bf16.mxu0 %v507_v31  ;;  %v5537_v23 = vld [vmem:[#allocation9 + $0xd0] sm:$0xff]   ;;  %v5542_v31 = vld [vmem:[#allocation9 + $0x98] sm:$0xff]  }
  0xea   : > { %4979 = vmatpush3.bf16.msra.mxu1 %v5536_v20  ;;  %v5562_v20 = vld [vmem:[#allocation9 + $0x128] sm:$0xff]  }
  0xeb   : > { %4980 = vmatprep.subr.bf16.mxu1 %v5537_v23 }
  0xee   : > { %4981 = vmatpush3.bf16.msra.mxu1 %v5538_v24 }
  0xef   : > { %4982 = vmatprep.subr.bf16.mxu1 %v5540_v30 }
  0xf0   : > { %1031 = vmatmul.mubr.bf16.gmra.mrb[36].mxu1 %v492_v32  ;;  %902 = vmatmul.mubr.bf16.gmra.mrb[36].mxu0 %v506_v42  ;;  %v516_v32 = vpack.c.bf16 %v436_v26, %v432_v25  ;;  %v1319_v42 = vpack.c.bf16 %v1288_v39, %v1287_v38 }
  0xf1   : > { %1038 = vmatprep.mubr.bf16.mxu1 %v497_v35  ;;  %909 = vmatprep.mubr.bf16.mxu0 %v511_v43  ;;  %v5543_v35 = vld [vmem:[#allocation9 + $0xe0] sm:$0xff]   ;;  %v449_v43 = vld [vmem:[%s6213_s12 + $0x358] sm:$0xff] }
  0xf2   : > { %4983 = vmatpush3.bf16.msra.mxu1 %v5542_v31 }
  0xf3   : > { %4984 = vmatprep.subr.bf16.mxu1 %v5543_v35 }
  0xf6   : > { %4985 = vmatpush3.bf16.msra.mxu1 %v5544_v37 }
  0xf7   : > { %4986 = vmatprep.subr.bf16.mxu1 %v5545_v45  ;;  %v5563_v45 = vld [vmem:[#allocation9 + $0x170] sm:$0xff]  }
  0xf8   : > { %1039 = vmatmul.mubr.bf16.gmra.mrb[40].mxu1 %v496_v44  ;;  %910 = vmatmul.mubr.bf16.gmra.mrb[40].mxu0 %v510_v54  ;;  %v453_v44 = vld [vmem:[%s6213_s12 + $0x378] sm:$0xff] }
  0xf9   : > { %1046 = vmatprep.mubr.bf16.mxu1 %v501_v47  ;;  %917 = vmatprep.mubr.bf16.mxu0 %v515_v55  ;;  %v520_v47 = vpack.c.bf16 %v444_v41, %v440_v40  ;;  %v525_v49 = vpack.c.bf16 %v453_v44, %v449_v43  ;;  %v457_v54 = vld [vmem:[%s6213_s12 + $0x398] sm:$0xff] }
  0xfa   : > { %4987 = vmatpush3.bf16.msra.mxu1 %v5546_v46  ;;  %v461_v55 = vld [vmem:[%s6213_s12 + $0x3b8] sm:$0xff]  ;;  %v5564_v46 = vld [vmem:[#allocation9 + $0x130] sm:$0xff]  }
  0xfb   : > { %4988 = vmatprep.subr.bf16.mxu1 %v5547_v50  ;;  %v529_v59 = vpack.c.bf16 %v461_v55, %v457_v54 }
  0xfe   : > { %4989 = vmatpush3.bf16.msra.mxu1 %v5549_v51 }
 0x100   : > { %1047 = vmatmul.mubr.bf16.gmra.mrb[44].mxu1 %v500_v56  ;;  %918 = vmatmul.mubr.bf16.gmra.mrb[44].mxu0 %v514_v0  ;;  %v5551_v56 = vld [vmem:[#allocation9 + $0xf8] sm:$0xff]  }
 0x101   : > { %1054 = vmatprep.mubr.bf16.mxu1 %v505_v58  ;;  %2559 = vmatprep.mubr.bf16.mxu0 %v1319_v42  ;;  %v524_v58 = vpack.c.bf16 %v452_v53, %v448_v52  ;;  %v465_v0 = vld [vmem:[%s6213_s12 + $0x3d8] sm:$0xff] }
 0x102   : > { %4990 = vmatprep.subr.bf16.mxu1 %v5551_v56 }
 0x103   : > { %4991 = vmatpush3.bf16.msra.mxu1 %v5552_v57 }
 0x108   : > { %1055 = vmatmul.mubr.bf16.gmra.mrb[48].mxu1 %v504_v1  ;;  %2560 = vmatmul.mubr.bf16.vlgmr.msra.gmra.mrb[48].mxu0 %v5969_v48  ;;  %v469_v1 = vld [vmem:[%s6213_s12 + $0x3f8] sm:$0xff]  ;;  %v5565_v48 = vld [vmem:[#allocation9 + $0x1c0] sm:$0xff]  }
 0x109   : > { %1062 = vmatprep.mubr.bf16.mxu1 %v509_v2  ;;  %5089 = vmatpush3.bf16.msra.mxu0 %v5550_v61  ;;  %v528_v2 = vpack.c.bf16 %v460_v63, %v456_v62  ;;  %v533_v3 = vpack.c.bf16 %v469_v1, %v465_v0  ;;  %v6378_v0 = vld [vmem:[%s7360_s2] ss:$0 sm:$0xff] }
 0x10a   : > { %5090 = vmatprep.subr.bf16.mxu0 %v5553_v7  ;;  %5200 = vmatprep.subr.bf16.mxu1 %v5565_v48 }
 0x10d   : > { %5091 = vmatpush3.bf16.msra.mxu0 %v5554_v8 }
 0x110   : > { %1063 = vmatmul.mubr.bf16.gmra.mrb[52].mxu1 %v508_v9  ;;  %v5555_v9 = vld [vmem:[#allocation9 + $0x150] sm:$0xff]  }
 0x111   : > { %1070 = vmatprep.mubr.bf16.mxu1 %v513_v10  ;;  %v5556_v10 = vld [vmem:[#allocation9 + $0x110] sm:$0xff]   ;;  %5092 = vmatprep.subr.bf16.mxu0 %v5555_v9 }
 0x112   : > { %5093 = vmatpush3.bf16.msra.mxu0 %v5556_v10  ;;  %v5569_v10 = vld [vmem:[#allocation9 + $0x178] sm:$0xff]  }
 0x113   : > { %5094 = vmatprep.subr.bf16.mxu0 %v5557_v11  ;;  %v5571_v11 = vld [vmem:[#allocation9 + $0x138] sm:$0xff]  }
 0x116   : > { %5095 = vmatpush3.bf16.msra.mxu0 %v5558_v12 }
 0x117   : > { %5096 = vmatprep.subr.bf16.mxu0 %v5559_v13 }
 0x118   : > { %1071 = vmatmul.mubr.bf16.gmra.mrb[56].mxu1 %v512_v21 }
 0x119   : > { %1078 = vmatprep.mubr.bf16.mxu1 %v517_v22 }
 0x11a   : > { %5097 = vmatpush3.bf16.msra.mxu0 %v5560_v14 }
 0x11b   : > { %5098 = vmatprep.subr.bf16.mxu0 %v5561_v19 }
 0x11e   : > { %5099 = vmatpush3.bf16.msra.mxu0 %v5562_v20 }
 0x11f   : > { %5100 = vmatprep.subr.bf16.mxu0 %v5563_v45 }
 0x120   : > { %1079 = vmatmul.mubr.bf16.gmra.mrb[60].mxu1 %v516_v32 }
 0x121   : > { %1086 = vmatprep.mubr.bf16.mxu1 %v521_v33 }
 0x122   : > { %5101 = vmatpush3.bf16.msra.mxu0 %v5564_v46  ;;  %v1352_v46 = vld [vmem:[#allocation2 + $0xa] sm:$0xff] }
 0x123   : > { %5102 = vmatprep.subr.bf16.mxu0 %v5569_v10 }
 0x126   : > { %5103 = vmatpush3.bf16.msra.mxu0 %v5571_v11 }
 0x128   : > { %1087 = vmatmul.mubr.bf16.gmra.mrb[64].mxu1 %v520_v47 }
 0x129   : > { %1094 = vmatprep.mubr.bf16.mxu1 %v525_v49 }
 0x130   : > { %1095 = vmatmul.mubr.bf16.gmra.mrb[68].mxu1 %v524_v58 }
 0x131   : > { %1102 = vmatprep.mubr.bf16.mxu1 %v529_v59 }
 0x138   : > { %1103 = vmatmul.mubr.bf16.gmra.mrb[72].mxu1 %v528_v2 }
 0x139   : > { %1110 = vmatprep.mubr.bf16.mxu1 %v533_v3 }
 0x140   : > { %1111 = vmatmul.mubr.bf16.gmra.mrb[76].mxu1 %v532_v6 }
 0x17b   : > { %v4728_v15 = vpop.f32.mrb[0].mxu1  ;;  %v4656_v23 = vpop.f32.mrb[0].mxu0 }
 0x17c   : > { %v4729_v16 = vpop.f32.mrb[1].mxu1  ;;  %v4657_v24 = vpop.f32.mrb[1].mxu0 }
 0x17d   : > { %v6355_v17 = vadd.f32 %v4729_v16, %v4728_v15  ;;  %v4731_v18 = vpop.f32.mrb[2].mxu1  ;;  %v4658_v25 = vadd.f32 %v4657_v24, %v4656_v23  ;;  %v4659_v26 = vpop.f32.mrb[2].mxu0 }
 0x17e   : > { %v4732_v21 = vpop.f32.mrb[3].mxu1  ;;  %v4660_v28 = vpop.f32.mrb[3].mxu0 }
 0x17f   : > { %v6357_v22 = vadd.f32 %v4732_v21, %v4731_v18  ;;  %v4661_v30 = vadd.f32 %v4660_v28, %v4659_v26  ;;  %v832_v4 = vadd.f32 %v4658_v25, %v6378_v0 }
 0x181   : > { %v835_v14 = vadd.f32 %v4661_v30, %v6378_v0 }
 0x183   : > { %v4734_v27 = vpop.f32.mrb[4].mxu1  ;;  %v4662_v35 = vpop.f32.mrb[4].mxu0 }
 0x184   : > { %v4735_v29 = vpop.f32.mrb[5].mxu1  ;;  %v4663_v36 = vpop.f32.mrb[5].mxu0 }
 0x185   : > { %v6359_v31 = vadd.f32 %v4735_v29, %v4734_v27  ;;  %v4737_v32 = vpop.f32.mrb[6].mxu1  ;;  %v4664_v37 = vadd.f32 %v4663_v36, %v4662_v35  ;;  %v4665_v38 = vpop.f32.mrb[6].mxu0 }
 0x186   : > { %v4738_v33 = vpop.f32.mrb[7].mxu1  ;;  %v4666_v40 = vpop.f32.mrb[7].mxu0 }
 0x187   : > { %v6361_v34 = vadd.f32 %v4738_v33, %v4737_v32  ;;  %v4667_v42 = vadd.f32 %v4666_v40, %v4665_v38  ;;  %v840_v26 = vadd.f32 %v4664_v37, %v6378_v0  ;;  %v1351_v37 = vld [vmem:[#allocation2 + $0x2] sm:$0xff] }
 0x189   : > { %v843_v38 = vadd.f32 %v4667_v42, %v6378_v0 }
 0x18b   : > { %v4740_v39 = vpop.f32.mrb[8].mxu1  ;;  %v4668_v50 = vpop.f32.mrb[8].mxu0 }
 0x18c   : > { %v4741_v41 = vpop.f32.mrb[9].mxu1  ;;  %v4669_v51 = vpop.f32.mrb[9].mxu0 }
 0x18d   : > { %v6363_v43 = vadd.f32 %v4741_v41, %v4740_v39  ;;  %v4743_v44 = vpop.f32.mrb[10].mxu1  ;;  %v6367_v52 = vadd.f32 %v4669_v51, %v4668_v50  ;;  %v4671_v53 = vpop.f32.mrb[10].mxu0  ;;  %v6392_v41 = vld [vmem:[#allocation9 + $0x200] sm:$0xff]  }
 0x18e   : > { %v4744_v47 = vpop.f32.mrb[11].mxu1  ;;  %v4672_v55 = vpop.f32.mrb[11].mxu0  ;;  %5336 = vmatprep.subr.bf16.mxu0 %v6392_v41 }
 0x18f   : > { %v6365_v49 = vadd.f32 %v4744_v47, %v4743_v44  ;;  %v6369_v57 = vadd.f32 %v4672_v55, %v4671_v53  ;;  %v848_v42 = vadd.f32 %v6367_v52, %v6378_v0 }
 0x191   : > { %v851_v10 = vadd.f32 %v6369_v57, %v6378_v0 }
 0x193   : > { %v4746_v54 = vpop.f32.mrb[12].mxu1  ;;  %v4674_v62 = vpop.f32.mrb[12].mxu0 }
 0x194   : > { %v4747_v56 = vpop.f32.mrb[13].mxu1  ;;  %v4675_v63 = vpop.f32.mrb[13].mxu0 }
 0x195   : > { %v6371_v58 = vadd.f32 %v4747_v56, %v4746_v54  ;;  %v4749_v59 = vpop.f32.mrb[14].mxu1  ;;  %v6380_v1 = vadd.f32 %v4675_v63, %v4674_v62  ;;  %v4677_v2 = vpop.f32.mrb[14].mxu0 }
 0x196   : > { %v4750_v60 = vpop.f32.mrb[15].mxu1  ;;  %v4678_v5 = vpop.f32.mrb[15].mxu0 }
 0x197   : > { %v6373_v61 = vadd.f32 %v4750_v60, %v4749_v59  ;;  %v6383_v7 = vadd.f32 %v4678_v5, %v4677_v2  ;;  %v1383_v60 = vpack.c.bf16 %v1352_v46, %v1351_v37  ;;  %v5566_v5 = vld [vmem:[#allocation9 + $0x180] sm:$0xff]   ;;  %v856_v57 = vadd.f32 %v6380_v1, %v6378_v0 }
 0x199   : > { %v859_v37 = vadd.f32 %v6383_v7, %v6378_v0 }
 0x19b   : > { %v4768_v3 = vpop.f32.mrb[16].mxu1  ;;  %v4680_v16 = vpop.f32.mrb[16].mxu0 }
 0x19c   : > { %v4769_v6 = vpop.f32.mrb[17].mxu1  ;;  %v4681_v20 = vpop.f32.mrb[17].mxu0 }
 0x19d   : > { %v4770_v8 = vadd.f32 %v4769_v6, %v4768_v3  ;;  %v4771_v9 = vpop.f32.mrb[18].mxu1  ;;  %v6386_v21 = vadd.f32 %v4681_v20, %v4680_v16  ;;  %v4683_v23 = vpop.f32.mrb[18].mxu0 }
 0x19e   : > { %v4772_v12 = vpop.f32.mrb[19].mxu1  ;;  %v4684_v27 = vpop.f32.mrb[19].mxu0 }
 0x19f   : > { %v993_v13 = vadd.f32 %v4770_v8, %v832_v4  ;;  %v4773_v15 = vadd.f32 %v4772_v12, %v4771_v9  ;;  %v6389_v29 = vadd.f32 %v4684_v27, %v4683_v23  ;;  %v5567_v8 = vld [vmem:[#allocation9 + $0x1c8] sm:$0xff]   ;;  %v864_v7 = vadd.f32 %v6386_v21, %v6378_v0 }
 0x1a0   : > { %v5577_v21 = vld [vmem:[#allocation9 + $0x1e8] sm:$0xff]  }
 0x1a1   : > { %v1119_v18 = vmax.f32 %v993_v13, 0.0  ;;  %v996_v19 = vadd.f32 %v4773_v15, %v835_v14  ;;  %v5568_v15 = vld [vmem:[#allocation9 + $0x188] sm:$0xff]  }
 0x1a3   : > { %1191 = vst [vmem:[#allocation2 + $0x19] sm:$0xff] %v1119_v18  ;;  %v1120_v24 = vmax.f32 %v996_v19, 0.0  ;;  %v4774_v25 = vpop.f32.mrb[20].mxu1  ;;  %v4686_v40 = vpop.f32.mrb[20].mxu0  ;;  %v5570_v19 = vld [vmem:[#allocation9 + $0x1d0] sm:$0xff]  }
 0x1a4   : > { %v4775_v28 = vpop.f32.mrb[21].mxu1  ;;  %v4687_v47 = vpop.f32.mrb[21].mxu0 }
 0x1a5   : > { %1192 = vst [vmem:[#allocation2 + $0x21] sm:$0xff] %v1120_v24  ;;  %v4776_v30 = vadd.f32 %v4775_v28, %v4774_v25  ;;  %v4777_v32 = vpop.f32.mrb[22].mxu1  ;;  %v1320_v33 = vpack.c.bf16 %v1120_v24, %v1119_v18  ;;  %v6394_v48 = vadd.f32 %v4687_v47, %v4686_v40  ;;  %v4689_v50 = vpop.f32.mrb[22].mxu0 }
 0x1a6   : > { %v4778_v35 = vpop.f32.mrb[23].mxu1  ;;  %v4690_v54 = vpop.f32.mrb[23].mxu0 }
 0x1a7   : > { %v1001_v36 = vadd.f32 %v4776_v30, %v840_v26  ;;  %v4779_v39 = vadd.f32 %v4778_v35, %v4777_v32  ;;  %2567 = vmatprep.mubr.bf16.mxu0 %v1320_v33  ;;  %v6399_v62 = vadd.f32 %v4690_v54, %v4689_v50 }
 0x1a9   : > { %v1121_v44 = vmax.f32 %v1001_v36, 0.0  ;;  %v1004_v45 = vadd.f32 %v4779_v39, %v843_v38  ;;  %v5572_v39 = vld [vmem:[#allocation9 + $0x190] sm:$0xff]  }
 0x1aa   : > { %v1415_v56 = vld [vmem:[#allocation2 + $0x18] sm:$0xff] }
 0x1ab   : > { %1193 = vst [vmem:[#allocation2 + $0x31] sm:$0xff] %v1121_v44  ;;  %v1122_v51 = vmax.f32 %v1004_v45, 0.0  ;;  %v4780_v53 = vpop.f32.mrb[24].mxu1  ;;  %v4692_v11 = vpop.f32.mrb[24].mxu0  ;;  %v5573_v45 = vld [vmem:[#allocation9 + $0x1d8] sm:$0xff]  }
 0x1ac   : > { %v4781_v55 = vpop.f32.mrb[25].mxu1  ;;  %v1416_v59 = vld [vmem:[#allocation2 + $0x20] sm:$0xff]  ;;  %v4693_v14 = vpop.f32.mrb[25].mxu0 }
 0x1ad   : > { %1194 = vst [vmem:[#allocation2 + $0x39] sm:$0xff] %v1122_v51  ;;  %v4782_v63 = vadd.f32 %v4781_v55, %v4780_v53  ;;  %v4783_v2 = vpop.f32.mrb[26].mxu1  ;;  %v1447_v3 = vpack.c.bf16 %v1416_v59, %v1415_v56  ;;  %v1321_v4 = vpack.c.bf16 %v1122_v51, %v1121_v44  ;;  %v6403_v16 = vadd.f32 %v4693_v14, %v4692_v11  ;;  %v4695_v18 = vpop.f32.mrb[26].mxu0  ;;  %v1353_v24 = vld [vmem:[#allocation2 + $0x1a] sm:$0xff]  ;;  %v1354_v25 = vld [vmem:[#allocation2 + $0x22] sm:$0xff]  ;;  %v5575_v56 = vld [vmem:[#allocation9 + $0x1e0] sm:$0xff]  }
 0x1ae   : > { %v4784_v6 = vpop.f32.mrb[27].mxu1  ;;  %v4696_v26 = vpop.f32.mrb[27].mxu0  ;;  %v1384_v44 = vpack.c.bf16 %v1354_v25, %v1353_v24  ;;  %v5578_v25 = vld [vmem:[#allocation9 + $0x1a8] sm:$0xff]  }
 0x1af   : > { %v1009_v9 = vadd.f32 %v4782_v63, %v848_v42  ;;  %v4785_v52 = vadd.f32 %v4784_v6, %v4783_v2  ;;  %2720 = vmatprep.mubr.bf16.mxu1 %v1447_v3  ;;  %2568 = vmatmul.mubr.bf16.gmra.mrb[52].mxu0 %v1447_v3  ;;  %v6407_v32 = vadd.f32 %v4696_v26, %v4695_v18  ;;  %v5574_v42 = vld [vmem:[#allocation9 + $0x198] sm:$0xff]  }
 0x1b0   : > { %2721 = vmatmul.mubr.bf16.vlgmr.msra.gmra.mrb[80].mxu1 %v1383_v60  ;;  %2575 = vmatprep.mubr.bf16.mxu0 %v1321_v4 }
 0x1b1   : > { %v1123_v12 = vmax.f32 %v1009_v9, 0.0  ;;  %v1012_v13 = vadd.f32 %v4785_v52, %v851_v10  ;;  %5201 = vmatpush3.bf16.msra.mxu1 %v5566_v5 }
 0x1b2   : > { %5202 = vmatprep.subr.bf16.mxu1 %v5567_v8  ;;  %v1417_v28 = vld [vmem:[#allocation2 + $0x30] sm:$0xff] }
 0x1b3   : > { %1195 = vst [vmem:[#allocation2 + $0x49] sm:$0xff] %v1123_v12  ;;  %v1124_v20 = vmax.f32 %v1012_v13, 0.0  ;;  %v4786_v23 = vpop.f32.mrb[28].mxu1  ;;  %v4698_v47 = vpop.f32.mrb[28].mxu0 }
 0x1b4   : > { %v4787_v27 = vpop.f32.mrb[29].mxu1  ;;  %v1418_v30 = vld [vmem:[#allocation2 + $0x38] sm:$0xff]  ;;  %v4699_v53 = vpop.f32.mrb[29].mxu0 }
 0x1b5   : > { %1196 = vst [vmem:[#allocation2 + $0x51] sm:$0xff] %v1124_v20  ;;  %v4788_v33 = vadd.f32 %v4787_v27, %v4786_v23  ;;  %v4789_v35 = vpop.f32.mrb[30].mxu1  ;;  %v1448_v36 = vpack.c.bf16 %v1418_v30, %v1417_v28  ;;  %v1322_v38 = vpack.c.bf16 %v1124_v20, %v1123_v12  ;;  %5203 = vmatpush3.bf16.msra.mxu1 %v5568_v15  ;;  %v4701_v55 = vpop.f32.mrb[30].mxu0  ;;  %v1355_v63 = vld [vmem:[#allocation2 + $0x32] sm:$0xff]  ;;  %v1356_v2 = vld [vmem:[#allocation2 + $0x3a] sm:$0xff] }
 0x1b6   : > { %v4790_v40 = vpop.f32.mrb[31].mxu1  ;;  %5204 = vmatprep.subr.bf16.mxu1 %v5570_v19  ;;  %v6411_v54 = vadd.f32 %v4699_v53, %v4698_v47  ;;  %v4702_v3 = vpop.f32.mrb[31].mxu0  ;;  %v5576_v12 = vld [vmem:[#allocation9 + $0x1a0] sm:$0xff]   ;;  %v6417_v14 = vpack.c.bf16 %v1356_v2, %v1355_v63  ;;  %v867_v15 = vadd.f32 %v6389_v29, %v6378_v0  ;;  %v5579_v28 = vld [vmem:[#allocation9 + $0x1f0] sm:$0xff]   ;;  %v872_v30 = vadd.f32 %v6394_v48, %v6378_v0  ;;  %v5582_v48 = vld [vmem:[#allocation9 + $0x1f8] sm:$0xff]  }
 0x1b7   : > { %v1017_v1 = vadd.f32 %v4788_v33, %v856_v57  ;;  %v4791_v46 = vadd.f32 %v4790_v40, %v4789_v35  ;;  %2728 = vmatprep.mubr.bf16.mxu1 %v1448_v36  ;;  %2576 = vmatmul.mubr.bf16.gmra.mrb[56].mxu0 %v1448_v36  ;;  %v6415_v8 = vadd.f32 %v4702_v3, %v4701_v55  ;;  %v5583_v2 = vld [vmem:[#allocation9 + $0x1b8] sm:$0xff]  }
 0x1b8   : > { %2729 = vmatmul.mubr.bf16.gmra.mrb[84].mxu1 %v1384_v44  ;;  %2583 = vmatprep.mubr.bf16.mxu0 %v1322_v38 }
 0x1b9   : > { %v1125_v50 = vmax.f32 %v1017_v1, 0.0  ;;  %v1020_v51 = vadd.f32 %v4791_v46, %v859_v37  ;;  %5205 = vmatpush3.bf16.msra.mxu1 %v5572_v39 }
 0x1ba   : > { %5206 = vmatprep.subr.bf16.mxu1 %v5573_v45  ;;  %v1419_v5 = vld [vmem:[#allocation2 + $0x48] sm:$0xff] }
 0x1bb   : > { %1197 = vst [vmem:[#allocation2 + $0x61] sm:$0xff] %v1125_v50  ;;  %v1126_v59 = vmax.f32 %v1020_v51, 0.0  ;;  %v4792_v60 = vpop.f32.mrb[32].mxu1  ;;  %v4704_v20 = vpop.f32.mrb[32].mxu0 }
 0x1bc   : > { %v4793_v4 = vpop.f32.mrb[33].mxu1  ;;  %v1420_v6 = vld [vmem:[#allocation2 + $0x50] sm:$0xff]  ;;  %v4705_v24 = vpop.f32.mrb[33].mxu0 }
 0x1bd   : > { %1198 = vst [vmem:[#allocation2 + $0x69] sm:$0xff] %v1126_v59  ;;  %v4794_v9 = vadd.f32 %v4793_v4, %v4792_v60  ;;  %v4795_v10 = vpop.f32.mrb[34].mxu1  ;;  %v1449_v52 = vpack.c.bf16 %v1420_v6, %v1419_v5  ;;  %v1323_v11 = vpack.c.bf16 %v1126_v59, %v1125_v50  ;;  %5207 = vmatpush3.bf16.msra.mxu1 %v5574_v42  ;;  %v4707_v27 = vpop.f32.mrb[34].mxu0  ;;  %v1357_v35 = vld [vmem:[#allocation2 + $0x4a] sm:$0xff]  ;;  %v1358_v36 = vld [vmem:[#allocation2 + $0x52] sm:$0xff]  ;;  %v5581_v50 = vld [vmem:[#allocation9 + $0x1b0] sm:$0xff]  }
 0x1be   : > { %v4796_v13 = vpop.f32.mrb[35].mxu1  ;;  %5208 = vmatprep.subr.bf16.mxu1 %v5575_v56  ;;  %v6422_v26 = vadd.f32 %v4705_v24, %v4704_v20  ;;  %v4708_v38 = vpop.f32.mrb[35].mxu0  ;;  %v6428_v53 = vpack.c.bf16 %v1358_v36, %v1357_v35  ;;  %v875_v42 = vadd.f32 %v6399_v62, %v6378_v0  ;;  %v880_v62 = vadd.f32 %v6403_v16, %v6378_v0 }
 0x1bf   : > { %v1025_v18 = vadd.f32 %v4794_v9, %v864_v7  ;;  %v4797_v19 = vadd.f32 %v4796_v13, %v4795_v10  ;;  %2736 = vmatprep.mubr.bf16.mxu1 %v1449_v52  ;;  %2584 = vmatmul.mubr.bf16.gmra.mrb[60].mxu0 %v1449_v52  ;;  %v6426_v45 = vadd.f32 %v4708_v38, %v4707_v27 }
 0x1c0   : > { %2737 = vmatmul.mubr.bf16.gmra.mrb[88].mxu1 %v6417_v14  ;;  %2591 = vmatprep.mubr.bf16.mxu0 %v1323_v11  ;;  %v883_v16 = vadd.f32 %v6407_v32, %v6378_v0  ;;  %v888_v38 = vadd.f32 %v6411_v54, %v6378_v0  ;;  %v891_v54 = vadd.f32 %v6415_v8, %v6378_v0 }
 0x1c1   : > { %v1127_v23 = vmax.f32 %v1025_v18, 0.0  ;;  %v1028_v57 = vadd.f32 %v4797_v19, %v867_v15  ;;  %5209 = vmatpush3.bf16.msra.mxu1 %v5576_v12  ;;  %v896_v8 = vadd.f32 %v6422_v26, %v6378_v0  ;;  %v899_v26 = vadd.f32 %v6426_v45, %v6378_v0 }
 0x1c2   : > { %5210 = vmatprep.subr.bf16.mxu1 %v5577_v21  ;;  %v1421_v40 = vld [vmem:[#allocation2 + $0x60] sm:$0xff] }
 0x1c3   : > { %1199 = vst [vmem:[#allocation2 + $0x79] sm:$0xff] %v1127_v23  ;;  %v1128_v29 = vmax.f32 %v1028_v57, 0.0  ;;  %v4798_v33 = vpop.f32.mrb[36].mxu1  ;;  %v4710_v59 = vpop.f32.mrb[36].mxu0 }
 0x1c4   : > { %v4799_v39 = vpop.f32.mrb[37].mxu1  ;;  %v1422_v44 = vld [vmem:[#allocation2 + $0x68] sm:$0xff]  ;;  %v4711_v63 = vpop.f32.mrb[37].mxu0 }
 0x1c5   : > { %1200 = vst [vmem:[#allocation2 + $0x81] sm:$0xff] %v1128_v29  ;;  %v4800_v1 = vadd.f32 %v4799_v39, %v4798_v33  ;;  %v4801_v37 = vpop.f32.mrb[38].mxu1  ;;  %v1450_v46 = vpack.c.bf16 %v1422_v44, %v1421_v40  ;;  %v1324_v47 = vpack.c.bf16 %v1128_v29, %v1127_v23  ;;  %5211 = vmatpush3.bf16.msra.mxu1 %v5578_v25  ;;  %v4713_v4 = vpop.f32.mrb[38].mxu0  ;;  %v1359_v9 = vld [vmem:[#allocation2 + $0x62] sm:$0xff]  ;;  %v1360_v10 = vld [vmem:[#allocation2 + $0x6a] sm:$0xff] }
 0x1c6   : > { %v4802_v51 = vpop.f32.mrb[39].mxu1  ;;  %5212 = vmatprep.subr.bf16.mxu1 %v5579_v28  ;;  %v6433_v3 = vadd.f32 %v4711_v63, %v4710_v59  ;;  %v4714_v52 = vpop.f32.mrb[39].mxu0  ;;  %v6439_v57 = vpack.c.bf16 %v1360_v10, %v1359_v9 }
 0x1c7   : > { %v1033_v55 = vadd.f32 %v4800_v1, %v872_v30  ;;  %v4803_v56 = vadd.f32 %v4802_v51, %v4801_v37  ;;  %2744 = vmatprep.mubr.bf16.mxu1 %v1450_v46  ;;  %2592 = vmatmul.mubr.bf16.gmra.mrb[64].mxu0 %v1450_v46  ;;  %v6437_v21 = vadd.f32 %v4714_v52, %v4713_v4 }
 0x1c8   : > { %2745 = vmatmul.mubr.bf16.gmra.mrb[92].mxu1 %v6428_v53  ;;  %2599 = vmatprep.mubr.bf16.mxu0 %v1324_v47 }
 0x1c9   : > { %v1129_v7 = vmax.f32 %v1033_v55, 0.0  ;;  %v1036_v60 = vadd.f32 %v4803_v56, %v875_v42  ;;  %5213 = vmatpush3.bf16.msra.mxu1 %v5581_v50 }
 0x1ca   : > { %5214 = vmatprep.subr.bf16.mxu1 %v5582_v48  ;;  %v1423_v12 = vld [vmem:[#allocation2 + $0x78] sm:$0xff] }
 0x1cb   : > { %1201 = vst [vmem:[#allocation2 + $0x91] sm:$0xff] %v1129_v7  ;;  %v1130_v5 = vmax.f32 %v1036_v60, 0.0  ;;  %v4804_v6 = vpop.f32.mrb[40].mxu1  ;;  %v4716_v27 = vpop.f32.mrb[40].mxu0 }
 0x1cc   : > { %v4805_v11 = vpop.f32.mrb[41].mxu1  ;;  %v1424_v13 = vld [vmem:[#allocation2 + $0x80] sm:$0xff]  ;;  %v4717_v30 = vpop.f32.mrb[41].mxu0 }
 0x1cd   : > { %1202 = vst [vmem:[#allocation2 + $0x99] sm:$0xff] %v1130_v5  ;;  %v4806_v15 = vadd.f32 %v4805_v11, %v4804_v6  ;;  %v4807_v18 = vpop.f32.mrb[42].mxu1  ;;  %v1451_v19 = vpack.c.bf16 %v1424_v13, %v1423_v12  ;;  %v1325_v20 = vpack.c.bf16 %v1130_v5, %v1129_v7  ;;  %5215 = vmatpush3.bf16.msra.mxu1 %v5583_v2  ;;  %v4719_v35 = vpop.f32.mrb[42].mxu0  ;;  %v1361_v39 = vld [vmem:[#allocation2 + $0x7a] sm:$0xff]  ;;  %v1362_v40 = vld [vmem:[#allocation2 + $0x82] sm:$0xff] }
 0x1ce   : > { %v4808_v23 = vpop.f32.mrb[43].mxu1  ;;  %v6444_v33 = vadd.f32 %v4717_v30, %v4716_v27  ;;  %v4720_v44 = vpop.f32.mrb[43].mxu0  ;;  %v6452_v56 = vpack.c.bf16 %v1362_v40, %v1361_v39 }
 0x1cf   : > { %v1041_v24 = vadd.f32 %v4806_v15, %v880_v62  ;;  %v4809_v25 = vadd.f32 %v4808_v23, %v4807_v18  ;;  %2752 = vmatprep.mubr.bf16.mxu1 %v1451_v19  ;;  %2600 = vmatmul.mubr.bf16.gmra.mrb[68].mxu0 %v1451_v19  ;;  %v6448_v47 = vadd.f32 %v4720_v44, %v4719_v35 }
 0x1d0   : > { %2753 = vmatmul.mubr.bf16.gmra.mrb[96].mxu1 %v6439_v57  ;;  %2607 = vmatprep.mubr.bf16.mxu0 %v1325_v20 }
 0x1d1   : > { %v1131_v28 = vmax.f32 %v1041_v24, 0.0  ;;  %v1044_v29 = vadd.f32 %v4809_v25, %v883_v16 }
 0x1d2   : > { %v1425_v37 = vld [vmem:[#allocation2 + $0x90] sm:$0xff] }
 0x1d3   : > { %1203 = vst [vmem:[#allocation2 + $0xa9] sm:$0xff] %v1131_v28  ;;  %v1132_v36 = vmax.f32 %v1044_v29, 0.0  ;;  %v4810_v32 = vpop.f32.mrb[44].mxu1  ;;  %v4722_v60 = vpop.f32.mrb[44].mxu0 }
 0x1d4   : > { %v4811_v1 = vpop.f32.mrb[45].mxu1  ;;  %v1426_v46 = vld [vmem:[#allocation2 + $0x98] sm:$0xff]  ;;  %v4723_v4 = vpop.f32.mrb[45].mxu0 }
 0x1d5   : > { %1204 = vst [vmem:[#allocation2 + $0xb1] sm:$0xff] %v1132_v36  ;;  %v4812_v50 = vadd.f32 %v4811_v1, %v4810_v32  ;;  %v4813_v51 = vpop.f32.mrb[46].mxu1  ;;  %v6450_v48 = vpack.c.bf16 %v1426_v46, %v1425_v37  ;;  %v1326_v42 = vpack.c.bf16 %v1132_v36, %v1131_v28  ;;  %v6459_v5 = vadd.f32 %v4723_v4, %v4722_v60  ;;  %v4725_v62 = vpop.f32.mrb[46].mxu0  ;;  %v1363_v10 = vld [vmem:[#allocation2 + $0x92] sm:$0xff]  ;;  %v1364_v52 = vld [vmem:[#allocation2 + $0x9a] sm:$0xff] }
 0x1d6   : > { %v4814_v55 = vpop.f32.mrb[47].mxu1  ;;  %v4726_v11 = vpop.f32.mrb[47].mxu0  ;;  %v6467_v25 = vpack.c.bf16 %v1364_v52, %v1363_v10  ;;  %v904_v36 = vadd.f32 %v6433_v3, %v6378_v0  ;;  %v907_v3 = vadd.f32 %v6437_v21, %v6378_v0 }
 0x1d7   : > { %v1049_v59 = vadd.f32 %v4812_v50, %v888_v38  ;;  %v4815_v7 = vadd.f32 %v4814_v55, %v4813_v51  ;;  %2760 = vmatprep.mubr.bf16.mxu1 %v6450_v48  ;;  %2608 = vmatmul.mubr.bf16.gmra.mrb[72].mxu0 %v6450_v48  ;;  %v6463_v18 = vadd.f32 %v4726_v11, %v4725_v62 }
 0x1d8   : > { %2761 = vmatmul.mubr.bf16.gmra.mrb[100].mxu1 %v6452_v56  ;;  %2615 = vmatprep.mubr.bf16.mxu0 %v1326_v42 }
 0x1d9   : > { %v1133_v63 = vmax.f32 %v1049_v59, 0.0  ;;  %v1052_v2 = vadd.f32 %v4815_v7, %v891_v54 }
 0x1da   : > { %v1427_v13 = vld [vmem:[#allocation2 + $0xa8] sm:$0xff] }
 0x1db   : > { %1205 = vst [vmem:[#allocation2 + $0xc1] sm:$0xff] %v1133_v63  ;;  %v1134_v6 = vmax.f32 %v1052_v2, 0.0  ;;  %v4816_v9 = vpop.f32.mrb[48].mxu1 }
 0x1dc   : > { %v4817_v12 = vpop.f32.mrb[49].mxu1  ;;  %v1428_v15 = vld [vmem:[#allocation2 + $0xb0] sm:$0xff] }
 0x1dd   : > { %1206 = vst [vmem:[#allocation2 + $0xc9] sm:$0xff] %v1134_v6  ;;  %v4818_v19 = vadd.f32 %v4817_v12, %v4816_v9  ;;  %v4819_v20 = vpop.f32.mrb[50].mxu1  ;;  %v6465_v23 = vpack.c.bf16 %v1428_v15, %v1427_v13  ;;  %v1327_v16 = vpack.c.bf16 %v1134_v6, %v1133_v63  ;;  %v1365_v32 = vld [vmem:[#allocation2 + $0xaa] sm:$0xff]  ;;  %v1366_v45 = vld [vmem:[#allocation2 + $0xb2] sm:$0xff]  ;;  %v912_v63 = vadd.f32 %v6444_v33, %v6378_v0 }
 0x1de   : > { %v4820_v24 = vpop.f32.mrb[51].mxu1  ;;  %v6482_v42 = vpack.c.bf16 %v1366_v45, %v1365_v32  ;;  %v915_v15 = vadd.f32 %v6448_v47, %v6378_v0 }
 0x1df   : > { %v1057_v27 = vadd.f32 %v4818_v19, %v896_v8  ;;  %v4821_v28 = vadd.f32 %v4820_v24, %v4819_v20  ;;  %2768 = vmatprep.mubr.bf16.mxu1 %v6465_v23  ;;  %2616 = vmatmul.mubr.bf16.gmra.mrb[76].mxu0 %v6465_v23 }
 0x1e0   : > { %2769 = vmatmul.mubr.bf16.gmra.mrb[104].mxu1 %v6467_v25  ;;  %2623 = vmatprep.mubr.bf16.mxu0 %v1327_v16 }
 0x1e1   : > { %v1135_v29 = vmax.f32 %v1057_v27, 0.0  ;;  %v1060_v30 = vadd.f32 %v4821_v28, %v899_v26  ;;  %v920_v26 = vadd.f32 %v6459_v5, %v6378_v0 }
 0x1e2   : > { %v1429_v40 = vld [vmem:[#allocation2 + $0xc0] sm:$0xff] }
 0x1e3   : > { %1207 = vst [vmem:[#allocation2 + $0xd9] sm:$0xff] %v1135_v29  ;;  %v6474_v35 = vmax.f32 %v1060_v30, 0.0  ;;  %v4822_v38 = vpop.f32.mrb[52].mxu1 }
 0x1e4   : > { %v4823_v39 = vpop.f32.mrb[53].mxu1  ;;  %v1430_v44 = vld [vmem:[#allocation2 + $0xc8] sm:$0xff] }
 0x1e5   : > { %1208 = vst [vmem:[#allocation2 + $0xe1] sm:$0xff] %v6474_v35  ;;  %v4824_v1 = vadd.f32 %v4823_v39, %v4822_v38  ;;  %v4825_v37 = vpop.f32.mrb[54].mxu1  ;;  %v6479_v46 = vpack.c.bf16 %v1430_v44, %v1429_v40  ;;  %v1328_v50 = vpack.c.bf16 %v6474_v35, %v1135_v29  ;;  %v1367_v4 = vld [vmem:[#allocation2 + $0xc2] sm:$0xff]  ;;  %v1368_v62 = vld [vmem:[#allocation2 + $0xca] sm:$0xff] }
 0x1e6   : > { %v4826_v51 = vpop.f32.mrb[55].mxu1  ;;  %v6495_v13 = vpack.c.bf16 %v1368_v62, %v1367_v4 }
 0x1e7   : > { %v1065_v55 = vadd.f32 %v4824_v1, %v904_v36  ;;  %v4827_v54 = vadd.f32 %v4826_v51, %v4825_v37  ;;  %2776 = vmatprep.mubr.bf16.mxu1 %v6479_v46  ;;  %2624 = vmatmul.mubr.bf16.gmra.mrb[80].mxu0 %v6479_v46  ;;  %v923_v1 = vadd.f32 %v6463_v18, %v6378_v0 }
 0x1e8   : > { %2777 = vmatmul.mubr.bf16.gmra.mrb[108].mxu1 %v6482_v42  ;;  %2631 = vmatprep.mubr.bf16.mxu0 %v1328_v50  ;;  %v4880_v50 = vpop.f32.mrb[48].mxu0 }
 0x1e9   : > { %v1137_v59 = vmax.f32 %v1065_v55, 0.0  ;;  %v1068_v7 = vadd.f32 %v4827_v54, %v907_v3  ;;  %v4881_v55 = vpop.f32.mrb[49].mxu0 }
 0x1ea   : > { %v1431_v6 = vld [vmem:[#allocation2 + $0xd8] sm:$0xff]  ;;  %v6517_v54 = vadd.f32 %v4881_v55, %v4880_v50 }
 0x1eb   : > { %1209 = vst [vmem:[#allocation2 + $0xf1] sm:$0xff] %v1137_v59  ;;  %v1138_v60 = vmax.f32 %v1068_v7, 0.0  ;;  %v4828_v2 = vpop.f32.mrb[56].mxu1 }
 0x1ec   : > { %v4829_v21 = vpop.f32.mrb[57].mxu1  ;;  %v1432_v8 = vld [vmem:[#allocation2 + $0xe0] sm:$0xff] }
 0x1ed   : > { %1210 = vst [vmem:[#allocation2 + $0xf9] sm:$0xff] %v1138_v60  ;;  %v4830_v9 = vadd.f32 %v4829_v21, %v4828_v2  ;;  %v4831_v10 = vpop.f32.mrb[58].mxu1  ;;  %v6491_v52 = vpack.c.bf16 %v1432_v8, %v1431_v6  ;;  %v6493_v11 = vpack.c.bf16 %v1138_v60, %v1137_v59  ;;  %v1369_v28 = vld [vmem:[#allocation2 + $0xda] sm:$0xff]  ;;  %v1370_v47 = vld [vmem:[#allocation2 + $0xe2] sm:$0xff]  ;;  %v4883_v59 = vpop.f32.mrb[50].mxu0  ;;  %v928_v8 = vadd.f32 %v6355_v17, %v6378_v0 }
 0x1ee   : > { %v4832_v12 = vpop.f32.mrb[59].mxu1  ;;  %v6509_v44 = vpack.c.bf16 %v1370_v47, %v1369_v28  ;;  %v4884_v2 = vpop.f32.mrb[51].mxu0 }
 0x1ef   : > { %v1073_v33 = vadd.f32 %v4830_v9, %v912_v63  ;;  %v4833_v19 = vadd.f32 %v4832_v12, %v4831_v10  ;;  %2784 = vmatprep.mubr.bf16.mxu1 %v6491_v52  ;;  %2632 = vmatmul.mubr.bf16.gmra.mrb[84].mxu0 %v6491_v52  ;;  %v6519_v6 = vadd.f32 %v4884_v2, %v4883_v59 }
 0x1f0   : > { %2785 = vmatmul.mubr.bf16.gmra.mrb[112].mxu1 %v6495_v13  ;;  %2639 = vmatprep.mubr.bf16.mxu0 %v6493_v11 }
 0x1f1   : > { %v1139_v20 = vmax.f32 %v1073_v33, 0.0  ;;  %v1076_v16 = vadd.f32 %v4833_v19, %v915_v15 }
 0x1f2   : > { %v1433_v30 = vld [vmem:[#allocation2 + $0xf0] sm:$0xff] }
 0x1f3   : > { %1211 = vst [vmem:[#allocation2 + $0x109] sm:$0xff] %v1139_v20  ;;  %v1140_v24 = vmax.f32 %v1076_v16, 0.0  ;;  %v4834_v27 = vpop.f32.mrb[60].mxu1  ;;  %v931_v16 = vadd.f32 %v6357_v22, %v6378_v0  ;;  %v936_v22 = vadd.f32 %v6359_v31, %v6378_v0 }
 0x1f4   : > { %v4835_v29 = vpop.f32.mrb[61].mxu1  ;;  %v1434_v36 = vld [vmem:[#allocation2 + $0xf8] sm:$0xff] }
 0x1f5   : > { %1212 = vst [vmem:[#allocation2 + $0x111] sm:$0xff] %v1140_v24  ;;  %v4836_v38 = vadd.f32 %v4835_v29, %v4834_v27  ;;  %v4837_v32 = vpop.f32.mrb[62].mxu1  ;;  %v6505_v45 = vpack.c.bf16 %v1434_v36, %v1433_v30  ;;  %v6507_v39 = vpack.c.bf16 %v1140_v24, %v1139_v20  ;;  %v1371_v60 = vld [vmem:[#allocation2 + $0xf2] sm:$0xff]  ;;  %v1372_v63 = vld [vmem:[#allocation2 + $0xfa] sm:$0xff] }
 0x1f6   : > { %v4838_v40 = vpop.f32.mrb[63].mxu1  ;;  %v6527_v19 = vpack.c.bf16 %v1372_v63, %v1371_v60 }
 0x1f7   : > { %v1081_v5 = vadd.f32 %v4836_v38, %v920_v26  ;;  %v4839_v37 = vadd.f32 %v4838_v40, %v4837_v32  ;;  %2792 = vmatprep.mubr.bf16.mxu1 %v6505_v45  ;;  %2640 = vmatmul.mubr.bf16.gmra.mrb[88].mxu0 %v6505_v45 }
 0x1f8   : > { %2793 = vmatmul.mubr.bf16.gmra.mrb[116].mxu1 %v6509_v44  ;;  %2647 = vmatprep.mubr.bf16.mxu0 %v6507_v39 }
 0x1f9   : > { %v1141_v51 = vmax.f32 %v1081_v5, 0.0  ;;  %v1084_v3 = vadd.f32 %v4839_v37, %v923_v1 }
 0x1fa   : > { %v1435_v62 = vld [vmem:[#allocation2 + $0x108] sm:$0xff] }
 0x1fb   : > { %1213 = vst [vmem:[#allocation2 + $0x121] sm:$0xff] %v1141_v51  ;;  %v1142_v7 = vmax.f32 %v1084_v3, 0.0  ;;  %v4840_v18 = vpop.f32.mrb[64].mxu1  ;;  %v939_v3 = vadd.f32 %v6361_v34, %v6378_v0  ;;  %v944_v34 = vadd.f32 %v6363_v43, %v6378_v0 }
 0x1fc   : > { %v4841_v4 = vpop.f32.mrb[65].mxu1  ;;  %v1436_v21 = vld [vmem:[#allocation2 + $0x110] sm:$0xff] }
 0x1fd   : > { %1214 = vst [vmem:[#allocation2 + $0x129] sm:$0xff] %v1142_v7  ;;  %v4842_v9 = vadd.f32 %v4841_v4, %v4840_v18  ;;  %v4843_v10 = vpop.f32.mrb[66].mxu1  ;;  %v6523_v12 = vpack.c.bf16 %v1436_v21, %v1435_v62  ;;  %v6525_v15 = vpack.c.bf16 %v1142_v7, %v1141_v51  ;;  %v1373_v47 = vld [vmem:[#allocation2 + $0x10a] sm:$0xff]  ;;  %v1374_v29 = vld [vmem:[#allocation2 + $0x112] sm:$0xff] }
 0x1fe   : > { %v4844_v33 = vpop.f32.mrb[67].mxu1  ;;  %v6541_v50 = vpack.c.bf16 %v1374_v29, %v1373_v47 }
 0x1ff   : > { %v1089_v20 = vadd.f32 %v4842_v9, %v928_v8  ;;  %v4845_v24 = vadd.f32 %v4844_v33, %v4843_v10  ;;  %2800 = vmatprep.mubr.bf16.mxu1 %v6523_v12  ;;  %2648 = vmatmul.mubr.bf16.gmra.mrb[92].mxu0 %v6523_v12 }
 0x200   : > { %2801 = vmatmul.mubr.bf16.gmra.mrb[120].mxu1 %v6527_v19  ;;  %2655 = vmatprep.mubr.bf16.mxu0 %v6525_v15 }
 0x201   : > { %v1143_v17 = vmax.f32 %v1089_v20, 0.0  ;;  %v1092_v26 = vadd.f32 %v4845_v24, %v931_v16  ;;  %v947_v24 = vadd.f32 %v6365_v49, %v6378_v0  ;;  %v952_v49 = vadd.f32 %v6371_v58, %v6378_v0 }
 0x202   : > { %v1437_v36 = vld [vmem:[#allocation2 + $0x120] sm:$0xff] }
 0x203   : > { %1215 = vst [vmem:[#allocation2 + $0x139] sm:$0xff] %v1143_v17  ;;  %v1144_v27 = vmax.f32 %v1092_v26, 0.0  ;;  %v4846_v28 = vpop.f32.mrb[68].mxu1 }
 0x204   : > { %v4847_v30 = vpop.f32.mrb[69].mxu1  ;;  %v1438_v38 = vld [vmem:[#allocation2 + $0x128] sm:$0xff] }
 0x205   : > { %1216 = vst [vmem:[#allocation2 + $0x141] sm:$0xff] %v1144_v27  ;;  %v4848_v32 = vadd.f32 %v4847_v30, %v4846_v28  ;;  %v4849_v40 = vpop.f32.mrb[70].mxu1  ;;  %v6537_v1 = vpack.c.bf16 %v1438_v38, %v1437_v36  ;;  %v6539_v5 = vpack.c.bf16 %v1144_v27, %v1143_v17  ;;  %v1375_v60 = vld [vmem:[#allocation2 + $0x122] sm:$0xff]  ;;  %v1376_v63 = vld [vmem:[#allocation2 + $0x12a] sm:$0xff] }
 0x206   : > { %v4850_v37 = vpop.f32.mrb[71].mxu1  ;;  %v6555_v20 = vpack.c.bf16 %v1376_v63, %v1375_v60 }
 0x207   : > { %v1097_v51 = vadd.f32 %v4848_v32, %v936_v22  ;;  %v4851_v55 = vadd.f32 %v4850_v37, %v4849_v40  ;;  %2808 = vmatprep.mubr.bf16.mxu1 %v6537_v1  ;;  %2656 = vmatmul.mubr.bf16.gmra.mrb[96].mxu0 %v6537_v1 }
 0x208   : > { %2809 = vmatmul.mubr.bf16.gmra.mrb[124].mxu1 %v6541_v50  ;;  %2663 = vmatprep.mubr.bf16.mxu0 %v6539_v5 }
 0x209   : > { %v1145_v31 = vmax.f32 %v1097_v51, 0.0  ;;  %v1100_v59 = vadd.f32 %v4851_v55, %v939_v3 }
 0x20a   : > { %v1439_v4 = vld [vmem:[#allocation2 + $0x138] sm:$0xff] }
 0x20b   : > { %1217 = vst [vmem:[#allocation2 + $0x151] sm:$0xff] %v1145_v31  ;;  %v1146_v7 = vmax.f32 %v1100_v59, 0.0  ;;  %v4852_v18 = vpop.f32.mrb[72].mxu1 }
 0x20c   : > { %v4853_v2 = vpop.f32.mrb[73].mxu1  ;;  %v1440_v62 = vld [vmem:[#allocation2 + $0x140] sm:$0xff] }
 0x20d   : > { %1218 = vst [vmem:[#allocation2 + $0x159] sm:$0xff] %v1146_v7  ;;  %v4854_v21 = vadd.f32 %v4853_v2, %v4852_v18  ;;  %v4855_v8 = vpop.f32.mrb[74].mxu1  ;;  %v6551_v9 = vpack.c.bf16 %v1440_v62, %v1439_v4  ;;  %v6553_v10 = vpack.c.bf16 %v1146_v7, %v1145_v31  ;;  %v1377_v47 = vld [vmem:[#allocation2 + $0x13a] sm:$0xff]  ;;  %v1378_v29 = vld [vmem:[#allocation2 + $0x142] sm:$0xff]  ;;  %v955_v31 = vadd.f32 %v6373_v61, %v6378_v0 }
 0x20e   : > { %v4856_v33 = vpop.f32.mrb[75].mxu1  ;;  %v6569_v3 = vpack.c.bf16 %v1378_v29, %v1377_v47  ;;  %v1543_v18 = vld [vmem:[#allocation2 + $0x1a] sm:$0xff]  ;;  %v1544_v4 = vld [vmem:[#allocation2 + $0x22] sm:$0xff] }
 0x20f   : > { %v1105_v16 = vadd.f32 %v4854_v21, %v944_v34  ;;  %v4857_v17 = vadd.f32 %v4856_v33, %v4855_v8  ;;  %2816 = vmatprep.mubr.bf16.mxu1 %v6551_v9  ;;  %2664 = vmatmul.mubr.bf16.gmra.mrb[100].mxu0 %v6551_v9  ;;  %v1575_v8 = vpack.c.bf16 %v1544_v4, %v1543_v18  ;;  %v1480_v33 = vld [vmem:[#allocation2 + $0x21] sm:$0xff] }
 0x210   : > { %2817 = vmatmul.mubr.bf16.gmra.mrb[128].mxu1 %v6555_v20  ;;  %2671 = vmatprep.mubr.bf16.mxu0 %v6553_v10  ;;  %v1610_v18 = vld [vmem:[#allocation2 + $0x48] sm:$0xff] }
 0x211   : > { %v1147_v43 = vmax.f32 %v1105_v16, 0.0  ;;  %v1108_v26 = vadd.f32 %v4857_v17, %v947_v24  ;;  %v1479_v17 = vld [vmem:[#allocation2 + $0x19] sm:$0xff] }
 0x212   : > { %v1441_v36 = vld [vmem:[#allocation2 + $0x150] sm:$0xff]  ;;  %v1511_v47 = vpack.c.bf16 %v1480_v33, %v1479_v17 }
 0x213   : > { %1219 = vst [vmem:[#allocation2 + $0x169] sm:$0xff] %v1147_v43  ;;  %v1148_v27 = vmax.f32 %v1108_v26, 0.0  ;;  %v4858_v28 = vpop.f32.mrb[76].mxu1 }
 0x214   : > { %v4859_v30 = vpop.f32.mrb[77].mxu1  ;;  %v1442_v38 = vld [vmem:[#allocation2 + $0x158] sm:$0xff] }
 0x215   : > { %1220 = vst [vmem:[#allocation2 + $0x171] sm:$0xff] %v1148_v27  ;;  %v4860_v22 = vadd.f32 %v4859_v30, %v4858_v28  ;;  %v4861_v32 = vpop.f32.mrb[78].mxu1  ;;  %v6565_v40 = vpack.c.bf16 %v1442_v38, %v1441_v36  ;;  %v6567_v37 = vpack.c.bf16 %v1148_v27, %v1147_v43  ;;  %v1379_v63 = vld [vmem:[#allocation2 + $0x152] sm:$0xff]  ;;  %v1380_v2 = vld [vmem:[#allocation2 + $0x15a] sm:$0xff] }
 0x216   : > { %v4862_v51 = vpop.f32.mrb[79].mxu1  ;;  %v6581_v21 = vpack.c.bf16 %v1380_v2, %v1379_v63  ;;  %v1673_v27 = vld [vmem:[#allocation2 + $0x39] sm:$0xff]  ;;  %v1672_v30 = vld [vmem:[#allocation2 + $0x31] sm:$0xff]  ;;  %v1676_v63 = vld [vmem:[#allocation2 + $0x61] sm:$0xff] }
 0x217   : > { %v1113_v55 = vadd.f32 %v4860_v22, %v952_v49  ;;  %v4863_v59 = vadd.f32 %v4862_v51, %v4861_v32  ;;  %2824 = vmatprep.mubr.bf16.mxu1 %v6565_v40  ;;  %2672 = vmatmul.mubr.bf16.gmra.mrb[104].mxu0 %v6565_v40  ;;  %v5584_v36 = vld [vmem:[#allocation9 + $0x208] sm:$0xff]   ;;  %v1704_v38 = vpack.c.bf16 %v1673_v27, %v1672_v30  ;;  %v5585_v49 = vld [vmem:[#allocation9 + $0x210] sm:$0xff]   ;;  %v1608_v51 = vld [vmem:[#allocation2 + $0x30] sm:$0xff] }
 0x218   : > { %2825 = vmatmul.mubr.bf16.gmra.mrb[132].mxu1 %v6569_v3  ;;  %2679 = vmatprep.mubr.bf16.mxu0 %v6567_v37  ;;  %v1609_v22 = vld [vmem:[#allocation2 + $0x38] sm:$0xff] }
 0x219   : > { %v1149_v58 = vmax.f32 %v1113_v55, 0.0  ;;  %v1116_v7 = vadd.f32 %v4863_v59, %v955_v31  ;;  %v1675_v32 = vld [vmem:[#allocation2 + $0x51] sm:$0xff]  ;;  %v1640_v55 = vpack.c.bf16 %v1609_v22, %v1608_v51  ;;  %v1674_v31 = vld [vmem:[#allocation2 + $0x49] sm:$0xff]  ;;  %v1684_v22 = vld [vmem:[#allocation2 + $0xc1] sm:$0xff] }
 0x21a   : > { %v1443_v62 = vld [vmem:[#allocation2 + $0x168] sm:$0xff]  ;;  %v5588_v2 = vld [vmem:[#allocation9 + $0x228] sm:$0xff]  }
 0x21b   : > { %1221 = vst [vmem:[#allocation2 + $0x181] sm:$0xff] %v1149_v58  ;;  %v1150_v60 = vmax.f32 %v1116_v7, 0.0  ;;  %v5586_v59 = vld [vmem:[#allocation9 + $0x218] sm:$0xff]  }
 0x21c   : > { %v1444_v34 = vld [vmem:[#allocation2 + $0x170] sm:$0xff] }
 0x21d   : > { %1222 = vst [vmem:[#allocation2 + $0x189] sm:$0xff] %v1150_v60  ;;  %v6577_v61 = vpack.c.bf16 %v1444_v34, %v1443_v62  ;;  %v6579_v0 = vpack.c.bf16 %v1150_v60, %v1149_v58  ;;  %v1381_v16 = vld [vmem:[#allocation2 + $0x16a] sm:$0xff]  ;;  %v1382_v24 = vld [vmem:[#allocation2 + $0x172] sm:$0xff]  ;;  %v1705_v58 = vpack.c.bf16 %v1675_v32, %v1674_v31  ;;  %v1679_v34 = vld [vmem:[#allocation2 + $0x81] sm:$0xff] }
 0x21e   : > { %v6588_v29 = vpack.c.bf16 %v1382_v24, %v1381_v16  ;;  %v1677_v7 = vld [vmem:[#allocation2 + $0x69] sm:$0xff]  ;;  %v1678_v16 = vld [vmem:[#allocation2 + $0x79] sm:$0xff] }
 0x21f   : > { %2832 = vmatprep.mubr.bf16.mxu1 %v6577_v61  ;;  %2680 = vmatmul.mubr.bf16.gmra.mrb[108].mxu0 %v6577_v61  ;;  %v1706_v4 = vpack.c.bf16 %v1677_v7, %v1676_v63  ;;  %v1613_v62 = vld [vmem:[#allocation2 + $0x68] sm:$0xff]  ;;  %v1707_v17 = vpack.c.bf16 %v1679_v34, %v1678_v16 }
 0x220   : > { %2833 = vmatmul.mubr.bf16.gmra.mrb[136].mxu1 %v6581_v21  ;;  %2881 = vmatprep.mubr.bf16.mxu0 %v1575_v8  ;;  %v1612_v8 = vld [vmem:[#allocation2 + $0x60] sm:$0xff]  ;;  %v5590_v24 = vld [vmem:[#allocation9 + $0x238] sm:$0xff]  }
 0x221   : > { %v1642_v33 = vpack.c.bf16 %v1613_v62, %v1612_v8 }
 0x222   : > { %v1445_v43 = vld [vmem:[#allocation2 + $0x180] sm:$0xff] }
 0x224   : > { %v1446_v26 = vld [vmem:[#allocation2 + $0x188] sm:$0xff] }
 0x225   : > { %v6586_v28 = vpack.c.bf16 %v1446_v26, %v1445_v43  ;;  %v1681_v43 = vld [vmem:[#allocation2 + $0x99] sm:$0xff]  ;;  %v1573_v16 = vld [vmem:[#allocation2 + $0x182] sm:$0xff] }
 0x226   : > { %v1614_v26 = vld [vmem:[#allocation2 + $0x78] sm:$0xff] }
 0x227   : > { %2840 = vmatprep.mubr.bf16.mxu1 %v6586_v28  ;;  %2882 = vmatmul.mubr.bf16.vlgmr.msra.gmra.mrb[112].mxu0 %v1511_v47  ;;  %v1680_v47 = vld [vmem:[#allocation2 + $0x91] sm:$0xff] }
 0x228   : > { %2841 = vmatmul.mubr.bf16.gmra.mrb[140].mxu1 %v6588_v29  ;;  %2889 = vmatprep.mubr.bf16.mxu0 %v6417_v14  ;;  %v5587_v14 = vld [vmem:[#allocation9 + $0x220] sm:$0xff]   ;;  %v1708_v30 = vpack.c.bf16 %v1681_v43, %v1680_v47 }
 0x229   : > { %3042 = vmatprep.mubr.bf16.mxu1 %v1704_v38  ;;  %5337 = vmatpush3.bf16.msra.mxu0 %v6392_v41  ;;  %v1611_v41 = vld [vmem:[#allocation2 + $0x50] sm:$0xff] }
 0x22a   : > { %5338 = vmatprep.subr.bf16.mxu0 %v5584_v36  ;;  %v1641_v60 = vpack.c.bf16 %v1611_v41, %v1610_v18 }
 0x22d   : > { %5339 = vmatpush3.bf16.msra.mxu0 %v5584_v36  ;;  %v1683_v36 = vld [vmem:[#allocation2 + $0xb1] sm:$0xff] }
 0x22e   : > { %5340 = vmatprep.subr.bf16.mxu0 %v5585_v49 }
 0x22f   : > { %2890 = vmatmul.mubr.bf16.gmra.mrb[116].mxu0 %v1704_v38  ;;  %v1682_v38 = vld [vmem:[#allocation2 + $0xa9] sm:$0xff] }
 0x230   : > { %3043 = vmatmul.mubr.bf16.vlgmr.msra.gmra.mrb[144].mxu1 %v1640_v55  ;;  %2897 = vmatprep.mubr.bf16.mxu0 %v6428_v53  ;;  %v5589_v53 = vld [vmem:[#allocation9 + $0x230] sm:$0xff]  }
 0x231   : > { %3050 = vmatprep.mubr.bf16.mxu1 %v1705_v58  ;;  %5341 = vmatpush3.bf16.msra.mxu0 %v5585_v49  ;;  %v1709_v49 = vpack.c.bf16 %v1683_v36, %v1682_v38  ;;  %v5594_v36 = vld [vmem:[#allocation10 + $0x20] ss:$16 sps:$4 sm:$0xff]   ;;  %v5596_v38 = vld [vmem:[#allocation10 + $0x24] ss:$16 sps:$4 sm:$0xff]  }
 0x232   : > { %5342 = vmatprep.subr.bf16.mxu0 %v5586_v59 }
 0x235   : > { %5343 = vmatpush3.bf16.msra.mxu0 %v5586_v59 }
 0x236   : > { %5344 = vmatprep.subr.bf16.mxu0 %v5587_v14 }
 0x237   : > { %2898 = vmatmul.mubr.bf16.gmra.mrb[120].mxu0 %v1705_v58 }
 0x238   : > { %3051 = vmatmul.mubr.bf16.gmra.mrb[148].mxu1 %v1641_v60  ;;  %2905 = vmatprep.mubr.bf16.mxu0 %v6439_v57  ;;  %v1615_v57 = vld [vmem:[#allocation2 + $0x80] sm:$0xff] }
 0x239   : > { %3058 = vmatprep.mubr.bf16.mxu1 %v1706_v4  ;;  %5345 = vmatpush3.bf16.msra.mxu0 %v5587_v14  ;;  %v1643_v27 = vpack.c.bf16 %v1615_v57, %v1614_v26 }
 0x23a   : > { %5346 = vmatprep.subr.bf16.mxu0 %v5588_v2 }
 0x23d   : > { %5347 = vmatpush3.bf16.msra.mxu0 %v5588_v2 }
 0x23e   : > { %5348 = vmatprep.subr.bf16.mxu0 %v5589_v53 }
 0x23f   : > { %2906 = vmatmul.mubr.bf16.gmra.mrb[124].mxu0 %v1706_v4 }
 0x240   : > { %3059 = vmatmul.mubr.bf16.gmra.mrb[152].mxu1 %v1642_v33  ;;  %2913 = vmatprep.mubr.bf16.mxu0 %v6452_v56  ;;  %v1685_v56 = vld [vmem:[#allocation2 + $0xc9] sm:$0xff] }
 0x241   : > { %3066 = vmatprep.mubr.bf16.mxu1 %v1707_v17  ;;  %5349 = vmatpush3.bf16.msra.mxu0 %v5589_v53  ;;  %v1710_v32 = vpack.c.bf16 %v1685_v56, %v1684_v22 }
 0x242   : > { %5350 = vmatprep.subr.bf16.mxu0 %v5590_v24 }
 0x245   : > { %5351 = vmatpush3.bf16.msra.mxu0 %v5590_v24  ;;  %v1574_v24 = vld [vmem:[#allocation2 + $0x18a] sm:$0xff] }
 0x247   : > { %2914 = vmatmul.mubr.bf16.gmra.mrb[128].mxu0 %v1707_v17 }
 0x248   : > { %3067 = vmatmul.mubr.bf16.gmra.mrb[156].mxu1 %v1643_v27  ;;  %2921 = vmatprep.mubr.bf16.mxu0 %v6467_v25  ;;  %v1686_v25 = vld [vmem:[#allocation2 + $0xd9] sm:$0xff] }
 0x249   : > { %3074 = vmatprep.mubr.bf16.mxu1 %v1708_v30  ;;  %v1711_v51 = vpack.c.bf16 %v6474_v35, %v1686_v25 }
 0x24f   : > { %2922 = vmatmul.mubr.bf16.gmra.mrb[132].mxu0 %v1708_v30 }
 0x250   : > { %3075 = vmatmul.mubr.bf16.gmra.mrb[160].mxu1 %v6450_v48  ;;  %2929 = vmatprep.mubr.bf16.mxu0 %v6482_v42  ;;  %v1496_v48 = vld [vmem:[#allocation2 + $0xe1] sm:$0xff] }
 0x251   : > { %3082 = vmatprep.mubr.bf16.mxu1 %v1709_v49  ;;  %v1519_v42 = vpack.c.bf16 %v1496_v48, %v1686_v25  ;;  %v1703_v48 = vld [vmem:[#allocation2 + $0x1a1] sm:$0xff] }
 0x257   : > { %2930 = vmatmul.mubr.bf16.gmra.mrb[136].mxu0 %v1709_v49 }
 0x258   : > { %3083 = vmatmul.mubr.bf16.gmra.mrb[164].mxu1 %v6465_v23  ;;  %2937 = vmatprep.mubr.bf16.mxu0 %v6495_v13  ;;  %v6623_v23 = vld [vmem:[%s7362_s4] ss:$0 sm:$0xff] }
 0x259   : > { %3090 = vmatprep.mubr.bf16.mxu1 %v1710_v32 }
 0x25f   : > { %2938 = vmatmul.mubr.bf16.gmra.mrb[140].mxu0 %v1710_v32 }
 0x260   : > { %3091 = vmatmul.mubr.bf16.gmra.mrb[168].mxu1 %v6479_v46  ;;  %2945 = vmatprep.mubr.bf16.mxu0 %v6509_v44 }
 0x261   : > { %3098 = vmatprep.mubr.bf16.mxu1 %v1711_v51  ;;  %v1702_v51 = vld [vmem:[#allocation2 + $0x199] sm:$0xff] }
 0x267   : > { %2946 = vmatmul.mubr.bf16.gmra.mrb[144].mxu0 %v1519_v42 }
 0x268   : > { %3099 = vmatmul.mubr.bf16.gmra.mrb[172].mxu1 %v6491_v52  ;;  %2953 = vmatprep.mubr.bf16.mxu0 %v6527_v19 }
 0x269   : > { %3106 = vmatprep.mubr.bf16.mxu1 %v6493_v11 }
 0x26f   : > { %2954 = vmatmul.mubr.bf16.gmra.mrb[148].mxu0 %v6493_v11 }
 0x270   : > { %3107 = vmatmul.mubr.bf16.gmra.mrb[176].mxu1 %v6505_v45  ;;  %2961 = vmatprep.mubr.bf16.mxu0 %v6541_v50  ;;  %v5591_v50 = vld [vmem:[#allocation10] ss:$16 sps:$4 sm:$0xff]  }
 0x271   : > { %3114 = vmatprep.mubr.bf16.mxu1 %v6507_v39 }
 0x277   : > { %2962 = vmatmul.mubr.bf16.gmra.mrb[152].mxu0 %v6507_v39  ;;  %v2562_v39 = vadd.f32 %v6517_v54, %v6623_v23 }
 0x278   : > { %3115 = vmatmul.mubr.bf16.gmra.mrb[180].mxu1 %v6523_v12  ;;  %2969 = vmatprep.mubr.bf16.mxu0 %v6555_v20  ;;  %v5593_v20 = vld [vmem:[#allocation10 + $0x4] ss:$16 sps:$4 sm:$0xff]  }
 0x279   : > { %3122 = vmatprep.mubr.bf16.mxu1 %v6525_v15  ;;  %3594 = vmatprep.subr.bf16.mxu1 %v5593_v20 }
 0x27a   : > { %3595 = vmatpush1.bf16.msra.mxu1 %v5591_v50 }
 0x27b   : > { %3596 = vmatprep.subr.bf16.mxu1 %v5596_v38  ;;  %v1744_v38 = vld [vmem:[#allocation2 + $0x92] sm:$0xff] }
 0x27e   : > { %3597 = vmatpush1.bf16.msra.mxu1 %v5594_v36 }
 0x27f   : > { %2970 = vmatmul.mubr.bf16.gmra.mrb[156].mxu0 %v6525_v15 }
 0x280   : > { %3123 = vmatmul.mubr.bf16.gmra.mrb[184].mxu1 %v6537_v1  ;;  %2977 = vmatprep.mubr.bf16.mxu0 %v6569_v3  ;;  %v2565_v3 = vadd.f32 %v6519_v6, %v6623_v23 }
 0x281   : > { %3130 = vmatprep.mubr.bf16.mxu1 %v6539_v5 }
 0x282   : > { %v4886_v35 = vpop.f32.mrb[52].mxu0 }
 0x283   : > { %v4992_v46 = vpop.f32.mrb[80].mxu1  ;;  %v4887_v52 = vpop.f32.mrb[53].mxu0 }
 0x284   : > { %v4888_v11 = vadd.f32 %v4887_v52, %v4886_v35  ;;  %v4993_v13 = vpop.f32.mrb[81].mxu1  ;;  %v4889_v45 = vpop.f32.mrb[54].mxu0  ;;  %v1737_v52 = vld [vmem:[#allocation2 + $0x3a] sm:$0xff] }
 0x285   : > { %v4994_v44 = vadd.f32 %v4993_v13, %v4992_v46  ;;  %v4995_v12 = vpop.f32.mrb[82].mxu1  ;;  %v4890_v15 = vpop.f32.mrb[55].mxu0  ;;  %v1736_v46 = vld [vmem:[#allocation2 + $0x32] sm:$0xff] }
 0x286   : > { %v4891_v19 = vadd.f32 %v4890_v15, %v4889_v45  ;;  %v4996_v1 = vpop.f32.mrb[83].mxu1  ;;  %v2570_v18 = vadd.f32 %v4888_v11, %v6623_v23 }
 0x287   : > { %v6629_v55 = vadd.f32 %v4994_v44, %v2562_v39  ;;  %v4997_v31 = vadd.f32 %v4996_v1, %v4995_v12  ;;  %2978 = vmatmul.mubr.bf16.gmra.mrb[160].mxu0 %v6539_v5  ;;  %v1719_v12 = vpack.c.bf16 %v1703_v48, %v1702_v51  ;;  %v1768_v1 = vpack.c.bf16 %v1737_v52, %v1736_v46 }
 0x288   : > { %3131 = vmatmul.mubr.bf16.gmra.mrb[188].mxu1 %v6551_v9  ;;  %2985 = vmatprep.mubr.bf16.mxu0 %v6581_v21  ;;  %v2573_v21 = vadd.f32 %v4891_v19, %v6623_v23 }
 0x289   : > { %v6634_v54 = vadd.f32 %v4997_v31, %v2565_v3  ;;  %3138 = vmatprep.mubr.bf16.mxu1 %v6553_v10 }
 0x28a   : > { %v4892_v59 = vpop.f32.mrb[56].mxu0 }
 0x28b   : > { %v4998_v58 = vpop.f32.mrb[84].mxu1  ;;  %v4893_v14 = vpop.f32.mrb[57].mxu0 }
 0x28c   : > { %v4894_v41 = vadd.f32 %v4893_v14, %v4892_v59  ;;  %v4999_v6 = vpop.f32.mrb[85].mxu1  ;;  %v4895_v7 = vpop.f32.mrb[58].mxu0  ;;  %v1739_v14 = vld [vmem:[#allocation2 + $0x52] sm:$0xff] }
 0x28d   : > { %v5000_v60 = vadd.f32 %v4999_v6, %v4998_v58  ;;  %v5001_v5 = vpop.f32.mrb[86].mxu1  ;;  %v4896_v63 = vpop.f32.mrb[59].mxu0  ;;  %v1738_v58 = vld [vmem:[#allocation2 + $0x4a] sm:$0xff] }
 0x28e   : > { %v4897_v9 = vadd.f32 %v4896_v63, %v4895_v7  ;;  %v5002_v2 = vpop.f32.mrb[87].mxu1  ;;  %v2578_v26 = vadd.f32 %v4894_v41, %v6623_v23  ;;  %v1740_v7 = vld [vmem:[#allocation2 + $0x62] sm:$0xff] }
 0x28f   : > { %v6639_v4 = vadd.f32 %v5000_v60, %v2570_v18  ;;  %v5003_v53 = vadd.f32 %v5002_v2, %v5001_v5  ;;  %2986 = vmatmul.mubr.bf16.gmra.mrb[164].mxu0 %v6553_v10  ;;  %v1741_v18 = vld [vmem:[#allocation2 + $0x6a] sm:$0xff] }
 0x290   : > { %3139 = vmatmul.mubr.bf16.gmra.mrb[192].mxu1 %v6565_v40  ;;  %2993 = vmatprep.mubr.bf16.mxu0 %v6588_v29  ;;  %v6648_v29 = vpack.c.bf16 %v1574_v24, %v1573_v16  ;;  %v2581_v49 = vadd.f32 %v4897_v9, %v6623_v23  ;;  %v5639_v9 = vld [vmem:[#allocation2] sm:$0xff]  ;;  %v1770_v16 = vpack.c.bf16 %v1741_v18, %v1740_v7 }
 0x291   : > { %v6644_v62 = vadd.f32 %v5003_v53, %v2573_v21  ;;  %3146 = vmatprep.mubr.bf16.mxu1 %v6567_v37  ;;  %v1655_v2 = vpack.c.bf16 %v5639_v9, %v5639_v9  ;;  %v5597_v24 = vld [vmem:[#allocation10 + $0x40] ss:$16 sps:$4 sm:$0xff]  }
 0x292   : > { %v4898_v34 = vpop.f32.mrb[60].mxu0 }
 0x293   : > { %v5004_v8 = vpop.f32.mrb[88].mxu1  ;;  %v4899_v33 = vpop.f32.mrb[61].mxu0 }
 0x294   : > { %v4900_v17 = vadd.f32 %v4899_v33, %v4898_v34  ;;  %v5005_v57 = vpop.f32.mrb[89].mxu1  ;;  %v4901_v43 = vpop.f32.mrb[62].mxu0  ;;  %v1769_v34 = vpack.c.bf16 %v1739_v14, %v1738_v58 }
 0x295   : > { %v5006_v27 = vadd.f32 %v5005_v57, %v5004_v8  ;;  %v5007_v10 = vpop.f32.mrb[90].mxu1  ;;  %v4902_v47 = vpop.f32.mrb[63].mxu0 }
 0x296   : > { %v4903_v40 = vadd.f32 %v4902_v47, %v4901_v43  ;;  %v5008_v30 = vpop.f32.mrb[91].mxu1  ;;  %v1742_v47 = vld [vmem:[#allocation2 + $0x7a] sm:$0xff] }
 0x297   : > { %v6651_v56 = vadd.f32 %v5006_v27, %v2578_v26  ;;  %v5009_v22 = vadd.f32 %v5008_v30, %v5007_v10  ;;  %2994 = vmatmul.mubr.bf16.gmra.mrb[168].mxu0 %v6567_v37 }
 0x298   : > { %3147 = vmatmul.mubr.bf16.gmra.mrb[196].mxu1 %v6577_v61  ;;  %3001 = vmatprep.mubr.bf16.mxu0 %v6648_v29  ;;  %v2586_v61 = vadd.f32 %v4900_v17, %v6623_v23  ;;  %v2589_v50 = vadd.f32 %v4903_v40, %v6623_v23  ;;  %v5599_v17 = vld [vmem:[#allocation10 + $0x44] ss:$16 sps:$4 sm:$0xff]  }
 0x299   : > { %v6656_v32 = vadd.f32 %v5009_v22, %v2581_v49  ;;  %3154 = vmatprep.mubr.bf16.mxu1 %v6579_v0  ;;  %3598 = vmatprep.subr.bf16.mxu1 %v5599_v17  ;;  %v1743_v40 = vld [vmem:[#allocation2 + $0x82] sm:$0xff]  ;;  %v1745_v49 = vld [vmem:[#allocation2 + $0x9a] sm:$0xff] }
 0x29a   : > { %v4904_v25 = vpop.f32.mrb[64].mxu0  ;;  %3599 = vmatpush1.bf16.msra.mxu1 %v5597_v24  ;;  %v1771_v52 = vpack.c.bf16 %v1743_v40, %v1742_v47  ;;  %v1751_v24 = vld [vmem:[#allocation2 + $0xe2] sm:$0xff] }
 0x29b   : > { %v5010_v42 = vpop.f32.mrb[92].mxu1  ;;  %v4905_v35 = vpop.f32.mrb[65].mxu0 }
 0x29c   : > { %v4906_v11 = vadd.f32 %v4905_v35, %v4904_v25  ;;  %v5011_v13 = vpop.f32.mrb[93].mxu1  ;;  %v4907_v37 = vpop.f32.mrb[66].mxu0 }
 0x29d   : > { %v5012_v45 = vadd.f32 %v5011_v13, %v5010_v42  ;;  %v5013_v39 = vpop.f32.mrb[94].mxu1  ;;  %v4908_v44 = vpop.f32.mrb[67].mxu0 }
 0x29e   : > { %v4909_v15 = vadd.f32 %v4908_v44, %v4907_v37  ;;  %v5014_v19 = vpop.f32.mrb[95].mxu1  ;;  %v1772_v37 = vpack.c.bf16 %v1745_v49, %v1744_v38 }
 0x29f   : > { %v6661_v20 = vadd.f32 %v5012_v45, %v2586_v61  ;;  %v5015_v3 = vadd.f32 %v5014_v19, %v5013_v39  ;;  %3002 = vmatmul.mubr.bf16.gmra.mrb[172].mxu0 %v6579_v0  ;;  %v2594_v0 = vadd.f32 %v4906_v11, %v6623_v23  ;;  %v1747_v19 = vld [vmem:[#allocation2 + $0xb2] sm:$0xff] }
 0x2a0   : > { %3155 = vmatmul.mubr.bf16.gmra.mrb[200].mxu1 %v6586_v28  ;;  %5352 = vmatprep.mubr.bf16.mxu0 %v1768_v1  ;;  %v2597_v57 = vadd.f32 %v4909_v15, %v6623_v23  ;;  %v1746_v15 = vld [vmem:[#allocation2 + $0xaa] sm:$0xff] }
 0x2a1   : > { %v6665_v31 = vadd.f32 %v5015_v3, %v2589_v50  ;;  %3162 = vmatprep.mubr.bf16.mxu1 %v1719_v12  ;;  %v1748_v3 = vld [vmem:[#allocation2 + $0xc2] sm:$0xff] }
 0x2a2   : > { %v4910_v59 = vpop.f32.mrb[68].mxu0 }
 0x2a3   : > { %v5016_v41 = vpop.f32.mrb[96].mxu1  ;;  %v4911_v6 = vpop.f32.mrb[69].mxu0 }
 0x2a4   : > { %v4912_v60 = vadd.f32 %v4911_v6, %v4910_v59  ;;  %v5017_v5 = vpop.f32.mrb[97].mxu1  ;;  %v4913_v63 = vpop.f32.mrb[70].mxu0  ;;  %v1749_v59 = vld [vmem:[#allocation2 + $0xca] sm:$0xff] }
 0x2a5   : > { %v5018_v21 = vadd.f32 %v5017_v5, %v5016_v41  ;;  %v5019_v28 = vpop.f32.mrb[98].mxu1  ;;  %v4914_v53 = vpop.f32.mrb[71].mxu0  ;;  %v1773_v5 = vpack.c.bf16 %v1747_v19, %v1746_v15  ;;  %v1756_v15 = vld [vmem:[#allocation2 + $0x122] sm:$0xff]  ;;  %v1757_v19 = vld [vmem:[#allocation2 + $0x12a] sm:$0xff] }
 0x2a6   : > { %v4915_v8 = vadd.f32 %v4914_v53, %v4913_v63  ;;  %v5020_v33 = vpop.f32.mrb[99].mxu1  ;;  %v2602_v48 = vadd.f32 %v4912_v60, %v6623_v23 }
 0x2a7   : > { %v6669_v43 = vadd.f32 %v5018_v21, %v2594_v0  ;;  %v5021_v26 = vadd.f32 %v5020_v33, %v5019_v28  ;;  %5353 = vmatmul.mubr.bf16.vlgmr.msra.gmra.mrb[176].mxu0 %v1769_v34  ;;  %v5600_v0 = vld [vmem:[#allocation10 + $0x60] ss:$16 sps:$4 sm:$0xff]   ;;  %v5602_v21 = vld [vmem:[#allocation10 + $0x64] ss:$16 sps:$4 sm:$0xff]  }
 0x2a8   : > { %3163 = vmatmul.mubr.bf16.gmra.mrb[204].mxu1 %v1655_v2  ;;  %5356 = vmatprep.mubr.bf16.mxu0 %v1770_v16  ;;  %v2605_v61 = vadd.f32 %v4915_v8, %v6623_v23  ;;  %v1774_v2 = vpack.c.bf16 %v1749_v59, %v1748_v3  ;;  %v1750_v16 = vld [vmem:[#allocation2 + $0xda] sm:$0xff] }
 0x2a9   : > { %v6671_v27 = vadd.f32 %v5021_v26, %v2597_v57  ;;  %3600 = vmatprep.subr.bf16.mxu1 %v5602_v21  ;;  %v1752_v26 = vld [vmem:[#allocation2 + $0xf2] sm:$0xff] }
 0x2aa   : > { %v4916_v10 = vpop.f32.mrb[72].mxu0  ;;  %3601 = vmatpush1.bf16.msra.mxu1 %v5600_v0  ;;  %v5606_v21 = vld [vmem:[#allocation10 + $0x8] ss:$16 sps:$4 sm:$0xff]  }
 0x2ab   : > { %v5022_v30 = vpop.f32.mrb[100].mxu1  ;;  %v4917_v36 = vpop.f32.mrb[73].mxu0 }
 0x2ac   : > { %v4918_v22 = vadd.f32 %v4917_v36, %v4916_v10  ;;  %v5023_v25 = vpop.f32.mrb[101].mxu1  ;;  %v4919_v51 = vpop.f32.mrb[74].mxu0  ;;  %v1753_v10 = vld [vmem:[#allocation2 + $0xfa] sm:$0xff] }
 0x2ad   : > { %v5024_v42 = vadd.f32 %v5023_v25, %v5022_v30  ;;  %v5025_v35 = vpop.f32.mrb[102].mxu1  ;;  %v4920_v46 = vpop.f32.mrb[75].mxu0  ;;  %v1775_v25 = vpack.c.bf16 %v1751_v24, %v1750_v16  ;;  %v1758_v16 = vld [vmem:[#allocation2 + $0x13a] sm:$0xff]  ;;  %v1759_v24 = vld [vmem:[#allocation2 + $0x142] sm:$0xff] }
 0x2ae   : > { %v4921_v11 = vadd.f32 %v4920_v46, %v4919_v51  ;;  %v5026_v13 = vpop.f32.mrb[103].mxu1  ;;  %v2610_v6 = vadd.f32 %v4918_v22, %v6623_v23 }
 0x2af   : > { %v6675_v45 = vadd.f32 %v5024_v42, %v2602_v48  ;;  %v5027_v39 = vadd.f32 %v5026_v13, %v5025_v35  ;;  %5357 = vmatmul.mubr.bf16.gmra.mrb[180].mxu0 %v1771_v52  ;;  %v1776_v42 = vpack.c.bf16 %v1753_v10, %v1752_v26  ;;  %v1760_v26 = vld [vmem:[#allocation2 + $0x152] sm:$0xff]  ;;  %v1761_v10 = vld [vmem:[#allocation2 + $0x15a] sm:$0xff] }
 0x2b0   : > { %5360 = vmatprep.mubr.bf16.mxu0 %v1772_v37  ;;  %v2613_v28 = vadd.f32 %v4921_v11, %v6623_v23  ;;  %v1754_v37 = vld [vmem:[#allocation2 + $0x10a] sm:$0xff] }
 0x2b1   : > { %v6677_v44 = vadd.f32 %v5027_v39, %v2605_v61  ;;  %v1755_v61 = vld [vmem:[#allocation2 + $0x112] sm:$0xff] }
 0x2b2   : > { %v4922_v12 = vpop.f32.mrb[76].mxu0 }
 0x2b3   : > { %v5028_v1 = vpop.f32.mrb[104].mxu1  ;;  %v4923_v50 = vpop.f32.mrb[77].mxu0 }
 0x2b4   : > { %v4924_v58 = vadd.f32 %v4923_v50, %v4922_v12  ;;  %v5029_v14 = vpop.f32.mrb[105].mxu1  ;;  %v4925_v41 = vpop.f32.mrb[78].mxu0 }
 0x2b5   : > { %v5030_v7 = vadd.f32 %v5029_v14, %v5028_v1  ;;  %v5031_v18 = vpop.f32.mrb[106].mxu1  ;;  %v4926_v60 = vpop.f32.mrb[79].mxu0 }
 0x2b6   : > { %v4927_v63 = vadd.f32 %v4926_v60, %v4925_v41  ;;  %v5032_v9 = vpop.f32.mrb[107].mxu1  ;;  %v2618_v36 = vadd.f32 %v4924_v58, %v6623_v23  ;;  %v1778_v60 = vpack.c.bf16 %v1757_v19, %v1756_v15  ;;  %v1762_v15 = vld [vmem:[#allocation2 + $0x16a] sm:$0xff]  ;;  %v1763_v19 = vld [vmem:[#allocation2 + $0x172] sm:$0xff] }
 0x2b7   : > { %v6681_v53 = vadd.f32 %v5030_v7, %v2610_v6  ;;  %v5033_v34 = vadd.f32 %v5032_v9, %v5031_v18  ;;  %5361 = vmatmul.mubr.bf16.gmra.mrb[184].mxu0 %v1773_v5  ;;  %v1777_v6 = vpack.c.bf16 %v1755_v61, %v1754_v37  ;;  %v5603_v5 = vld [vmem:[#allocation10 + $0x80] ss:$16 sps:$4 sm:$0xff]  }
 0x2b8   : > { %5364 = vmatprep.mubr.bf16.mxu0 %v1774_v2  ;;  %v2621_v35 = vadd.f32 %v4927_v63, %v6623_v23  ;;  %v5605_v63 = vld [vmem:[#allocation10 + $0x84] ss:$16 sps:$4 sm:$0xff]  }
 0x2b9   : > { %v6683_v8 = vadd.f32 %v5033_v34, %v2613_v28  ;;  %v5608_v28 = vld [vmem:[#allocation10 + $0xc] ss:$16 sps:$4 sm:$0xff]   ;;  %3602 = vmatprep.subr.bf16.mxu1 %v5605_v63  ;;  %v5612_v63 = vld [vmem:[#allocation10 + $0xa0] ss:$16 sps:$4 sm:$0xff]  }
 0x2ba   : > { %v4928_v33 = vpop.f32.mrb[80].mxu0  ;;  %3787 = vmatprep.subr.bf16.mxu0 %v5608_v28  ;;  %3603 = vmatpush1.bf16.msra.mxu1 %v5603_v5 }
 0x2bb   : > { %v5034_v17 = vpop.f32.mrb[108].mxu1  ;;  %v4929_v57 = vpop.f32.mrb[81].mxu0  ;;  %3788 = vmatpush1.bf16.msra.mxu0 %v5606_v21 }
 0x2bc   : > { %v4930_v47 = vadd.f32 %v4929_v57, %v4928_v33  ;;  %v5035_v40 = vpop.f32.mrb[109].mxu1  ;;  %v4931_v30 = vpop.f32.mrb[82].mxu0 }
 0x2bd   : > { %v5036_v38 = vadd.f32 %v5035_v40, %v5034_v17  ;;  %v5037_v49 = vpop.f32.mrb[110].mxu1  ;;  %v4932_v22 = vpop.f32.mrb[83].mxu0 }
 0x2be   : > { %v4933_v51 = vadd.f32 %v4932_v22, %v4931_v30  ;;  %v5038_v48 = vpop.f32.mrb[111].mxu1  ;;  %v2626_v59 = vadd.f32 %v4930_v47, %v6623_v23 }
 0x2bf   : > { %v6687_v46 = vadd.f32 %v5036_v38, %v2618_v36  ;;  %v5039_v52 = vadd.f32 %v5038_v48, %v5037_v49  ;;  %5365 = vmatmul.mubr.bf16.gmra.mrb[188].mxu0 %v1775_v25  ;;  %v1779_v25 = vpack.c.bf16 %v1759_v24, %v1758_v16  ;;  %v5617_v16 = vld [vmem:[#allocation10 + $0x4c] ss:$16 sps:$4 sm:$0xff]  }
 0x2c0   : > { %5368 = vmatprep.mubr.bf16.mxu0 %v1776_v42  ;;  %v2629_v9 = vadd.f32 %v4933_v51, %v6623_v23  ;;  %v1780_v42 = vpack.c.bf16 %v1761_v10, %v1760_v26  ;;  %v1766_v24 = vld [vmem:[#allocation2 + $0x19a] sm:$0xff] }
 0x2c1   : > { %v6689_v11 = vadd.f32 %v5039_v52, %v2621_v35  ;;  %v5609_v35 = vld [vmem:[#allocation10 + $0x28] ss:$16 sps:$4 sm:$0xff]   ;;  %v5611_v52 = vld [vmem:[#allocation10 + $0x2c] ss:$16 sps:$4 sm:$0xff]  }
 0x2c2   : > { %v4934_v13 = vpop.f32.mrb[84].mxu0  ;;  %3789 = vmatprep.subr.bf16.mxu0 %v5611_v52 }
 0x2c3   : > { %v5040_v39 = vpop.f32.mrb[112].mxu1  ;;  %v4935_v12 = vpop.f32.mrb[85].mxu0  ;;  %3790 = vmatpush1.bf16.msra.mxu0 %v5609_v35  ;;  %v5620_v35 = vld [vmem:[#allocation10 + $0x6c] ss:$16 sps:$4 sm:$0xff]  }
 0x2c4   : > { %v4936_v1 = vadd.f32 %v4935_v12, %v4934_v13  ;;  %v5041_v50 = vpop.f32.mrb[113].mxu1  ;;  %v4937_v3 = vpop.f32.mrb[86].mxu0  ;;  %3791 = vmatprep.subr.bf16.mxu0 %v5617_v16 }
 0x2c5   : > { %v5042_v58 = vadd.f32 %v5041_v50, %v5040_v39  ;;  %v5043_v14 = vpop.f32.mrb[114].mxu1  ;;  %v4938_v41 = vpop.f32.mrb[87].mxu0 }
 0x2c6   : > { %v4939_v7 = vadd.f32 %v4938_v41, %v4937_v3  ;;  %v5044_v18 = vpop.f32.mrb[115].mxu1  ;;  %v2634_v36 = vadd.f32 %v4936_v1, %v6623_v23 }
 0x2c7   : > { %v6693_v2 = vadd.f32 %v5042_v58, %v2626_v59  ;;  %v5045_v0 = vadd.f32 %v5044_v18, %v5043_v14  ;;  %5369 = vmatmul.mubr.bf16.gmra.mrb[192].mxu0 %v1777_v6  ;;  %v1781_v18 = vpack.c.bf16 %v1763_v19, %v1762_v15 }
 0x2c8   : > { %5372 = vmatprep.mubr.bf16.mxu0 %v1778_v60  ;;  %v2637_v13 = vadd.f32 %v4939_v7, %v6623_v23 }
 0x2c9   : > { %v6695_v34 = vadd.f32 %v5045_v0, %v2629_v9  ;;  %v5614_v9 = vld [vmem:[#allocation10 + $0xa4] ss:$16 sps:$4 sm:$0xff]  }
 0x2ca   : > { %v4940_v33 = vpop.f32.mrb[88].mxu0  ;;  %3604 = vmatprep.subr.bf16.mxu1 %v5614_v9 }
 0x2cb   : > { %v5046_v17 = vpop.f32.mrb[116].mxu1  ;;  %v4941_v57 = vpop.f32.mrb[89].mxu0  ;;  %3605 = vmatpush1.bf16.msra.mxu1 %v5612_v63 }
 0x2cc   : > { %v4942_v47 = vadd.f32 %v4941_v57, %v4940_v33  ;;  %v5047_v40 = vpop.f32.mrb[117].mxu1  ;;  %v4943_v30 = vpop.f32.mrb[90].mxu0  ;;  %v5615_v33 = vld [vmem:[#allocation10 + $0x48] ss:$16 sps:$4 sm:$0xff]  }
 0x2cd   : > { %v5048_v38 = vadd.f32 %v5047_v40, %v5046_v17  ;;  %v5049_v49 = vpop.f32.mrb[118].mxu1  ;;  %v4944_v22 = vpop.f32.mrb[91].mxu0  ;;  %v1767_v17 = vld [vmem:[#allocation2 + $0x1a2] sm:$0xff]  ;;  %3792 = vmatpush1.bf16.msra.mxu0 %v5615_v33  ;;  %v5626_v33 = vld [vmem:[#allocation10 + $0x8c] ss:$16 sps:$4 sm:$0xff]  }
 0x2ce   : > { %v4945_v51 = vadd.f32 %v4944_v22, %v4943_v30  ;;  %v5050_v48 = vpop.f32.mrb[119].mxu1  ;;  %v2642_v14 = vadd.f32 %v4942_v47, %v6623_v23  ;;  %v1783_v40 = vpack.c.bf16 %v1767_v17, %v1766_v24  ;;  %3793 = vmatprep.subr.bf16.mxu0 %v5620_v35 }
 0x2cf   : > { %v6699_v37 = vadd.f32 %v5048_v38, %v2634_v36  ;;  %v5051_v61 = vadd.f32 %v5050_v48, %v5049_v49  ;;  %5373 = vmatmul.mubr.bf16.gmra.mrb[196].mxu0 %v1779_v25 }
 0x2d0   : > { %5376 = vmatprep.mubr.bf16.mxu0 %v1780_v42  ;;  %v2645_v0 = vadd.f32 %v4945_v51, %v6623_v23  ;;  %v5618_v42 = vld [vmem:[#allocation10 + $0x68] ss:$16 sps:$4 sm:$0xff]  }
 0x2d1   : > { %v6701_v39 = vadd.f32 %v5051_v61, %v2637_v13  ;;  %3794 = vmatpush1.bf16.msra.mxu0 %v5618_v42 }
 0x2d2   : > { %v4946_v12 = vpop.f32.mrb[92].mxu0  ;;  %3795 = vmatprep.subr.bf16.mxu0 %v5626_v33  ;;  %v5635_v33 = vld [vmem:[#allocation10 + $0xcc] ss:$16 sps:$4 sm:$0xff]  }
 0x2d3   : > { %v5052_v1 = vpop.f32.mrb[120].mxu1  ;;  %v4947_v50 = vpop.f32.mrb[93].mxu0 }
 0x2d4   : > { %v4948_v3 = vadd.f32 %v4947_v50, %v4946_v12  ;;  %v5053_v59 = vpop.f32.mrb[121].mxu1  ;;  %v4949_v58 = vpop.f32.mrb[94].mxu0 }
 0x2d5   : > { %v5054_v41 = vadd.f32 %v5053_v59, %v5052_v1  ;;  %v5055_v6 = vpop.f32.mrb[122].mxu1  ;;  %v4950_v7 = vpop.f32.mrb[95].mxu0 }
 0x2d6   : > { %v4951_v60 = vadd.f32 %v4950_v7, %v4949_v58  ;;  %v5056_v5 = vpop.f32.mrb[123].mxu1  ;;  %v2650_v49 = vadd.f32 %v4948_v3, %v6623_v23 }
 0x2d7   : > { %v6705_v21 = vadd.f32 %v5054_v41, %v2642_v14  ;;  %v5057_v28 = vadd.f32 %v5056_v5, %v5055_v6  ;;  %5377 = vmatmul.mubr.bf16.gmra.mrb[200].mxu0 %v1781_v18  ;;  %v5623_v5 = vld [vmem:[#allocation10 + $0xc4] ss:$16 sps:$4 sm:$0xff]  }
 0x2d8   : > { %5380 = vmatprep.mubr.bf16.mxu0 %v6648_v29  ;;  %v2653_v52 = vadd.f32 %v4951_v60, %v6623_v23  ;;  %v5621_v60 = vld [vmem:[#allocation10 + $0xc0] ss:$16 sps:$4 sm:$0xff]   ;;  %3606 = vmatprep.subr.bf16.mxu1 %v5623_v5 }
 0x2d9   : > { %v6708_v57 = vadd.f32 %v5057_v28, %v2645_v0  ;;  %v5624_v28 = vld [vmem:[#allocation10 + $0x88] ss:$16 sps:$4 sm:$0xff]   ;;  %3607 = vmatpush1.bf16.msra.mxu1 %v5621_v60  ;;  %v5632_v60 = vld [vmem:[#allocation10 + $0xe4] ss:$16 sps:$4 sm:$0xff]  }
 0x2da   : > { %v4952_v26 = vpop.f32.mrb[96].mxu0  ;;  %3796 = vmatpush1.bf16.msra.mxu0 %v5624_v28  ;;  %v5633_v28 = vld [vmem:[#allocation10 + $0xc8] ss:$16 sps:$4 sm:$0xff]   ;;  %3608 = vmatprep.subr.bf16.mxu1 %v5632_v60 }
 0x2db   : > { %v5058_v10 = vpop.f32.mrb[124].mxu1  ;;  %v4953_v47 = vpop.f32.mrb[97].mxu0 }
 0x2dc   : > { %v4954_v30 = vadd.f32 %v4953_v47, %v4952_v26  ;;  %v5059_v36 = vpop.f32.mrb[125].mxu1  ;;  %v4955_v38 = vpop.f32.mrb[98].mxu0 }
 0x2dd   : > { %v5060_v22 = vadd.f32 %v5059_v36, %v5058_v10  ;;  %v5061_v25 = vpop.f32.mrb[126].mxu1  ;;  %v4956_v29 = vpop.f32.mrb[99].mxu0 }
 0x2de   : > { %v4957_v51 = vadd.f32 %v4956_v29, %v4955_v38  ;;  %v5062_v48 = vpop.f32.mrb[127].mxu1  ;;  %v2658_v58 = vadd.f32 %v4954_v30, %v6623_v23  ;;  %v5627_v29 = vld [vmem:[#allocation10 + $0xa8] ss:$16 sps:$4 sm:$0xff]  }
 0x2df   : > { %v6712_v13 = vadd.f32 %v5060_v22, %v2650_v49  ;;  %v5063_v61 = vadd.f32 %v5062_v48, %v5061_v25  ;;  %5381 = vmatmul.mubr.bf16.gmra.mrb[204].mxu0 %v1783_v40 }
 0x2e0   : > { %v2661_v63 = vadd.f32 %v4957_v51, %v6623_v23  ;;  %v5629_v51 = vld [vmem:[#allocation10 + $0xac] ss:$16 sps:$4 sm:$0xff]  }
 0x2e1   : > { %v6714_v12 = vadd.f32 %v5063_v61, %v2653_v52  ;;  %3797 = vmatprep.subr.bf16.mxu0 %v5629_v51 }
 0x2e2   : > { %v4958_v15 = vpop.f32.mrb[100].mxu0  ;;  %3798 = vmatpush1.bf16.msra.mxu0 %v5627_v29 }
 0x2e3   : > { %v5064_v19 = vpop.f32.mrb[128].mxu1  ;;  %v4959_v1 = vpop.f32.mrb[101].mxu0  ;;  %3799 = vmatprep.subr.bf16.mxu0 %v5635_v33 }
 0x2e4   : > { %v4960_v50 = vadd.f32 %v4959_v1, %v4958_v15  ;;  %v5065_v3 = vpop.f32.mrb[129].mxu1  ;;  %v4961_v59 = vpop.f32.mrb[102].mxu0 }
 0x2e5   : > { %v5066_v14 = vadd.f32 %v5065_v3, %v5064_v19  ;;  %v5067_v41 = vpop.f32.mrb[130].mxu1  ;;  %v4962_v6 = vpop.f32.mrb[103].mxu0 }
 0x2e6   : > { %v4963_v7 = vadd.f32 %v4962_v6, %v4961_v59  ;;  %v5068_v18 = vpop.f32.mrb[131].mxu1  ;;  %v2666_v30 = vadd.f32 %v4960_v50, %v6623_v23  ;;  %3800 = vmatpush1.bf16.msra.mxu0 %v5633_v28 }
 0x2e7   : > { %v6718_v9 = vadd.f32 %v5066_v14, %v2658_v58  ;;  %v5069_v0 = vadd.f32 %v5068_v18, %v5067_v41  ;;  %v5630_v18 = vld [vmem:[#allocation10 + $0xe0] ss:$16 sps:$4 sm:$0xff]  }
 0x2e8   : > { %v2669_v48 = vadd.f32 %v4963_v7, %v6623_v23  ;;  %3609 = vmatpush1.bf16.msra.mxu1 %v5630_v18 }
 0x2e9   : > { %v6720_v16 = vadd.f32 %v5069_v0, %v2661_v63 }
 0x2ea   : > { %v4964_v24 = vpop.f32.mrb[104].mxu0 }
 0x2eb   : > { %v5070_v17 = vpop.f32.mrb[132].mxu1  ;;  %v4965_v26 = vpop.f32.mrb[105].mxu0 }
 0x2ec   : > { %v4966_v10 = vadd.f32 %v4965_v26, %v4964_v24  ;;  %v5071_v47 = vpop.f32.mrb[133].mxu1  ;;  %v4967_v40 = vpop.f32.mrb[106].mxu0 }
 0x2ed   : > { %v5072_v36 = vadd.f32 %v5071_v47, %v5070_v17  ;;  %v5073_v38 = vpop.f32.mrb[134].mxu1  ;;  %v4968_v49 = vpop.f32.mrb[107].mxu0 }
 0x2ee   : > { %v4969_v22 = vadd.f32 %v4968_v49, %v4967_v40  ;;  %v5074_v25 = vpop.f32.mrb[135].mxu1  ;;  %v2674_v59 = vadd.f32 %v4966_v10, %v6623_v23 }
 0x2ef   : > { %v6724_v42 = vadd.f32 %v5072_v36, %v2666_v30  ;;  %v5075_v35 = vadd.f32 %v5074_v25, %v5073_v38 }
 0x2f0   : > { %v2677_v5 = vadd.f32 %v4969_v22, %v6623_v23 }
 0x2f1   : > { %v6726_v52 = vadd.f32 %v5075_v35, %v2669_v48 }
 0x2f2   : > { %v4970_v61 = vpop.f32.mrb[108].mxu0 }
 0x2f3   : > { %v5076_v15 = vpop.f32.mrb[136].mxu1  ;;  %v4971_v19 = vpop.f32.mrb[109].mxu0 }
 0x2f4   : > { %v4972_v1 = vadd.f32 %v4971_v19, %v4970_v61  ;;  %v5077_v50 = vpop.f32.mrb[137].mxu1  ;;  %v4973_v3 = vpop.f32.mrb[110].mxu0  ;;  %v5638_v19 = vld [vmem:[#allocation10 + $0xec] ss:$16 sps:$4 sm:$0xff]  }
 0x2f5   : > { %v5078_v58 = vadd.f32 %v5077_v50, %v5076_v15  ;;  %v5079_v14 = vpop.f32.mrb[138].mxu1  ;;  %v4974_v41 = vpop.f32.mrb[111].mxu0  ;;  %3801 = vmatprep.subr.bf16.mxu0 %v5638_v19 }
 0x2f6   : > { %v4975_v6 = vadd.f32 %v4974_v41, %v4973_v3  ;;  %v5080_v7 = vpop.f32.mrb[139].mxu1  ;;  %v2682_v36 = vadd.f32 %v4972_v1, %v6623_v23  ;;  %v5636_v3 = vld [vmem:[#allocation10 + $0xe8] ss:$16 sps:$4 sm:$0xff]  }
 0x2f7   : > { %v6730_v63 = vadd.f32 %v5078_v58, %v2674_v59  ;;  %v5081_v0 = vadd.f32 %v5080_v7, %v5079_v14  ;;  %3802 = vmatpush1.bf16.msra.mxu0 %v5636_v3 }
 0x2f8   : > { %v2685_v48 = vadd.f32 %v4975_v6, %v6623_v23  ;;  %v5970_v6 = vmov 0  }
 0x2f9   : > { %v6732_v24 = vadd.f32 %v5081_v0, %v2677_v5  ;;  %3626 = vmatprep.mubr.bf16.mxu1 %v5970_v6  ;;  %3819 = vmatprep.mubr.bf16.mxu0 %v5970_v6 }
 0x2fa   : > { %v5104_v17 = vpop.f32.mrb[112].mxu0 }
 0x2fb   : > { %v5082_v26 = vpop.f32.mrb[140].mxu1  ;;  %v5105_v10 = vpop.f32.mrb[113].mxu0 }
 0x2fc   : > { %v5083_v47 = vpop.f32.mrb[141].mxu1  ;;  %v5106_v40 = vadd.f32 %v5105_v10, %v5104_v17  ;;  %v5107_v30 = vpop.f32.mrb[114].mxu0 }
 0x2fd   : > { %v5084_v38 = vadd.f32 %v5083_v47, %v5082_v26  ;;  %v5085_v49 = vpop.f32.mrb[142].mxu1  ;;  %v5108_v22 = vpop.f32.mrb[115].mxu0 }
 0x2fe   : > { %v2884_v25 = vadd.f32 %v5106_v40, %v6629_v55  ;;  %v5086_v29 = vpop.f32.mrb[143].mxu1  ;;  %v5109_v51 = vadd.f32 %v5108_v22, %v5107_v30 }
 0x2ff   : > { %v6737_v35 = vadd.f32 %v5084_v38, %v2682_v36  ;;  %v5087_v61 = vadd.f32 %v5086_v29, %v5085_v49 }
 0x300   : > { %v2887_v15 = vadd.f32 %v5109_v51, %v6634_v54 }
 0x301   : > { %v6740_v50 = vadd.f32 %v5087_v61, %v2685_v48 }
 0x302   : > { %v5110_v59 = vpop.f32.mrb[116].mxu0 }
 0x303   : > { %v5216_v1 = vpop.f32.mrb[144].mxu1  ;;  %v5111_v58 = vpop.f32.mrb[117].mxu0 }
 0x304   : > { %v5112_v14 = vadd.f32 %v5111_v58, %v5110_v59  ;;  %v5217_v55 = vpop.f32.mrb[145].mxu1  ;;  %v5113_v41 = vpop.f32.mrb[118].mxu0 }
 0x305   : > { %v5218_v7 = vadd.f32 %v5217_v55, %v5216_v1  ;;  %v5219_v18 = vpop.f32.mrb[146].mxu1  ;;  %v5114_v23 = vpop.f32.mrb[119].mxu0 }
 0x306   : > { %v2892_v54 = vadd.f32 %v5112_v14, %v6639_v4  ;;  %v5115_v60 = vadd.f32 %v5114_v23, %v5113_v41  ;;  %v5220_v5 = vpop.f32.mrb[147].mxu1 }
 0x307   : > { %v5221_v0 = vadd.f32 %v5220_v5, %v5219_v18  ;;  %v6745_v28 = vadd.f32 %v5218_v7, %v2884_v25 }
 0x308   : > { %v2895_v33 = vadd.f32 %v5115_v60, %v6644_v62 }
 0x309   : > { %v6748_v17 = vadd.f32 %v5221_v0, %v2887_v15 }
 0x30a   : > { %v5116_v26 = vpop.f32.mrb[120].mxu0 }
 0x30b   : > { %v5222_v10 = vpop.f32.mrb[148].mxu1  ;;  %v5117_v47 = vpop.f32.mrb[121].mxu0 }
 0x30c   : > { %v5118_v40 = vadd.f32 %v5117_v47, %v5116_v26  ;;  %v5223_v30 = vpop.f32.mrb[149].mxu1  ;;  %v5119_v36 = vpop.f32.mrb[122].mxu0 }
 0x30d   : > { %v5224_v38 = vadd.f32 %v5223_v30, %v5222_v10  ;;  %v5225_v49 = vpop.f32.mrb[150].mxu1  ;;  %v5120_v22 = vpop.f32.mrb[123].mxu0 }
 0x30e   : > { %v2900_v4 = vadd.f32 %v5118_v40, %v6651_v56  ;;  %v5121_v29 = vadd.f32 %v5120_v22, %v5119_v36  ;;  %v5226_v51 = vpop.f32.mrb[151].mxu1 }
 0x30f   : > { %v5227_v48 = vadd.f32 %v5226_v51, %v5225_v49  ;;  %v6751_v25 = vadd.f32 %v5224_v38, %v2892_v54 }
 0x310   : > { %v2903_v62 = vadd.f32 %v5121_v29, %v6656_v32 }
 0x311   : > { %v6754_v61 = vadd.f32 %v5227_v48, %v2895_v33 }
 0x312   : > { %v5122_v15 = vpop.f32.mrb[124].mxu0 }
 0x313   : > { %v5228_v19 = vpop.f32.mrb[152].mxu1  ;;  %v5123_v3 = vpop.f32.mrb[125].mxu0 }
 0x314   : > { %v5124_v59 = vadd.f32 %v5123_v3, %v5122_v15  ;;  %v5229_v1 = vpop.f32.mrb[153].mxu1  ;;  %v5125_v58 = vpop.f32.mrb[126].mxu0 }
 0x315   : > { %v5230_v14 = vadd.f32 %v5229_v1, %v5228_v19  ;;  %v5231_v55 = vpop.f32.mrb[154].mxu1  ;;  %v5126_v41 = vpop.f32.mrb[127].mxu0 }
 0x316   : > { %v2908_v56 = vadd.f32 %v5124_v59, %v6661_v20  ;;  %v5127_v7 = vadd.f32 %v5126_v41, %v5125_v58  ;;  %v5232_v18 = vpop.f32.mrb[155].mxu1 }
 0x317   : > { %v5233_v23 = vadd.f32 %v5232_v18, %v5231_v55  ;;  %v6757_v54 = vadd.f32 %v5230_v14, %v2900_v4 }
 0x318   : > { %v2911_v32 = vadd.f32 %v5127_v7, %v6665_v31 }
 0x319   : > { %v6760_v60 = vadd.f32 %v5233_v23, %v2903_v62 }
 0x31a   : > { %v5128_v5 = vpop.f32.mrb[128].mxu0 }
 0x31b   : > { %v5234_v0 = vpop.f32.mrb[156].mxu1  ;;  %v5129_v33 = vpop.f32.mrb[129].mxu0 }
 0x31c   : > { %v5130_v26 = vadd.f32 %v5129_v33, %v5128_v5  ;;  %v5235_v10 = vpop.f32.mrb[157].mxu1  ;;  %v5131_v47 = vpop.f32.mrb[130].mxu0 }
 0x31d   : > { %v5236_v40 = vadd.f32 %v5235_v10, %v5234_v0  ;;  %v5237_v30 = vpop.f32.mrb[158].mxu1  ;;  %v5132_v36 = vpop.f32.mrb[131].mxu0 }
 0x31e   : > { %v2916_v20 = vadd.f32 %v5130_v26, %v6669_v43  ;;  %v5133_v38 = vadd.f32 %v5132_v36, %v5131_v47  ;;  %v5238_v49 = vpop.f32.mrb[159].mxu1 }
 0x31f   : > { %v5239_v22 = vadd.f32 %v5238_v49, %v5237_v30  ;;  %v6763_v4 = vadd.f32 %v5236_v40, %v2908_v56 }
 0x320   : > { %v2919_v31 = vadd.f32 %v5133_v38, %v6671_v27 }
 0x321   : > { %v6766_v29 = vadd.f32 %v5239_v22, %v2911_v32 }
 0x322   : > { %v5134_v51 = vpop.f32.mrb[132].mxu0 }
 0x323   : > { %v5240_v48 = vpop.f32.mrb[160].mxu1  ;;  %v5135_v62 = vpop.f32.mrb[133].mxu0 }
 0x324   : > { %v5136_v15 = vadd.f32 %v5135_v62, %v5134_v51  ;;  %v5241_v19 = vpop.f32.mrb[161].mxu1  ;;  %v5137_v3 = vpop.f32.mrb[134].mxu0 }
 0x325   : > { %v5242_v59 = vadd.f32 %v5241_v19, %v5240_v48  ;;  %v5243_v1 = vpop.f32.mrb[162].mxu1  ;;  %v5138_v58 = vpop.f32.mrb[135].mxu0 }
 0x326   : > { %v2924_v43 = vadd.f32 %v5136_v15, %v6675_v45  ;;  %v5139_v14 = vadd.f32 %v5138_v58, %v5137_v3  ;;  %v5244_v55 = vpop.f32.mrb[163].mxu1 }
 0x327   : > { %v5245_v41 = vadd.f32 %v5244_v55, %v5243_v1  ;;  %v6769_v56 = vadd.f32 %v5242_v59, %v2916_v20 }
 0x328   : > { %v2927_v27 = vadd.f32 %v5139_v14, %v6677_v44 }
 0x329   : > { %v6772_v7 = vadd.f32 %v5245_v41, %v2919_v31 }
 0x32a   : > { %v5140_v18 = vpop.f32.mrb[136].mxu0 }
 0x32b   : > { %v5246_v23 = vpop.f32.mrb[164].mxu1  ;;  %v5141_v32 = vpop.f32.mrb[137].mxu0 }
 0x32c   : > { %v5142_v5 = vadd.f32 %v5141_v32, %v5140_v18  ;;  %v5247_v0 = vpop.f32.mrb[165].mxu1  ;;  %v5143_v33 = vpop.f32.mrb[138].mxu0 }
 0x32d   : > { %v5248_v26 = vadd.f32 %v5247_v0, %v5246_v23  ;;  %v5249_v10 = vpop.f32.mrb[166].mxu1  ;;  %v5144_v47 = vpop.f32.mrb[139].mxu0 }
 0x32e   : > { %v2932_v45 = vadd.f32 %v5142_v5, %v6681_v53  ;;  %v5145_v40 = vadd.f32 %v5144_v47, %v5143_v33  ;;  %v5250_v30 = vpop.f32.mrb[167].mxu1 }
 0x32f   : > { %v5251_v36 = vadd.f32 %v5250_v30, %v5249_v10  ;;  %v6775_v20 = vadd.f32 %v5248_v26, %v2924_v43 }
 0x330   : > { %v2935_v44 = vadd.f32 %v5145_v40, %v6683_v8 }
 0x331   : > { %v6778_v38 = vadd.f32 %v5251_v36, %v2927_v27 }
 0x332   : > { %v5146_v49 = vpop.f32.mrb[140].mxu0 }
 0x333   : > { %v5252_v22 = vpop.f32.mrb[168].mxu1  ;;  %v5147_v31 = vpop.f32.mrb[141].mxu0 }
 0x334   : > { %v5148_v51 = vadd.f32 %v5147_v31, %v5146_v49  ;;  %v5253_v48 = vpop.f32.mrb[169].mxu1  ;;  %v5149_v62 = vpop.f32.mrb[142].mxu0 }
 0x335   : > { %v5254_v15 = vadd.f32 %v5253_v48, %v5252_v22  ;;  %v5255_v19 = vpop.f32.mrb[170].mxu1  ;;  %v5150_v3 = vpop.f32.mrb[143].mxu0 }
 0x336   : > { %v2940_v53 = vadd.f32 %v5148_v51, %v6687_v46  ;;  %v5151_v59 = vadd.f32 %v5150_v3, %v5149_v62  ;;  %v5256_v1 = vpop.f32.mrb[171].mxu1 }
 0x337   : > { %v5257_v58 = vadd.f32 %v5256_v1, %v5255_v19  ;;  %v6781_v43 = vadd.f32 %v5254_v15, %v2932_v45 }
 0x338   : > { %v2943_v8 = vadd.f32 %v5151_v59, %v6689_v11 }
 0x339   : > { %v6784_v14 = vadd.f32 %v5257_v58, %v2935_v44 }
 0x33a   : > { %v5152_v55 = vpop.f32.mrb[144].mxu0 }
 0x33b   : > { %v5258_v41 = vpop.f32.mrb[172].mxu1  ;;  %v5153_v27 = vpop.f32.mrb[145].mxu0 }
 0x33c   : > { %v5154_v18 = vadd.f32 %v5153_v27, %v5152_v55  ;;  %v5259_v23 = vpop.f32.mrb[173].mxu1  ;;  %v5155_v32 = vpop.f32.mrb[146].mxu0 }
 0x33d   : > { %v5260_v5 = vadd.f32 %v5259_v23, %v5258_v41  ;;  %v5261_v0 = vpop.f32.mrb[174].mxu1  ;;  %v5156_v33 = vpop.f32.mrb[147].mxu0 }
 0x33e   : > { %v2948_v46 = vadd.f32 %v5154_v18, %v6693_v2  ;;  %v5157_v26 = vadd.f32 %v5156_v33, %v5155_v32  ;;  %v5262_v10 = vpop.f32.mrb[175].mxu1 }
 0x33f   : > { %v5263_v47 = vadd.f32 %v5262_v10, %v5261_v0  ;;  %v6787_v45 = vadd.f32 %v5260_v5, %v2940_v53 }
 0x340   : > { %v2951_v11 = vadd.f32 %v5157_v26, %v6695_v34 }
 0x341   : > { %v6790_v40 = vadd.f32 %v5263_v47, %v2943_v8 }
 0x342   : > { %v5158_v30 = vpop.f32.mrb[148].mxu0 }
 0x343   : > { %v5264_v36 = vpop.f32.mrb[176].mxu1  ;;  %v5159_v44 = vpop.f32.mrb[149].mxu0 }
 0x344   : > { %v5160_v49 = vadd.f32 %v5159_v44, %v5158_v30  ;;  %v5265_v22 = vpop.f32.mrb[177].mxu1  ;;  %v5161_v31 = vpop.f32.mrb[150].mxu0 }
 0x345   : > { %v5266_v51 = vadd.f32 %v5265_v22, %v5264_v36  ;;  %v5267_v48 = vpop.f32.mrb[178].mxu1  ;;  %v5162_v62 = vpop.f32.mrb[151].mxu0 }
 0x346   : > { %v2956_v2 = vadd.f32 %v5160_v49, %v6699_v37  ;;  %v5163_v15 = vadd.f32 %v5162_v62, %v5161_v31  ;;  %v5268_v19 = vpop.f32.mrb[179].mxu1 }
 0x347   : > { %v5269_v3 = vadd.f32 %v5268_v19, %v5267_v48  ;;  %v6793_v53 = vadd.f32 %v5266_v51, %v2948_v46 }
 0x348   : > { %v2959_v34 = vadd.f32 %v5163_v15, %v6701_v39 }
 0x349   : > { %v6796_v59 = vadd.f32 %v5269_v3, %v2951_v11 }
 0x34a   : > { %v5164_v1 = vpop.f32.mrb[152].mxu0 }
 0x34b   : > { %v5270_v58 = vpop.f32.mrb[180].mxu1  ;;  %v5165_v8 = vpop.f32.mrb[153].mxu0 }
 0x34c   : > { %v5166_v55 = vadd.f32 %v5165_v8, %v5164_v1  ;;  %v5271_v41 = vpop.f32.mrb[181].mxu1  ;;  %v5167_v27 = vpop.f32.mrb[154].mxu0 }
 0x34d   : > { %v5272_v18 = vadd.f32 %v5271_v41, %v5270_v58  ;;  %v5273_v23 = vpop.f32.mrb[182].mxu1  ;;  %v5168_v32 = vpop.f32.mrb[155].mxu0 }
 0x34e   : > { %v2964_v37 = vadd.f32 %v5166_v55, %v6705_v21  ;;  %v5169_v5 = vadd.f32 %v5168_v32, %v5167_v27  ;;  %v5274_v0 = vpop.f32.mrb[183].mxu1 }
 0x34f   : > { %v5275_v33 = vadd.f32 %v5274_v0, %v5273_v23  ;;  %v6799_v46 = vadd.f32 %v5272_v18, %v2956_v2 }
 0x350   : > { %v2967_v39 = vadd.f32 %v5169_v5, %v6708_v57 }
 0x351   : > { %v6802_v26 = vadd.f32 %v5275_v33, %v2959_v34 }
 0x352   : > { %v5170_v10 = vpop.f32.mrb[156].mxu0 }
 0x353   : > { %v5276_v47 = vpop.f32.mrb[184].mxu1  ;;  %v5171_v11 = vpop.f32.mrb[157].mxu0 }
 0x354   : > { %v5172_v30 = vadd.f32 %v5171_v11, %v5170_v10  ;;  %v5277_v36 = vpop.f32.mrb[185].mxu1  ;;  %v5173_v44 = vpop.f32.mrb[158].mxu0 }
 0x355   : > { %v5278_v49 = vadd.f32 %v5277_v36, %v5276_v47  ;;  %v5279_v22 = vpop.f32.mrb[186].mxu1  ;;  %v5174_v31 = vpop.f32.mrb[159].mxu0 }
 0x356   : > { %v2972_v21 = vadd.f32 %v5172_v30, %v6712_v13  ;;  %v5175_v51 = vadd.f32 %v5174_v31, %v5173_v44  ;;  %v5280_v48 = vpop.f32.mrb[187].mxu1 }
 0x357   : > { %v5281_v62 = vadd.f32 %v5280_v48, %v5279_v22  ;;  %v6805_v2 = vadd.f32 %v5278_v49, %v2964_v37 }
 0x358   : > { %v2975_v57 = vadd.f32 %v5175_v51, %v6714_v12 }
 0x359   : > { %v6808_v15 = vadd.f32 %v5281_v62, %v2967_v39 }
 0x35a   : > { %v5176_v19 = vpop.f32.mrb[160].mxu0 }
 0x35b   : > { %v5282_v3 = vpop.f32.mrb[188].mxu1  ;;  %v5177_v34 = vpop.f32.mrb[161].mxu0 }
 0x35c   : > { %v5178_v1 = vadd.f32 %v5177_v34, %v5176_v19  ;;  %v5283_v58 = vpop.f32.mrb[189].mxu1  ;;  %v5179_v8 = vpop.f32.mrb[162].mxu0 }
 0x35d   : > { %v5284_v55 = vadd.f32 %v5283_v58, %v5282_v3  ;;  %v5285_v41 = vpop.f32.mrb[190].mxu1  ;;  %v5180_v27 = vpop.f32.mrb[163].mxu0 }
 0x35e   : > { %v2980_v13 = vadd.f32 %v5178_v1, %v6718_v9  ;;  %v5181_v18 = vadd.f32 %v5180_v27, %v5179_v8  ;;  %v5286_v23 = vpop.f32.mrb[191].mxu1 }
 0x35f   : > { %v5287_v32 = vadd.f32 %v5286_v23, %v5285_v41  ;;  %v6811_v37 = vadd.f32 %v5284_v55, %v2972_v21 }
 0x360   : > { %v2983_v12 = vadd.f32 %v5181_v18, %v6720_v16 }
 0x361   : > { %v6814_v5 = vadd.f32 %v5287_v32, %v2975_v57 }
 0x362   : > { %v5182_v0 = vpop.f32.mrb[164].mxu0 }
 0x363   : > { %v5288_v33 = vpop.f32.mrb[192].mxu1  ;;  %v5183_v39 = vpop.f32.mrb[165].mxu0 }
 0x364   : > { %v5184_v10 = vadd.f32 %v5183_v39, %v5182_v0  ;;  %v5289_v47 = vpop.f32.mrb[193].mxu1  ;;  %v5185_v11 = vpop.f32.mrb[166].mxu0 }
 0x365   : > { %v5290_v30 = vadd.f32 %v5289_v47, %v5288_v33  ;;  %v5291_v36 = vpop.f32.mrb[194].mxu1  ;;  %v5186_v44 = vpop.f32.mrb[167].mxu0 }
 0x366   : > { %v2988_v9 = vadd.f32 %v5184_v10, %v6724_v42  ;;  %v5187_v49 = vadd.f32 %v5186_v44, %v5185_v11  ;;  %v5292_v22 = vpop.f32.mrb[195].mxu1 }
 0x367   : > { %v5293_v31 = vadd.f32 %v5292_v22, %v5291_v36  ;;  %v6817_v21 = vadd.f32 %v5290_v30, %v2980_v13 }
 0x368   : > { %v2991_v16 = vadd.f32 %v5187_v49, %v6726_v52 }
 0x369   : > { %v6820_v51 = vadd.f32 %v5293_v31, %v2983_v12 }
 0x36a   : > { %v5188_v48 = vpop.f32.mrb[168].mxu0 }
 0x36b   : > { %v5294_v62 = vpop.f32.mrb[196].mxu1  ;;  %v5189_v57 = vpop.f32.mrb[169].mxu0 }
 0x36c   : > { %v5190_v19 = vadd.f32 %v5189_v57, %v5188_v48  ;;  %v5295_v3 = vpop.f32.mrb[197].mxu1  ;;  %v5191_v34 = vpop.f32.mrb[170].mxu0 }
 0x36d   : > { %v5296_v1 = vadd.f32 %v5295_v3, %v5294_v62  ;;  %v5297_v58 = vpop.f32.mrb[198].mxu1  ;;  %v5192_v8 = vpop.f32.mrb[171].mxu0 }
 0x36e   : > { %v2996_v42 = vadd.f32 %v5190_v19, %v6730_v63  ;;  %v5193_v55 = vadd.f32 %v5192_v8, %v5191_v34  ;;  %v5298_v41 = vpop.f32.mrb[199].mxu1 }
 0x36f   : > { %v5299_v27 = vadd.f32 %v5298_v41, %v5297_v58  ;;  %v6823_v13 = vadd.f32 %v5296_v1, %v2988_v9 }
 0x370   : > { %v2999_v52 = vadd.f32 %v5193_v55, %v6732_v24 }
 0x371   : > { %v6826_v18 = vadd.f32 %v5299_v27, %v2991_v16 }
 0x372   : > { %v5194_v23 = vpop.f32.mrb[172].mxu0 }
 0x373   : > { %v5300_v32 = vpop.f32.mrb[200].mxu1  ;;  %v5195_v12 = vpop.f32.mrb[173].mxu0 }
 0x374   : > { %v5196_v0 = vadd.f32 %v5195_v12, %v5194_v23  ;;  %v5301_v33 = vpop.f32.mrb[201].mxu1  ;;  %v5197_v39 = vpop.f32.mrb[174].mxu0 }
 0x375   : > { %v5302_v10 = vadd.f32 %v5301_v33, %v5300_v32  ;;  %v5303_v47 = vpop.f32.mrb[202].mxu1  ;;  %v5198_v11 = vpop.f32.mrb[175].mxu0 }
 0x376   : > { %v3004_v63 = vadd.f32 %v5196_v0, %v6737_v35  ;;  %v5199_v30 = vadd.f32 %v5198_v11, %v5197_v39  ;;  %v5304_v36 = vpop.f32.mrb[203].mxu1 }
 0x377   : > { %v5305_v44 = vadd.f32 %v5304_v36, %v5303_v47  ;;  %v6829_v9 = vadd.f32 %v5302_v10, %v2996_v42 }
 0x378   : > { %v3007_v24 = vadd.f32 %v5199_v30, %v6740_v50 }
 0x379   : > { %v6832_v49 = vadd.f32 %v5305_v44, %v2999_v52 }
 0x37a   : > { %v5354_v22 = vpop.f32.mrb[176].mxu0 }
 0x37b   : > { %v5306_v31 = vpop.f32.mrb[204].mxu1  ;;  %v3214_v16 = vadd.f32 %v5354_v22, %v6751_v25  ;;  %v3205_v48 = vpop.f32.mrb[177].mxu0 }
 0x37c   : > { %v5307_v62 = vpop.f32.mrb[205].mxu1  ;;  %v3206_v57 = vadd.f32 %v3205_v48, %v6745_v28  ;;  %v5355_v19 = vpop.f32.mrb[178].mxu0 }
 0x37d   : > { %v5308_v3 = vadd.f32 %v5307_v62, %v5306_v31  ;;  %v5309_v35 = vpop.f32.mrb[206].mxu1  ;;  %v3217_v34 = vadd.f32 %v5355_v19, %v6754_v61  ;;  %v3208_v1 = vpop.f32.mrb[179].mxu0  ;;  %v3334_v50 = vmax.f32 %v3214_v16, 0.0 }
 0x37e   : > { %v5310_v58 = vpop.f32.mrb[207].mxu1  ;;  %v3209_v8 = vadd.f32 %v3208_v1, %v6748_v17  ;;  %v3332_v27 = vmax.f32 %v3206_v57, 0.0 }
 0x37f   : > { %v3335_v42 = vmax.f32 %v3217_v34, 0.0  ;;  %v5311_v55 = vadd.f32 %v5310_v58, %v5309_v35  ;;  %v6838_v41 = vadd.f32 %v5308_v3, %v3004_v63 }
 0x380   : > { %v3333_v25 = vmax.f32 %v3209_v8, 0.0 }
 0x381   : > { %v3365_v52 = vpack.c.bf16 %v3335_v42, %v3334_v50  ;;  %v6840_v23 = vadd.f32 %v5311_v55, %v3007_v24 }
 0x382   : > { %v3364_v28 = vpack.c.bf16 %v3333_v25, %v3332_v27  ;;  %v5358_v32 = vpop.f32.mrb[180].mxu0 }
 0x383   : > { %v3230_v12 = vadd.f32 %v5358_v32, %v6763_v4  ;;  %v3221_v0 = vpop.f32.mrb[181].mxu0 }
 0x384   : > { %v3222_v61 = vadd.f32 %v3221_v0, %v6757_v54  ;;  %v5359_v33 = vpop.f32.mrb[182].mxu0  ;;  %3627 = vmatmul.mubr.bf16.vlgmr.msra.gmra.mrb[208].mxu1 %v3364_v28  ;;  %3820 = vmatmul.mubr.bf16.vlgmr.msra.gmra.mrb[208].mxu0 %v3364_v28 }
 0x385   : > { %v3233_v17 = vadd.f32 %v5359_v33, %v6766_v29  ;;  %v3224_v39 = vpop.f32.mrb[183].mxu0  ;;  %3636 = vmatprep.mubr.bf16.mxu1 %v5970_v6  ;;  %3829 = vmatprep.mubr.bf16.mxu0 %v5970_v6  ;;  %v3338_v47 = vmax.f32 %v3230_v12, 0.0 }
 0x386   : > { %v3225_v10 = vadd.f32 %v3224_v39, %v6760_v60  ;;  %v3336_v63 = vmax.f32 %v3222_v61, 0.0 }
 0x387   : > { %v3339_v11 = vmax.f32 %v3233_v17, 0.0 }
 0x388   : > { %v3337_v30 = vmax.f32 %v3225_v10, 0.0 }
 0x389   : > { %v3367_v4 = vpack.c.bf16 %v3339_v11, %v3338_v47 }
 0x38a   : > { %v3366_v36 = vpack.c.bf16 %v3337_v30, %v3336_v63  ;;  %v5362_v44 = vpop.f32.mrb[184].mxu0 }
 0x38b   : > { %v3246_v54 = vadd.f32 %v5362_v44, %v6775_v20  ;;  %v3237_v24 = vpop.f32.mrb[185].mxu0 }
 0x38c   : > { %v3238_v22 = vadd.f32 %v3237_v24, %v6769_v56  ;;  %v5363_v29 = vpop.f32.mrb[186].mxu0  ;;  %3637 = vmatmul.mubr.bf16.gmra.mrb[212].mxu1 %v3365_v52  ;;  %3830 = vmatmul.mubr.bf16.gmra.mrb[212].mxu0 %v3365_v52 }
 0x38d   : > { %v3249_v31 = vadd.f32 %v5363_v29, %v6778_v38  ;;  %v3240_v16 = vpop.f32.mrb[187].mxu0  ;;  %3646 = vmatprep.mubr.bf16.mxu1 %v5970_v6  ;;  %3839 = vmatprep.mubr.bf16.mxu0 %v5970_v6  ;;  %v3342_v48 = vmax.f32 %v3246_v54, 0.0 }
 0x38e   : > { %v3241_v60 = vadd.f32 %v3240_v16, %v6772_v7  ;;  %v3340_v57 = vmax.f32 %v3238_v22, 0.0 }
 0x38f   : > { %v3343_v62 = vmax.f32 %v3249_v31, 0.0 }
 0x390   : > { %v3341_v19 = vmax.f32 %v3241_v60, 0.0 }
 0x391   : > { %v3369_v20 = vpack.c.bf16 %v3343_v62, %v3342_v48 }
 0x392   : > { %v3368_v3 = vpack.c.bf16 %v3341_v19, %v3340_v57  ;;  %v5366_v35 = vpop.f32.mrb[188].mxu0 }
 0x393   : > { %v3262_v56 = vadd.f32 %v5366_v35, %v6787_v45  ;;  %v3253_v34 = vpop.f32.mrb[189].mxu0 }
 0x394   : > { %v3254_v1 = vadd.f32 %v3253_v34, %v6781_v43  ;;  %v5367_v38 = vpop.f32.mrb[190].mxu0  ;;  %3647 = vmatmul.mubr.bf16.gmra.mrb[216].mxu1 %v3366_v36  ;;  %3840 = vmatmul.mubr.bf16.gmra.mrb[216].mxu0 %v3366_v36 }
 0x395   : > { %v3265_v58 = vadd.f32 %v5367_v38, %v6790_v40  ;;  %v3256_v8 = vpop.f32.mrb[191].mxu0  ;;  %3656 = vmatprep.mubr.bf16.mxu1 %v5970_v6  ;;  %3849 = vmatprep.mubr.bf16.mxu0 %v5970_v6  ;;  %v3346_v50 = vmax.f32 %v3262_v56, 0.0 }
 0x396   : > { %v3257_v7 = vadd.f32 %v3256_v8, %v6784_v14  ;;  %v3344_v55 = vmax.f32 %v3254_v1, 0.0 }
 0x397   : > { %v3347_v42 = vmax.f32 %v3265_v58, 0.0 }
 0x398   : > { %v3345_v27 = vmax.f32 %v3257_v7, 0.0 }
 0x399   : > { %v6860_v45 = vpack.c.bf16 %v3347_v42, %v3346_v50 }
 0x39a   : > { %v3370_v25 = vpack.c.bf16 %v3345_v27, %v3344_v55  ;;  %v5370_v43 = vpop.f32.mrb[192].mxu0  ;;  %v3412_v27 = vld [vmem:[%s7364_s6] sm:$0xf] }
 0x39b   : > { %v3278_v52 = vadd.f32 %v5370_v43, %v6799_v46  ;;  %v3269_v28 = vpop.f32.mrb[193].mxu0 }
 0x39c   : > { %v3270_v40 = vadd.f32 %v3269_v28, %v6793_v53  ;;  %v5371_v32 = vpop.f32.mrb[194].mxu0  ;;  %3657 = vmatmul.mubr.bf16.gmra.mrb[220].mxu1 %v3367_v4  ;;  %3850 = vmatmul.mubr.bf16.gmra.mrb[220].mxu0 %v3367_v4 }
 0x39d   : > { %v3281_v12 = vadd.f32 %v5371_v32, %v6802_v26  ;;  %v3272_v0 = vpop.f32.mrb[195].mxu0  ;;  %3666 = vmatprep.mubr.bf16.mxu1 %v5970_v6  ;;  %3859 = vmatprep.mubr.bf16.mxu0 %v5970_v6  ;;  %v3350_v61 = vmax.f32 %v3278_v52, 0.0 }
 0x39e   : > { %v3273_v14 = vadd.f32 %v3272_v0, %v6796_v59  ;;  %v3348_v17 = vmax.f32 %v3270_v40, 0.0 }
 0x39f   : > { %v3351_v33 = vmax.f32 %v3281_v12, 0.0 }
 0x3a0   : > { %v3349_v39 = vmax.f32 %v3273_v14, 0.0 }
 0x3a1   : > { %v6868_v46 = vpack.c.bf16 %v3351_v33, %v3350_v61 }
 0x3a2   : > { %v3372_v10 = vpack.c.bf16 %v3349_v39, %v3348_v17  ;;  %v5374_v53 = vpop.f32.mrb[196].mxu0 }
 0x3a3   : > { %v3294_v47 = vadd.f32 %v5374_v53, %v6811_v37  ;;  %v3285_v11 = vpop.f32.mrb[197].mxu0 }
 0x3a4   : > { %v3286_v26 = vadd.f32 %v3285_v11, %v6805_v2  ;;  %v5375_v63 = vpop.f32.mrb[198].mxu0  ;;  %3667 = vmatmul.mubr.bf16.gmra.mrb[224].mxu1 %v3368_v3  ;;  %3860 = vmatmul.mubr.bf16.gmra.mrb[224].mxu0 %v3368_v3 }
 0x3a5   : > { %v3297_v30 = vadd.f32 %v5375_v63, %v6814_v5  ;;  %v3288_v4 = vpop.f32.mrb[199].mxu0  ;;  %3676 = vmatprep.mubr.bf16.mxu1 %v5970_v6  ;;  %3869 = vmatprep.mubr.bf16.mxu0 %v5970_v6  ;;  %v3354_v36 = vmax.f32 %v3294_v47, 0.0  ;;  %v5641_v47 = vld [vmem:[%s6213_s12 + $0x10] sm:$0xff] }
 0x3a6   : > { %v3289_v59 = vadd.f32 %v3288_v4, %v6808_v15  ;;  %v3352_v54 = vmax.f32 %v3286_v26, 0.0 }
 0x3a7   : > { %v3355_v44 = vmax.f32 %v3297_v30, 0.0 }
 0x3a8   : > { %v3353_v24 = vmax.f32 %v3289_v59, 0.0  ;;  %v5642_v59 = vld [vmem:[%s6213_s12 + $0x8] sm:$0xff] }
 0x3a9   : > { %v3375_v37 = vpack.c.bf16 %v3355_v44, %v3354_v36  ;;  %v5643_v44 = vld [vmem:[%s6213_s12 + $0x18] sm:$0xff] }
 0x3aa   : > { %v3374_v22 = vpack.c.bf16 %v3353_v24, %v3352_v54  ;;  %v5378_v29 = vpop.f32.mrb[200].mxu0 }
 0x3ab   : > { %v3310_v2 = vadd.f32 %v5378_v29, %v6823_v13  ;;  %v3301_v31 = vpop.f32.mrb[201].mxu0 }
 0x3ac   : > { %v3302_v16 = vadd.f32 %v3301_v31, %v6817_v21  ;;  %v5379_v5 = vpop.f32.mrb[202].mxu0  ;;  %3677 = vmatmul.mubr.bf16.gmra.mrb[228].mxu1 %v3369_v20  ;;  %3870 = vmatmul.mubr.bf16.gmra.mrb[228].mxu0 %v3369_v20 }
 0x3ad   : > { %v3313_v60 = vadd.f32 %v5379_v5, %v6826_v18  ;;  %v3304_v48 = vpop.f32.mrb[203].mxu0  ;;  %3686 = vmatprep.mubr.bf16.mxu1 %v5970_v6  ;;  %3879 = vmatprep.mubr.bf16.mxu0 %v5970_v6  ;;  %v3358_v62 = vmax.f32 %v3310_v2, 0.0  ;;  %v5644_v2 = vld [vmem:[%s6213_s12 + $0x20] sm:$0xff] }
 0x3ae   : > { %v3305_v15 = vadd.f32 %v3304_v48, %v6820_v51  ;;  %v3356_v19 = vmax.f32 %v3302_v16, 0.0  ;;  %v5645_v16 = vld [vmem:[%s6213_s12 + $0x30] sm:$0xff] }
 0x3af   : > { %v3359_v57 = vmax.f32 %v3313_v60, 0.0 }
 0x3b0   : > { %v3357_v3 = vmax.f32 %v3305_v15, 0.0  ;;  %v5646_v15 = vld [vmem:[%s6213_s12 + $0x28] sm:$0xff] }
 0x3b1   : > { %v3377_v13 = vpack.c.bf16 %v3359_v57, %v3358_v62  ;;  %v5647_v57 = vld [vmem:[%s6213_s12 + $0x38] sm:$0xff] }
 0x3b2   : > { %v3376_v35 = vpack.c.bf16 %v3357_v3, %v3356_v19  ;;  %v5382_v56 = vpop.f32.mrb[204].mxu0 }
 0x3b3   : > { %v3326_v21 = vadd.f32 %v5382_v56, %v6838_v41  ;;  %v3317_v34 = vpop.f32.mrb[205].mxu0 }
 0x3b4   : > { %v3318_v20 = vadd.f32 %v3317_v34, %v6829_v9  ;;  %v5383_v18 = vpop.f32.mrb[206].mxu0  ;;  %3687 = vmatmul.mubr.bf16.gmra.mrb[232].mxu1 %v3370_v25  ;;  %3880 = vmatmul.mubr.bf16.gmra.mrb[232].mxu0 %v3370_v25  ;;  %v3414_v9 = vlaneseq }
 0x3b5   : > { %v3329_v1 = vadd.f32 %v5383_v18, %v6840_v23  ;;  %v3320_v38 = vpop.f32.mrb[207].mxu0  ;;  %3696 = vmatprep.mubr.bf16.mxu1 %v5970_v6  ;;  %3889 = vmatprep.mubr.bf16.mxu0 %v5970_v6  ;;  %v3362_v58 = vmax.f32 %v3326_v21, 0.0 }
 0x3b6   : > { %v3321_v51 = vadd.f32 %v3320_v38, %v6832_v49  ;;  %v3360_v7 = vmax.f32 %v3318_v20, 0.0  ;;  %v3415_v49 = vshrl.u32 %v3414_v9, 7 }
 0x3b7   : > { %v3363_v8 = vmax.f32 %v3329_v1, 0.0 }
 0x3b8   : > { %v3361_v50 = vmax.f32 %v3321_v51, 0.0  ;;  %v3416_v23 = vsub.s32 0, %v3415_v49  ;;  %v3424_v55 = vsub.s32 2, %v3415_v49  ;;  %v3428_v25 = vsub.s32 3, %v3415_v49 }
 0x3b9   : > { %v3379_v41 = vpack.c.bf16 %v3363_v8, %v3362_v58 }
 0x3ba   : > { %v3378_v42 = vpack.c.bf16 %v3361_v50, %v3360_v7  ;;  %v6911_v43 = vrot.slane %v3412_v27, %v3416_v23  ;;  %v6913_v52 = vrot.slane %v3412_v27, %v3424_v55  ;;  %v5648_v50 = vld [vmem:[%s6213_s12 + $0x40] sm:$0xff] }
 0x3bc   : > { %3697 = vmatmul.mubr.bf16.gmra.mrb[236].mxu1 %v6860_v45  ;;  %3890 = vmatmul.mubr.bf16.gmra.mrb[236].mxu0 %v6860_v45  ;;  %v3420_v45 = vsub.s32 1, %v3415_v49 }
 0x3bd   : > { %3706 = vmatprep.mubr.bf16.mxu1 %v5970_v6  ;;  %3899 = vmatprep.mubr.bf16.mxu0 %v5970_v6 }
 0x3be   : > { %v6915_v28 = vrot.slane %v3412_v27, %v3420_v45  ;;  %v5650_v45 = vld [vmem:[%s6213_s12 + $0x48] sm:$0xff] }
 0x3c4   : > { %3707 = vmatmul.mubr.bf16.gmra.mrb[240].mxu1 %v3372_v10  ;;  %3900 = vmatmul.mubr.bf16.gmra.mrb[240].mxu0 %v3372_v10  ;;  %v5640_v10 = vld [vmem:[%s6213_s12] sm:$0xff] }
 0x3c5   : > { %3716 = vmatprep.mubr.bf16.mxu1 %v5970_v6  ;;  %3909 = vmatprep.mubr.bf16.mxu0 %v5970_v6 }
 0x3cc   : > { %3717 = vmatmul.mubr.bf16.gmra.mrb[244].mxu1 %v6868_v46  ;;  %3910 = vmatmul.mubr.bf16.gmra.mrb[244].mxu0 %v6868_v46 }
 0x3cd   : > { %3726 = vmatprep.mubr.bf16.mxu1 %v5970_v6  ;;  %3919 = vmatprep.mubr.bf16.mxu0 %v5970_v6 }
 0x3d4   : > { %3727 = vmatmul.mubr.bf16.gmra.mrb[248].mxu1 %v3374_v22  ;;  %3920 = vmatmul.mubr.bf16.gmra.mrb[248].mxu0 %v3374_v22 }
 0x3d5   : > { %3736 = vmatprep.mubr.bf16.mxu1 %v5970_v6  ;;  %3929 = vmatprep.mubr.bf16.mxu0 %v5970_v6 }
 0x3dc   : > { %3737 = vmatmul.mubr.bf16.gmra.mrb[252].mxu1 %v3375_v37  ;;  %3930 = vmatmul.mubr.bf16.gmra.mrb[252].mxu0 %v3375_v37 }
 0x3dd   : > { %3746 = vmatprep.mubr.bf16.mxu1 %v5970_v6  ;;  %3939 = vmatprep.mubr.bf16.mxu0 %v5970_v6 }
 0x3e4   : > { %3747 = vmatmul.mubr.bf16.gmra.mrb[0].mxu1 %v3376_v35  ;;  %3940 = vmatmul.mubr.bf16.gmra.mrb[0].mxu0 %v3376_v35 }
 0x3e5   : > { %3756 = vmatprep.mubr.bf16.mxu1 %v5970_v6  ;;  %3949 = vmatprep.mubr.bf16.mxu0 %v5970_v6 }
 0x3ec   : > { %3757 = vmatmul.mubr.bf16.gmra.mrb[4].mxu1 %v3377_v13  ;;  %3950 = vmatmul.mubr.bf16.gmra.mrb[4].mxu0 %v3377_v13 }
 0x3ed   : > { %3766 = vmatprep.mubr.bf16.mxu1 %v5970_v6  ;;  %3959 = vmatprep.mubr.bf16.mxu0 %v5970_v6 }
 0x3f4   : > { %3767 = vmatmul.mubr.bf16.gmra.mrb[8].mxu1 %v3378_v42  ;;  %3960 = vmatmul.mubr.bf16.gmra.mrb[8].mxu0 %v3378_v42  ;;  %v5649_v42 = vld [vmem:[%s6213_s12 + $0x50] sm:$0xff] }
 0x3f5   : > { %3776 = vmatprep.mubr.bf16.mxu1 %v5970_v6  ;;  %3969 = vmatprep.mubr.bf16.mxu0 %v5970_v6  ;;  %v6917_v6 = vrot.slane %v3412_v27, %v3428_v25 }
 0x3fc   : > { %3777 = vmatmul.mubr.bf16.gmra.mrb[12].mxu1 %v3379_v41  ;;  %3970 = vmatmul.mubr.bf16.gmra.mrb[12].mxu0 %v3379_v41 }
 0x457   : > { %v3628_v40 = vpop.f32.mrb[208].mxu1  ;;  %v3821_v32 = vpop.f32.mrb[208].mxu0 }
 0x458   : > { %v3629_v12 = vadd.f32 %v3628_v40, %v6911_v43  ;;  %v3822_v0 = vadd.f32 %v3821_v32, %v6913_v52  ;;  %v3630_v14 = vpop.f32.mrb[209].mxu1  ;;  %v3823_v61 = vpop.f32.mrb[209].mxu0  ;;  %v5651_v40 = vld [vmem:[%s6213_s12 + $0x58] sm:$0xff] }
 0x459   : > { %v3631_v33 = vadd.f32 %v3630_v14, %v6915_v28  ;;  %v3824_v17 = vadd.f32 %v3823_v61, %v6917_v6  ;;  %v3632_v39 = vpop.f32.mrb[210].mxu1  ;;  %v3825_v46 = vpop.f32.mrb[210].mxu0 }
 0x45a   : > { %v3980_v53 = vadd.f32 %v5640_v10, %v3629_v12  ;;  %v3982_v11 = vadd.f32 %v5641_v47, %v3822_v0  ;;  %v3633_v26 = vadd.f32 %v3632_v39, %v6911_v43  ;;  %v3826_v63 = vadd.f32 %v3825_v46, %v6913_v52  ;;  %v3634_v30 = vpop.f32.mrb[211].mxu1  ;;  %v3827_v4 = vpop.f32.mrb[211].mxu0  ;;  %v5653_v39 = vld [vmem:[%s6213_s12 + $0x70] sm:$0xff]  ;;  %v5654_v47 = vld [vmem:[%s6213_s12 + $0x68] sm:$0xff] }
 0x45b   : > { %v3981_v36 = vadd.f32 %v5642_v59, %v3631_v33  ;;  %v3983_v54 = vadd.f32 %v5643_v44, %v3824_v17  ;;  %v3635_v24 = vadd.f32 %v3634_v30, %v6915_v28  ;;  %v3828_v37 = vadd.f32 %v3827_v4, %v6917_v6  ;;  %v5652_v33 = vld [vmem:[%s6213_s12 + $0x60] sm:$0xff] }
 0x45c   : > { %v4108_v22 = vmax.f32 %v3980_v53, 0.0  ;;  %v4110_v29 = vmax.f32 %v3982_v11, 0.0  ;;  %v3984_v31 = vadd.f32 %v5644_v2, %v3633_v26  ;;  %v3986_v5 = vadd.f32 %v5645_v16, %v3826_v63  ;;  %v5655_v26 = vld [vmem:[%s6213_s12 + $0x78] sm:$0xff] }
 0x45d   : > { %v4109_v60 = vmax.f32 %v3981_v36, 0.0  ;;  %v4111_v48 = vmax.f32 %v3983_v54, 0.0  ;;  %v3985_v62 = vadd.f32 %v5646_v15, %v3635_v24  ;;  %v3987_v19 = vadd.f32 %v5647_v57, %v3828_v37  ;;  %v5657_v15 = vld [vmem:[%s6213_s12 + $0x90] sm:$0xff] }
 0x45e   : > { %4236 = vst [vmem:[%s6937_s29] sm:$0xff] %v4108_v22  ;;  %4238 = vst [vmem:[%s6937_s29 + $0x10] sm:$0xff] %v4110_v29  ;;  %v4112_v3 = vmax.f32 %v3984_v31, 0.0  ;;  %v4114_v13 = vmax.f32 %v3986_v5, 0.0 }
 0x45f   : > { %4237 = vst [vmem:[%s6937_s29 + $0x8] sm:$0xff] %v4109_v60  ;;  %4239 = vst [vmem:[%s6937_s29 + $0x18] sm:$0xff] %v4111_v48  ;;  %v4113_v35 = vmax.f32 %v3985_v62, 0.0  ;;  %v4115_v56 = vmax.f32 %v3987_v19, 0.0  ;;  %v3638_v21 = vpop.f32.mrb[212].mxu1  ;;  %v3831_v34 = vpop.f32.mrb[212].mxu0 }
 0x460   : > { %4240 = vst [vmem:[%s6937_s29 + $0x20] sm:$0xff] %v4112_v3  ;;  %4242 = vst [vmem:[%s6937_s29 + $0x30] sm:$0xff] %v4114_v13  ;;  %v3639_v20 = vadd.f32 %v3638_v21, %v6911_v43  ;;  %v3832_v18 = vadd.f32 %v3831_v34, %v6913_v52  ;;  %v3640_v1 = vpop.f32.mrb[213].mxu1  ;;  %v3833_v38 = vpop.f32.mrb[213].mxu0  ;;  %v5656_v60 = vld [vmem:[%s6213_s12 + $0x80] sm:$0xff]  ;;  %v5659_v21 = vld [vmem:[%s6213_s12 + $0x98] sm:$0xff] }
 0x461   : > { %4241 = vst [vmem:[%s6937_s29 + $0x28] sm:$0xff] %v4113_v35  ;;  %4243 = vst [vmem:[%s6937_s29 + $0x38] sm:$0xff] %v4115_v56  ;;  %v3641_v51 = vadd.f32 %v3640_v1, %v6915_v28  ;;  %v3834_v58 = vadd.f32 %v3833_v38, %v6917_v6  ;;  %v3642_v8 = vpop.f32.mrb[214].mxu1  ;;  %v3835_v7 = vpop.f32.mrb[214].mxu0  ;;  %v5658_v35 = vld [vmem:[%s6213_s12 + $0x88] sm:$0xff] }
 0x462   : > { %v3988_v41 = vadd.f32 %v5648_v50, %v3639_v20  ;;  %v3990_v9 = vadd.f32 %v5649_v42, %v3832_v18  ;;  %v3643_v49 = vadd.f32 %v3642_v8, %v6911_v43  ;;  %v3836_v23 = vadd.f32 %v3835_v7, %v6913_v52  ;;  %v3644_v55 = vpop.f32.mrb[215].mxu1  ;;  %v3837_v27 = vpop.f32.mrb[215].mxu0  ;;  %v5661_v8 = vld [vmem:[%s6213_s12 + $0xb0] sm:$0xff]  ;;  %v5662_v42 = vld [vmem:[%s6213_s12 + $0xa8] sm:$0xff] }
 0x463   : > { %v3989_v25 = vadd.f32 %v5650_v45, %v3641_v51  ;;  %v3991_v32 = vadd.f32 %v5651_v40, %v3834_v58  ;;  %v3645_v12 = vadd.f32 %v3644_v55, %v6915_v28  ;;  %v3838_v0 = vadd.f32 %v3837_v27, %v6917_v6  ;;  %v5660_v51 = vld [vmem:[%s6213_s12 + $0xa0] sm:$0xff] }
 0x464   : > { %v4116_v14 = vmax.f32 %v3988_v41, 0.0  ;;  %v4118_v61 = vmax.f32 %v3990_v9, 0.0  ;;  %v3992_v17 = vadd.f32 %v5652_v33, %v3643_v49  ;;  %v3994_v46 = vadd.f32 %v5653_v39, %v3836_v23  ;;  %v5663_v49 = vld [vmem:[%s6213_s12 + $0xb8] sm:$0xff] }
 0x465   : > { %v4117_v10 = vmax.f32 %v3989_v25, 0.0  ;;  %v4119_v53 = vmax.f32 %v3991_v32, 0.0  ;;  %v3993_v11 = vadd.f32 %v5654_v47, %v3645_v12  ;;  %v3995_v63 = vadd.f32 %v5655_v26, %v3838_v0  ;;  %v5665_v47 = vld [vmem:[%s6213_s12 + $0xd0] sm:$0xff] }
 0x466   : > { %4244 = vst [vmem:[%s6937_s29 + $0x40] sm:$0xff] %v4116_v14  ;;  %4246 = vst [vmem:[%s6937_s29 + $0x50] sm:$0xff] %v4118_v61  ;;  %v4120_v30 = vmax.f32 %v3992_v17, 0.0  ;;  %v4122_v4 = vmax.f32 %v3994_v46, 0.0 }
 0x467   : > { %4245 = vst [vmem:[%s6937_s29 + $0x48] sm:$0xff] %v4117_v10  ;;  %4247 = vst [vmem:[%s6937_s29 + $0x58] sm:$0xff] %v4119_v53  ;;  %v4121_v59 = vmax.f32 %v3993_v11, 0.0  ;;  %v4123_v36 = vmax.f32 %v3995_v63, 0.0  ;;  %v3648_v44 = vpop.f32.mrb[216].mxu1  ;;  %v3841_v54 = vpop.f32.mrb[216].mxu0 }
 0x468   : > { %4248 = vst [vmem:[%s6937_s29 + $0x60] sm:$0xff] %v4120_v30  ;;  %4250 = vst [vmem:[%s6937_s29 + $0x70] sm:$0xff] %v4122_v4  ;;  %v3649_v24 = vadd.f32 %v3648_v44, %v6911_v43  ;;  %v3842_v37 = vadd.f32 %v3841_v54, %v6913_v52  ;;  %v3650_v22 = vpop.f32.mrb[217].mxu1  ;;  %v3843_v29 = vpop.f32.mrb[217].mxu0  ;;  %v5664_v10 = vld [vmem:[%s6213_s12 + $0xc0] sm:$0xff]  ;;  %v5667_v44 = vld [vmem:[%s6213_s12 + $0xd8] sm:$0xff] }
 0x469   : > { %4249 = vst [vmem:[%s6937_s29 + $0x68] sm:$0xff] %v4121_v59  ;;  %4251 = vst [vmem:[%s6937_s29 + $0x78] sm:$0xff] %v4123_v36  ;;  %v3651_v2 = vadd.f32 %v3650_v22, %v6915_v28  ;;  %v3844_v31 = vadd.f32 %v3843_v29, %v6917_v6  ;;  %v3652_v16 = vpop.f32.mrb[218].mxu1  ;;  %v3845_v5 = vpop.f32.mrb[218].mxu0  ;;  %v5666_v59 = vld [vmem:[%s6213_s12 + $0xc8] sm:$0xff] }
 0x46a   : > { %v3996_v48 = vadd.f32 %v5656_v60, %v3649_v24  ;;  %v3998_v62 = vadd.f32 %v5657_v15, %v3842_v37  ;;  %v3653_v57 = vadd.f32 %v3652_v16, %v6911_v43  ;;  %v3846_v19 = vadd.f32 %v3845_v5, %v6913_v52  ;;  %v3654_v3 = vpop.f32.mrb[219].mxu1  ;;  %v3847_v13 = vpop.f32.mrb[219].mxu0  ;;  %v5669_v16 = vld [vmem:[%s6213_s12 + $0xf0] sm:$0xff]  ;;  %v5670_v15 = vld [vmem:[%s6213_s12 + $0xe8] sm:$0xff] }
 0x46b   : > { %v3997_v56 = vadd.f32 %v5658_v35, %v3651_v2  ;;  %v3999_v34 = vadd.f32 %v5659_v21, %v3844_v31  ;;  %v3655_v20 = vadd.f32 %v3654_v3, %v6915_v28  ;;  %v3848_v18 = vadd.f32 %v3847_v13, %v6917_v6  ;;  %v5668_v2 = vld [vmem:[%s6213_s12 + $0xe0] sm:$0xff] }
 0x46c   : > { %v4124_v1 = vmax.f32 %v3996_v48, 0.0  ;;  %v4126_v38 = vmax.f32 %v3998_v62, 0.0  ;;  %v4000_v58 = vadd.f32 %v5660_v51, %v3653_v57  ;;  %v4002_v7 = vadd.f32 %v5661_v8, %v3846_v19  ;;  %v5671_v57 = vld [vmem:[%s6213_s12 + $0xf8] sm:$0xff] }
 0x46d   : > { %v4125_v50 = vmax.f32 %v3997_v56, 0.0  ;;  %v4127_v41 = vmax.f32 %v3999_v34, 0.0  ;;  %v4001_v9 = vadd.f32 %v5662_v42, %v3655_v20  ;;  %v4003_v23 = vadd.f32 %v5663_v49, %v3848_v18  ;;  %v5673_v42 = vld [vmem:[%s6213_s12 + $0x110] sm:$0xff] }
 0x46e   : > { %4252 = vst [vmem:[%s6937_s29 + $0x80] sm:$0xff] %v4124_v1  ;;  %4254 = vst [vmem:[%s6937_s29 + $0x90] sm:$0xff] %v4126_v38  ;;  %v4128_v55 = vmax.f32 %v4000_v58, 0.0  ;;  %v4130_v27 = vmax.f32 %v4002_v7, 0.0 }
 0x46f   : > { %4253 = vst [vmem:[%s6937_s29 + $0x88] sm:$0xff] %v4125_v50  ;;  %4255 = vst [vmem:[%s6937_s29 + $0x98] sm:$0xff] %v4127_v41  ;;  %v4129_v45 = vmax.f32 %v4001_v9, 0.0  ;;  %v4131_v25 = vmax.f32 %v4003_v23, 0.0  ;;  %v3658_v40 = vpop.f32.mrb[220].mxu1  ;;  %v3851_v32 = vpop.f32.mrb[220].mxu0 }
 0x470   : > { %4256 = vst [vmem:[%s6937_s29 + $0xa0] sm:$0xff] %v4128_v55  ;;  %4258 = vst [vmem:[%s6937_s29 + $0xb0] sm:$0xff] %v4130_v27  ;;  %v3659_v12 = vadd.f32 %v3658_v40, %v6911_v43  ;;  %v3852_v0 = vadd.f32 %v3851_v32, %v6913_v52  ;;  %v3660_v14 = vpop.f32.mrb[221].mxu1  ;;  %v3853_v61 = vpop.f32.mrb[221].mxu0  ;;  %v5672_v50 = vld [vmem:[%s6213_s12 + $0x100] sm:$0xff]  ;;  %v5675_v40 = vld [vmem:[%s6213_s12 + $0x118] sm:$0xff] }
 0x471   : > { %4257 = vst [vmem:[%s6937_s29 + $0xa8] sm:$0xff] %v4129_v45  ;;  %4259 = vst [vmem:[%s6937_s29 + $0xb8] sm:$0xff] %v4131_v25  ;;  %v3661_v33 = vadd.f32 %v3660_v14, %v6915_v28  ;;  %v3854_v17 = vadd.f32 %v3853_v61, %v6917_v6  ;;  %v3662_v39 = vpop.f32.mrb[222].mxu1  ;;  %v3855_v46 = vpop.f32.mrb[222].mxu0  ;;  %v5674_v45 = vld [vmem:[%s6213_s12 + $0x108] sm:$0xff] }
 0x472   : > { %v4004_v53 = vadd.f32 %v5664_v10, %v3659_v12  ;;  %v4006_v11 = vadd.f32 %v5665_v47, %v3852_v0  ;;  %v3663_v26 = vadd.f32 %v3662_v39, %v6911_v43  ;;  %v3856_v63 = vadd.f32 %v3855_v46, %v6913_v52  ;;  %v3664_v30 = vpop.f32.mrb[223].mxu1  ;;  %v3857_v4 = vpop.f32.mrb[223].mxu0  ;;  %v5677_v39 = vld [vmem:[%s6213_s12 + $0x130] sm:$0xff]  ;;  %v5678_v47 = vld [vmem:[%s6213_s12 + $0x128] sm:$0xff] }
 0x473   : > { %v4005_v36 = vadd.f32 %v5666_v59, %v3661_v33  ;;  %v4007_v54 = vadd.f32 %v5667_v44, %v3854_v17  ;;  %v3665_v24 = vadd.f32 %v3664_v30, %v6915_v28  ;;  %v3858_v37 = vadd.f32 %v3857_v4, %v6917_v6  ;;  %v5676_v33 = vld [vmem:[%s6213_s12 + $0x120] sm:$0xff] }
 0x474   : > { %v4132_v22 = vmax.f32 %v4004_v53, 0.0  ;;  %v4134_v29 = vmax.f32 %v4006_v11, 0.0  ;;  %v4008_v31 = vadd.f32 %v5668_v2, %v3663_v26  ;;  %v4010_v5 = vadd.f32 %v5669_v16, %v3856_v63  ;;  %v5679_v26 = vld [vmem:[%s6213_s12 + $0x138] sm:$0xff] }
 0x475   : > { %v4133_v60 = vmax.f32 %v4005_v36, 0.0  ;;  %v4135_v48 = vmax.f32 %v4007_v54, 0.0  ;;  %v4009_v62 = vadd.f32 %v5670_v15, %v3665_v24  ;;  %v4011_v19 = vadd.f32 %v5671_v57, %v3858_v37  ;;  %v5681_v15 = vld [vmem:[%s6213_s12 + $0x150] sm:$0xff] }
 0x476   : > { %4260 = vst [vmem:[%s6937_s29 + $0xc0] sm:$0xff] %v4132_v22  ;;  %4262 = vst [vmem:[%s6937_s29 + $0xd0] sm:$0xff] %v4134_v29  ;;  %v4136_v3 = vmax.f32 %v4008_v31, 0.0  ;;  %v4138_v13 = vmax.f32 %v4010_v5, 0.0 }
 0x477   : > { %4261 = vst [vmem:[%s6937_s29 + $0xc8] sm:$0xff] %v4133_v60  ;;  %4263 = vst [vmem:[%s6937_s29 + $0xd8] sm:$0xff] %v4135_v48  ;;  %v4137_v35 = vmax.f32 %v4009_v62, 0.0  ;;  %v4139_v56 = vmax.f32 %v4011_v19, 0.0  ;;  %v3668_v21 = vpop.f32.mrb[224].mxu1  ;;  %v3861_v34 = vpop.f32.mrb[224].mxu0 }
 0x478   : > { %4264 = vst [vmem:[%s6937_s29 + $0xe0] sm:$0xff] %v4136_v3  ;;  %4266 = vst [vmem:[%s6937_s29 + $0xf0] sm:$0xff] %v4138_v13  ;;  %v3669_v20 = vadd.f32 %v3668_v21, %v6911_v43  ;;  %v3862_v18 = vadd.f32 %v3861_v34, %v6913_v52  ;;  %v3670_v1 = vpop.f32.mrb[225].mxu1  ;;  %v3863_v38 = vpop.f32.mrb[225].mxu0  ;;  %v5680_v60 = vld [vmem:[%s6213_s12 + $0x140] sm:$0xff]  ;;  %v5683_v21 = vld [vmem:[%s6213_s12 + $0x158] sm:$0xff] }
 0x479   : > { %4265 = vst [vmem:[%s6937_s29 + $0xe8] sm:$0xff] %v4137_v35  ;;  %4267 = vst [vmem:[%s6937_s29 + $0xf8] sm:$0xff] %v4139_v56  ;;  %v3671_v51 = vadd.f32 %v3670_v1, %v6915_v28  ;;  %v3864_v58 = vadd.f32 %v3863_v38, %v6917_v6  ;;  %v3672_v8 = vpop.f32.mrb[226].mxu1  ;;  %v3865_v7 = vpop.f32.mrb[226].mxu0  ;;  %v5682_v35 = vld [vmem:[%s6213_s12 + $0x148] sm:$0xff] }
 0x47a   : > { %v4012_v41 = vadd.f32 %v5672_v50, %v3669_v20  ;;  %v4014_v9 = vadd.f32 %v5673_v42, %v3862_v18  ;;  %v3673_v49 = vadd.f32 %v3672_v8, %v6911_v43  ;;  %v3866_v23 = vadd.f32 %v3865_v7, %v6913_v52  ;;  %v3674_v55 = vpop.f32.mrb[227].mxu1  ;;  %v3867_v27 = vpop.f32.mrb[227].mxu0  ;;  %v5685_v8 = vld [vmem:[%s6213_s12 + $0x170] sm:$0xff]  ;;  %v5686_v42 = vld [vmem:[%s6213_s12 + $0x168] sm:$0xff] }
 0x47b   : > { %v4013_v25 = vadd.f32 %v5674_v45, %v3671_v51  ;;  %v4015_v32 = vadd.f32 %v5675_v40, %v3864_v58  ;;  %v3675_v12 = vadd.f32 %v3674_v55, %v6915_v28  ;;  %v3868_v0 = vadd.f32 %v3867_v27, %v6917_v6  ;;  %v5684_v51 = vld [vmem:[%s6213_s12 + $0x160] sm:$0xff] }
 0x47c   : > { %v4140_v14 = vmax.f32 %v4012_v41, 0.0  ;;  %v4142_v61 = vmax.f32 %v4014_v9, 0.0  ;;  %v4016_v17 = vadd.f32 %v5676_v33, %v3673_v49  ;;  %v4018_v46 = vadd.f32 %v5677_v39, %v3866_v23  ;;  %v5687_v49 = vld [vmem:[%s6213_s12 + $0x178] sm:$0xff] }
 0x47d   : > { %v4141_v10 = vmax.f32 %v4013_v25, 0.0  ;;  %v4143_v53 = vmax.f32 %v4015_v32, 0.0  ;;  %v4017_v11 = vadd.f32 %v5678_v47, %v3675_v12  ;;  %v4019_v63 = vadd.f32 %v5679_v26, %v3868_v0  ;;  %v5689_v47 = vld [vmem:[%s6213_s12 + $0x190] sm:$0xff] }
 0x47e   : > { %4268 = vst [vmem:[%s6937_s29 + $0x100] sm:$0xff] %v4140_v14  ;;  %4270 = vst [vmem:[%s6937_s29 + $0x110] sm:$0xff] %v4142_v61  ;;  %v4144_v30 = vmax.f32 %v4016_v17, 0.0  ;;  %v4146_v4 = vmax.f32 %v4018_v46, 0.0 }
 0x47f   : > { %4269 = vst [vmem:[%s6937_s29 + $0x108] sm:$0xff] %v4141_v10  ;;  %4271 = vst [vmem:[%s6937_s29 + $0x118] sm:$0xff] %v4143_v53  ;;  %v4145_v59 = vmax.f32 %v4017_v11, 0.0  ;;  %v4147_v36 = vmax.f32 %v4019_v63, 0.0  ;;  %v3678_v44 = vpop.f32.mrb[228].mxu1  ;;  %v3871_v54 = vpop.f32.mrb[228].mxu0 }
 0x480   : > { %4272 = vst [vmem:[%s6937_s29 + $0x120] sm:$0xff] %v4144_v30  ;;  %4274 = vst [vmem:[%s6937_s29 + $0x130] sm:$0xff] %v4146_v4  ;;  %v3679_v24 = vadd.f32 %v3678_v44, %v6911_v43  ;;  %v3872_v37 = vadd.f32 %v3871_v54, %v6913_v52  ;;  %v3680_v22 = vpop.f32.mrb[229].mxu1  ;;  %v3873_v29 = vpop.f32.mrb[229].mxu0  ;;  %v5688_v10 = vld [vmem:[%s6213_s12 + $0x180] sm:$0xff]  ;;  %v5691_v44 = vld [vmem:[%s6213_s12 + $0x198] sm:$0xff] }
 0x481   : > { %4273 = vst [vmem:[%s6937_s29 + $0x128] sm:$0xff] %v4145_v59  ;;  %4275 = vst [vmem:[%s6937_s29 + $0x138] sm:$0xff] %v4147_v36  ;;  %v3681_v2 = vadd.f32 %v3680_v22, %v6915_v28  ;;  %v3874_v31 = vadd.f32 %v3873_v29, %v6917_v6  ;;  %v3682_v16 = vpop.f32.mrb[230].mxu1  ;;  %v3875_v5 = vpop.f32.mrb[230].mxu0  ;;  %v5690_v59 = vld [vmem:[%s6213_s12 + $0x188] sm:$0xff] }
 0x482   : > { %v4020_v48 = vadd.f32 %v5680_v60, %v3679_v24  ;;  %v4022_v62 = vadd.f32 %v5681_v15, %v3872_v37  ;;  %v3683_v57 = vadd.f32 %v3682_v16, %v6911_v43  ;;  %v3876_v19 = vadd.f32 %v3875_v5, %v6913_v52  ;;  %v3684_v3 = vpop.f32.mrb[231].mxu1  ;;  %v3877_v13 = vpop.f32.mrb[231].mxu0  ;;  %v5693_v16 = vld [vmem:[%s6213_s12 + $0x1b0] sm:$0xff]  ;;  %v5694_v15 = vld [vmem:[%s6213_s12 + $0x1a8] sm:$0xff] }
 0x483   : > { %v4021_v56 = vadd.f32 %v5682_v35, %v3681_v2  ;;  %v4023_v34 = vadd.f32 %v5683_v21, %v3874_v31  ;;  %v3685_v20 = vadd.f32 %v3684_v3, %v6915_v28  ;;  %v3878_v18 = vadd.f32 %v3877_v13, %v6917_v6  ;;  %v5692_v2 = vld [vmem:[%s6213_s12 + $0x1a0] sm:$0xff] }
 0x484   : > { %v4148_v1 = vmax.f32 %v4020_v48, 0.0  ;;  %v4150_v38 = vmax.f32 %v4022_v62, 0.0  ;;  %v4024_v58 = vadd.f32 %v5684_v51, %v3683_v57  ;;  %v4026_v7 = vadd.f32 %v5685_v8, %v3876_v19  ;;  %v5695_v57 = vld [vmem:[%s6213_s12 + $0x1b8] sm:$0xff] }
 0x485   : > { %v4149_v50 = vmax.f32 %v4021_v56, 0.0  ;;  %v4151_v41 = vmax.f32 %v4023_v34, 0.0  ;;  %v4025_v9 = vadd.f32 %v5686_v42, %v3685_v20  ;;  %v4027_v23 = vadd.f32 %v5687_v49, %v3878_v18  ;;  %v5697_v42 = vld [vmem:[%s6213_s12 + $0x1d0] sm:$0xff] }
 0x486   : > { %4276 = vst [vmem:[%s6937_s29 + $0x140] sm:$0xff] %v4148_v1  ;;  %4278 = vst [vmem:[%s6937_s29 + $0x150] sm:$0xff] %v4150_v38  ;;  %v4152_v55 = vmax.f32 %v4024_v58, 0.0  ;;  %v4154_v27 = vmax.f32 %v4026_v7, 0.0 }
 0x487   : > { %4277 = vst [vmem:[%s6937_s29 + $0x148] sm:$0xff] %v4149_v50  ;;  %4279 = vst [vmem:[%s6937_s29 + $0x158] sm:$0xff] %v4151_v41  ;;  %v4153_v45 = vmax.f32 %v4025_v9, 0.0  ;;  %v4155_v25 = vmax.f32 %v4027_v23, 0.0  ;;  %v3688_v40 = vpop.f32.mrb[232].mxu1  ;;  %v3881_v32 = vpop.f32.mrb[232].mxu0 }
 0x488   : > { %4280 = vst [vmem:[%s6937_s29 + $0x160] sm:$0xff] %v4152_v55  ;;  %4282 = vst [vmem:[%s6937_s29 + $0x170] sm:$0xff] %v4154_v27  ;;  %v3689_v12 = vadd.f32 %v3688_v40, %v6911_v43  ;;  %v3882_v0 = vadd.f32 %v3881_v32, %v6913_v52  ;;  %v3690_v14 = vpop.f32.mrb[233].mxu1  ;;  %v3883_v61 = vpop.f32.mrb[233].mxu0  ;;  %v5696_v50 = vld [vmem:[%s6213_s12 + $0x1c0] sm:$0xff]  ;;  %v5699_v40 = vld [vmem:[%s6213_s12 + $0x1d8] sm:$0xff] }
 0x489   : > { %4281 = vst [vmem:[%s6937_s29 + $0x168] sm:$0xff] %v4153_v45  ;;  %4283 = vst [vmem:[%s6937_s29 + $0x178] sm:$0xff] %v4155_v25  ;;  %v3691_v33 = vadd.f32 %v3690_v14, %v6915_v28  ;;  %v3884_v17 = vadd.f32 %v3883_v61, %v6917_v6  ;;  %v3692_v39 = vpop.f32.mrb[234].mxu1  ;;  %v3885_v46 = vpop.f32.mrb[234].mxu0  ;;  %v5698_v45 = vld [vmem:[%s6213_s12 + $0x1c8] sm:$0xff] }
 0x48a   : > { %v4028_v53 = vadd.f32 %v5688_v10, %v3689_v12  ;;  %v4030_v11 = vadd.f32 %v5689_v47, %v3882_v0  ;;  %v3693_v26 = vadd.f32 %v3692_v39, %v6911_v43  ;;  %v3886_v63 = vadd.f32 %v3885_v46, %v6913_v52  ;;  %v3694_v30 = vpop.f32.mrb[235].mxu1  ;;  %v3887_v4 = vpop.f32.mrb[235].mxu0  ;;  %v5701_v39 = vld [vmem:[%s6213_s12 + $0x1f0] sm:$0xff]  ;;  %v5702_v47 = vld [vmem:[%s6213_s12 + $0x1e8] sm:$0xff] }
 0x48b   : > { %v4029_v36 = vadd.f32 %v5690_v59, %v3691_v33  ;;  %v4031_v54 = vadd.f32 %v5691_v44, %v3884_v17  ;;  %v3695_v24 = vadd.f32 %v3694_v30, %v6915_v28  ;;  %v3888_v37 = vadd.f32 %v3887_v4, %v6917_v6  ;;  %v5700_v33 = vld [vmem:[%s6213_s12 + $0x1e0] sm:$0xff] }
 0x48c   : > { %v4156_v22 = vmax.f32 %v4028_v53, 0.0  ;;  %v4158_v29 = vmax.f32 %v4030_v11, 0.0  ;;  %v4032_v31 = vadd.f32 %v5692_v2, %v3693_v26  ;;  %v4034_v5 = vadd.f32 %v5693_v16, %v3886_v63  ;;  %v5703_v26 = vld [vmem:[%s6213_s12 + $0x1f8] sm:$0xff] }
 0x48d   : > { %v4157_v60 = vmax.f32 %v4029_v36, 0.0  ;;  %v4159_v48 = vmax.f32 %v4031_v54, 0.0  ;;  %v4033_v62 = vadd.f32 %v5694_v15, %v3695_v24  ;;  %v4035_v19 = vadd.f32 %v5695_v57, %v3888_v37  ;;  %v5705_v15 = vld [vmem:[%s6213_s12 + $0x210] sm:$0xff] }
 0x48e   : > { %4284 = vst [vmem:[%s6937_s29 + $0x180] sm:$0xff] %v4156_v22  ;;  %4286 = vst [vmem:[%s6937_s29 + $0x190] sm:$0xff] %v4158_v29  ;;  %v4160_v3 = vmax.f32 %v4032_v31, 0.0  ;;  %v4162_v13 = vmax.f32 %v4034_v5, 0.0 }
 0x48f   : > { %4285 = vst [vmem:[%s6937_s29 + $0x188] sm:$0xff] %v4157_v60  ;;  %4287 = vst [vmem:[%s6937_s29 + $0x198] sm:$0xff] %v4159_v48  ;;  %v4161_v35 = vmax.f32 %v4033_v62, 0.0  ;;  %v4163_v56 = vmax.f32 %v4035_v19, 0.0  ;;  %v3698_v21 = vpop.f32.mrb[236].mxu1  ;;  %v3891_v34 = vpop.f32.mrb[236].mxu0 }
 0x490   : > { %4288 = vst [vmem:[%s6937_s29 + $0x1a0] sm:$0xff] %v4160_v3  ;;  %4290 = vst [vmem:[%s6937_s29 + $0x1b0] sm:$0xff] %v4162_v13  ;;  %v3699_v20 = vadd.f32 %v3698_v21, %v6911_v43  ;;  %v3892_v18 = vadd.f32 %v3891_v34, %v6913_v52  ;;  %v3700_v1 = vpop.f32.mrb[237].mxu1  ;;  %v3893_v38 = vpop.f32.mrb[237].mxu0  ;;  %v5704_v60 = vld [vmem:[%s6213_s12 + $0x200] sm:$0xff]  ;;  %v5707_v21 = vld [vmem:[%s6213_s12 + $0x218] sm:$0xff] }
 0x491   : > { %4289 = vst [vmem:[%s6937_s29 + $0x1a8] sm:$0xff] %v4161_v35  ;;  %4291 = vst [vmem:[%s6937_s29 + $0x1b8] sm:$0xff] %v4163_v56  ;;  %v3701_v51 = vadd.f32 %v3700_v1, %v6915_v28  ;;  %v3894_v58 = vadd.f32 %v3893_v38, %v6917_v6  ;;  %v3702_v8 = vpop.f32.mrb[238].mxu1  ;;  %v3895_v7 = vpop.f32.mrb[238].mxu0  ;;  %v5706_v35 = vld [vmem:[%s6213_s12 + $0x208] sm:$0xff] }
 0x492   : > { %v4036_v41 = vadd.f32 %v5696_v50, %v3699_v20  ;;  %v4038_v9 = vadd.f32 %v5697_v42, %v3892_v18  ;;  %v3703_v49 = vadd.f32 %v3702_v8, %v6911_v43  ;;  %v3896_v23 = vadd.f32 %v3895_v7, %v6913_v52  ;;  %v3704_v55 = vpop.f32.mrb[239].mxu1  ;;  %v3897_v27 = vpop.f32.mrb[239].mxu0  ;;  %v5709_v8 = vld [vmem:[%s6213_s12 + $0x230] sm:$0xff]  ;;  %v5710_v42 = vld [vmem:[%s6213_s12 + $0x228] sm:$0xff] }
 0x493   : > { %v4037_v25 = vadd.f32 %v5698_v45, %v3701_v51  ;;  %v4039_v32 = vadd.f32 %v5699_v40, %v3894_v58  ;;  %v3705_v12 = vadd.f32 %v3704_v55, %v6915_v28  ;;  %v3898_v0 = vadd.f32 %v3897_v27, %v6917_v6  ;;  %v5708_v51 = vld [vmem:[%s6213_s12 + $0x220] sm:$0xff] }
 0x494   : > { %v4164_v14 = vmax.f32 %v4036_v41, 0.0  ;;  %v4166_v61 = vmax.f32 %v4038_v9, 0.0  ;;  %v4040_v17 = vadd.f32 %v5700_v33, %v3703_v49  ;;  %v4042_v46 = vadd.f32 %v5701_v39, %v3896_v23  ;;  %v5711_v49 = vld [vmem:[%s6213_s12 + $0x238] sm:$0xff] }
 0x495   : > { %v4165_v10 = vmax.f32 %v4037_v25, 0.0  ;;  %v4167_v53 = vmax.f32 %v4039_v32, 0.0  ;;  %v4041_v11 = vadd.f32 %v5702_v47, %v3705_v12  ;;  %v4043_v63 = vadd.f32 %v5703_v26, %v3898_v0  ;;  %v5713_v47 = vld [vmem:[%s6213_s12 + $0x250] sm:$0xff] }
 0x496   : > { %4292 = vst [vmem:[%s6937_s29 + $0x1c0] sm:$0xff] %v4164_v14  ;;  %4294 = vst [vmem:[%s6937_s29 + $0x1d0] sm:$0xff] %v4166_v61  ;;  %v4168_v30 = vmax.f32 %v4040_v17, 0.0  ;;  %v4170_v4 = vmax.f32 %v4042_v46, 0.0 }
 0x497   : > { %4293 = vst [vmem:[%s6937_s29 + $0x1c8] sm:$0xff] %v4165_v10  ;;  %4295 = vst [vmem:[%s6937_s29 + $0x1d8] sm:$0xff] %v4167_v53  ;;  %v4169_v59 = vmax.f32 %v4041_v11, 0.0  ;;  %v4171_v36 = vmax.f32 %v4043_v63, 0.0  ;;  %v3708_v44 = vpop.f32.mrb[240].mxu1  ;;  %v3901_v54 = vpop.f32.mrb[240].mxu0 }
 0x498   : > { %4296 = vst [vmem:[%s6937_s29 + $0x1e0] sm:$0xff] %v4168_v30  ;;  %4298 = vst [vmem:[%s6937_s29 + $0x1f0] sm:$0xff] %v4170_v4  ;;  %v3709_v24 = vadd.f32 %v3708_v44, %v6911_v43  ;;  %v3902_v37 = vadd.f32 %v3901_v54, %v6913_v52  ;;  %v3710_v22 = vpop.f32.mrb[241].mxu1  ;;  %v3903_v29 = vpop.f32.mrb[241].mxu0  ;;  %v5712_v10 = vld [vmem:[%s6213_s12 + $0x240] sm:$0xff]  ;;  %v5715_v44 = vld [vmem:[%s6213_s12 + $0x258] sm:$0xff] }
 0x499   : > { %4297 = vst [vmem:[%s6937_s29 + $0x1e8] sm:$0xff] %v4169_v59  ;;  %4299 = vst [vmem:[%s6937_s29 + $0x1f8] sm:$0xff] %v4171_v36  ;;  %v3711_v2 = vadd.f32 %v3710_v22, %v6915_v28  ;;  %v3904_v31 = vadd.f32 %v3903_v29, %v6917_v6  ;;  %v3712_v16 = vpop.f32.mrb[242].mxu1  ;;  %v3905_v5 = vpop.f32.mrb[242].mxu0  ;;  %v5714_v59 = vld [vmem:[%s6213_s12 + $0x248] sm:$0xff] }
 0x49a   : > { %v4044_v48 = vadd.f32 %v5704_v60, %v3709_v24  ;;  %v4046_v62 = vadd.f32 %v5705_v15, %v3902_v37  ;;  %v3713_v57 = vadd.f32 %v3712_v16, %v6911_v43  ;;  %v3906_v19 = vadd.f32 %v3905_v5, %v6913_v52  ;;  %v3714_v3 = vpop.f32.mrb[243].mxu1  ;;  %v3907_v13 = vpop.f32.mrb[243].mxu0  ;;  %v5717_v16 = vld [vmem:[%s6213_s12 + $0x270] sm:$0xff]  ;;  %v5718_v15 = vld [vmem:[%s6213_s12 + $0x268] sm:$0xff] }
 0x49b   : > { %v4045_v56 = vadd.f32 %v5706_v35, %v3711_v2  ;;  %v4047_v34 = vadd.f32 %v5707_v21, %v3904_v31  ;;  %v3715_v20 = vadd.f32 %v3714_v3, %v6915_v28  ;;  %v3908_v18 = vadd.f32 %v3907_v13, %v6917_v6  ;;  %v5716_v2 = vld [vmem:[%s6213_s12 + $0x260] sm:$0xff] }
 0x49c   : > { %v4172_v1 = vmax.f32 %v4044_v48, 0.0  ;;  %v4174_v38 = vmax.f32 %v4046_v62, 0.0  ;;  %v4048_v58 = vadd.f32 %v5708_v51, %v3713_v57  ;;  %v4050_v7 = vadd.f32 %v5709_v8, %v3906_v19  ;;  %v5719_v57 = vld [vmem:[%s6213_s12 + $0x278] sm:$0xff] }
 0x49d   : > { %v4173_v50 = vmax.f32 %v4045_v56, 0.0  ;;  %v4175_v41 = vmax.f32 %v4047_v34, 0.0  ;;  %v4049_v9 = vadd.f32 %v5710_v42, %v3715_v20  ;;  %v4051_v23 = vadd.f32 %v5711_v49, %v3908_v18  ;;  %v5721_v42 = vld [vmem:[%s6213_s12 + $0x290] sm:$0xff] }
 0x49e   : > { %4300 = vst [vmem:[%s6937_s29 + $0x200] sm:$0xff] %v4172_v1  ;;  %4302 = vst [vmem:[%s6937_s29 + $0x210] sm:$0xff] %v4174_v38  ;;  %v4176_v55 = vmax.f32 %v4048_v58, 0.0  ;;  %v4178_v27 = vmax.f32 %v4050_v7, 0.0 }
 0x49f   : > { %4301 = vst [vmem:[%s6937_s29 + $0x208] sm:$0xff] %v4173_v50  ;;  %4303 = vst [vmem:[%s6937_s29 + $0x218] sm:$0xff] %v4175_v41  ;;  %v4177_v45 = vmax.f32 %v4049_v9, 0.0  ;;  %v4179_v25 = vmax.f32 %v4051_v23, 0.0  ;;  %v3718_v40 = vpop.f32.mrb[244].mxu1  ;;  %v3911_v32 = vpop.f32.mrb[244].mxu0 }
 0x4a0   : > { %4304 = vst [vmem:[%s6937_s29 + $0x220] sm:$0xff] %v4176_v55  ;;  %4306 = vst [vmem:[%s6937_s29 + $0x230] sm:$0xff] %v4178_v27  ;;  %v3719_v12 = vadd.f32 %v3718_v40, %v6911_v43  ;;  %v3912_v0 = vadd.f32 %v3911_v32, %v6913_v52  ;;  %v3720_v14 = vpop.f32.mrb[245].mxu1  ;;  %v3913_v61 = vpop.f32.mrb[245].mxu0  ;;  %v5720_v50 = vld [vmem:[%s6213_s12 + $0x280] sm:$0xff]  ;;  %v5723_v40 = vld [vmem:[%s6213_s12 + $0x298] sm:$0xff] }
 0x4a1   : > { %4305 = vst [vmem:[%s6937_s29 + $0x228] sm:$0xff] %v4177_v45  ;;  %4307 = vst [vmem:[%s6937_s29 + $0x238] sm:$0xff] %v4179_v25  ;;  %v3721_v33 = vadd.f32 %v3720_v14, %v6915_v28  ;;  %v3914_v17 = vadd.f32 %v3913_v61, %v6917_v6  ;;  %v3722_v39 = vpop.f32.mrb[246].mxu1  ;;  %v3915_v46 = vpop.f32.mrb[246].mxu0  ;;  %v5722_v45 = vld [vmem:[%s6213_s12 + $0x288] sm:$0xff] }
 0x4a2   : > { %v4052_v53 = vadd.f32 %v5712_v10, %v3719_v12  ;;  %v4054_v11 = vadd.f32 %v5713_v47, %v3912_v0  ;;  %v3723_v26 = vadd.f32 %v3722_v39, %v6911_v43  ;;  %v3916_v63 = vadd.f32 %v3915_v46, %v6913_v52  ;;  %v3724_v30 = vpop.f32.mrb[247].mxu1  ;;  %v3917_v4 = vpop.f32.mrb[247].mxu0  ;;  %v5725_v39 = vld [vmem:[%s6213_s12 + $0x2b0] sm:$0xff]  ;;  %v5726_v47 = vld [vmem:[%s6213_s12 + $0x2a8] sm:$0xff] }
 0x4a3   : > { %v4053_v36 = vadd.f32 %v5714_v59, %v3721_v33  ;;  %v4055_v54 = vadd.f32 %v5715_v44, %v3914_v17  ;;  %v3725_v24 = vadd.f32 %v3724_v30, %v6915_v28  ;;  %v3918_v37 = vadd.f32 %v3917_v4, %v6917_v6  ;;  %v5724_v33 = vld [vmem:[%s6213_s12 + $0x2a0] sm:$0xff] }
 0x4a4   : > { %v4180_v22 = vmax.f32 %v4052_v53, 0.0  ;;  %v4182_v29 = vmax.f32 %v4054_v11, 0.0  ;;  %v4056_v31 = vadd.f32 %v5716_v2, %v3723_v26  ;;  %v4058_v5 = vadd.f32 %v5717_v16, %v3916_v63  ;;  %v5727_v26 = vld [vmem:[%s6213_s12 + $0x2b8] sm:$0xff] }
 0x4a5   : > { %v4181_v60 = vmax.f32 %v4053_v36, 0.0  ;;  %v4183_v48 = vmax.f32 %v4055_v54, 0.0  ;;  %v4057_v62 = vadd.f32 %v5718_v15, %v3725_v24  ;;  %v4059_v19 = vadd.f32 %v5719_v57, %v3918_v37  ;;  %v5729_v15 = vld [vmem:[%s6213_s12 + $0x2d0] sm:$0xff] }
 0x4a6   : > { %4308 = vst [vmem:[%s6937_s29 + $0x240] sm:$0xff] %v4180_v22  ;;  %4310 = vst [vmem:[%s6937_s29 + $0x250] sm:$0xff] %v4182_v29  ;;  %v4184_v3 = vmax.f32 %v4056_v31, 0.0  ;;  %v4186_v13 = vmax.f32 %v4058_v5, 0.0 }
 0x4a7   : > { %4309 = vst [vmem:[%s6937_s29 + $0x248] sm:$0xff] %v4181_v60  ;;  %4311 = vst [vmem:[%s6937_s29 + $0x258] sm:$0xff] %v4183_v48  ;;  %v4185_v35 = vmax.f32 %v4057_v62, 0.0  ;;  %v4187_v56 = vmax.f32 %v4059_v19, 0.0  ;;  %v3728_v21 = vpop.f32.mrb[248].mxu1  ;;  %v3921_v34 = vpop.f32.mrb[248].mxu0 }
 0x4a8   : > { %4312 = vst [vmem:[%s6937_s29 + $0x260] sm:$0xff] %v4184_v3  ;;  %4314 = vst [vmem:[%s6937_s29 + $0x270] sm:$0xff] %v4186_v13  ;;  %v3729_v20 = vadd.f32 %v3728_v21, %v6911_v43  ;;  %v3922_v18 = vadd.f32 %v3921_v34, %v6913_v52  ;;  %v3730_v1 = vpop.f32.mrb[249].mxu1  ;;  %v3923_v38 = vpop.f32.mrb[249].mxu0  ;;  %v5728_v60 = vld [vmem:[%s6213_s12 + $0x2c0] sm:$0xff]  ;;  %v5731_v21 = vld [vmem:[%s6213_s12 + $0x2d8] sm:$0xff] }
 0x4a9   : > { %4313 = vst [vmem:[%s6937_s29 + $0x268] sm:$0xff] %v4185_v35  ;;  %4315 = vst [vmem:[%s6937_s29 + $0x278] sm:$0xff] %v4187_v56  ;;  %v3731_v51 = vadd.f32 %v3730_v1, %v6915_v28  ;;  %v3924_v58 = vadd.f32 %v3923_v38, %v6917_v6  ;;  %v3732_v8 = vpop.f32.mrb[250].mxu1  ;;  %v3925_v7 = vpop.f32.mrb[250].mxu0  ;;  %v5730_v35 = vld [vmem:[%s6213_s12 + $0x2c8] sm:$0xff] }
 0x4aa   : > { %v4060_v41 = vadd.f32 %v5720_v50, %v3729_v20  ;;  %v4062_v9 = vadd.f32 %v5721_v42, %v3922_v18  ;;  %v3733_v49 = vadd.f32 %v3732_v8, %v6911_v43  ;;  %v3926_v23 = vadd.f32 %v3925_v7, %v6913_v52  ;;  %v3734_v55 = vpop.f32.mrb[251].mxu1  ;;  %v3927_v27 = vpop.f32.mrb[251].mxu0  ;;  %v5733_v8 = vld [vmem:[%s6213_s12 + $0x2f0] sm:$0xff]  ;;  %v5734_v42 = vld [vmem:[%s6213_s12 + $0x2e8] sm:$0xff] }
 0x4ab   : > { %v4061_v25 = vadd.f32 %v5722_v45, %v3731_v51  ;;  %v4063_v32 = vadd.f32 %v5723_v40, %v3924_v58  ;;  %v3735_v12 = vadd.f32 %v3734_v55, %v6915_v28  ;;  %v3928_v0 = vadd.f32 %v3927_v27, %v6917_v6  ;;  %v5732_v51 = vld [vmem:[%s6213_s12 + $0x2e0] sm:$0xff] }
 0x4ac   : > { %v4188_v14 = vmax.f32 %v4060_v41, 0.0  ;;  %v4190_v61 = vmax.f32 %v4062_v9, 0.0  ;;  %v4064_v17 = vadd.f32 %v5724_v33, %v3733_v49  ;;  %v4066_v46 = vadd.f32 %v5725_v39, %v3926_v23  ;;  %v5735_v49 = vld [vmem:[%s6213_s12 + $0x2f8] sm:$0xff] }
 0x4ad   : > { %v4189_v10 = vmax.f32 %v4061_v25, 0.0  ;;  %v4191_v53 = vmax.f32 %v4063_v32, 0.0  ;;  %v4065_v11 = vadd.f32 %v5726_v47, %v3735_v12  ;;  %v4067_v63 = vadd.f32 %v5727_v26, %v3928_v0  ;;  %v5737_v47 = vld [vmem:[%s6213_s12 + $0x310] sm:$0xff] }
 0x4ae   : > { %4316 = vst [vmem:[%s6937_s29 + $0x280] sm:$0xff] %v4188_v14  ;;  %4318 = vst [vmem:[%s6937_s29 + $0x290] sm:$0xff] %v4190_v61  ;;  %v4192_v30 = vmax.f32 %v4064_v17, 0.0  ;;  %v4194_v4 = vmax.f32 %v4066_v46, 0.0 }
 0x4af   : > { %4317 = vst [vmem:[%s6937_s29 + $0x288] sm:$0xff] %v4189_v10  ;;  %4319 = vst [vmem:[%s6937_s29 + $0x298] sm:$0xff] %v4191_v53  ;;  %v4193_v59 = vmax.f32 %v4065_v11, 0.0  ;;  %v4195_v36 = vmax.f32 %v4067_v63, 0.0  ;;  %v3738_v44 = vpop.f32.mrb[252].mxu1  ;;  %v3931_v54 = vpop.f32.mrb[252].mxu0 }
 0x4b0   : > { %4320 = vst [vmem:[%s6937_s29 + $0x2a0] sm:$0xff] %v4192_v30  ;;  %4322 = vst [vmem:[%s6937_s29 + $0x2b0] sm:$0xff] %v4194_v4  ;;  %v3739_v24 = vadd.f32 %v3738_v44, %v6911_v43  ;;  %v3932_v37 = vadd.f32 %v3931_v54, %v6913_v52  ;;  %v3740_v22 = vpop.f32.mrb[253].mxu1  ;;  %v3933_v29 = vpop.f32.mrb[253].mxu0  ;;  %v5736_v10 = vld [vmem:[%s6213_s12 + $0x300] sm:$0xff]  ;;  %v5739_v44 = vld [vmem:[%s6213_s12 + $0x318] sm:$0xff] }
 0x4b1   : > { %4321 = vst [vmem:[%s6937_s29 + $0x2a8] sm:$0xff] %v4193_v59  ;;  %4323 = vst [vmem:[%s6937_s29 + $0x2b8] sm:$0xff] %v4195_v36  ;;  %v3741_v2 = vadd.f32 %v3740_v22, %v6915_v28  ;;  %v3934_v31 = vadd.f32 %v3933_v29, %v6917_v6  ;;  %v3742_v16 = vpop.f32.mrb[254].mxu1  ;;  %v3935_v5 = vpop.f32.mrb[254].mxu0  ;;  %v5738_v59 = vld [vmem:[%s6213_s12 + $0x308] sm:$0xff] }
 0x4b2   : > { %v4068_v48 = vadd.f32 %v5728_v60, %v3739_v24  ;;  %v4070_v62 = vadd.f32 %v5729_v15, %v3932_v37  ;;  %v3743_v57 = vadd.f32 %v3742_v16, %v6911_v43  ;;  %v3936_v19 = vadd.f32 %v3935_v5, %v6913_v52  ;;  %v3744_v3 = vpop.f32.mrb[255].mxu1  ;;  %v3937_v13 = vpop.f32.mrb[255].mxu0  ;;  %v5741_v16 = vld [vmem:[%s6213_s12 + $0x330] sm:$0xff]  ;;  %v5742_v15 = vld [vmem:[%s6213_s12 + $0x328] sm:$0xff] }
 0x4b3   : > { %v4069_v56 = vadd.f32 %v5730_v35, %v3741_v2  ;;  %v4071_v34 = vadd.f32 %v5731_v21, %v3934_v31  ;;  %v3745_v20 = vadd.f32 %v3744_v3, %v6915_v28  ;;  %v3938_v18 = vadd.f32 %v3937_v13, %v6917_v6  ;;  %v5740_v2 = vld [vmem:[%s6213_s12 + $0x320] sm:$0xff] }
 0x4b4   : > { %v4196_v1 = vmax.f32 %v4068_v48, 0.0  ;;  %v4198_v38 = vmax.f32 %v4070_v62, 0.0  ;;  %v4072_v58 = vadd.f32 %v5732_v51, %v3743_v57  ;;  %v4074_v7 = vadd.f32 %v5733_v8, %v3936_v19  ;;  %v5743_v57 = vld [vmem:[%s6213_s12 + $0x338] sm:$0xff] }
 0x4b5   : > { %v4197_v50 = vmax.f32 %v4069_v56, 0.0  ;;  %v4199_v41 = vmax.f32 %v4071_v34, 0.0  ;;  %v4073_v9 = vadd.f32 %v5734_v42, %v3745_v20  ;;  %v4075_v23 = vadd.f32 %v5735_v49, %v3938_v18  ;;  %v5745_v42 = vld [vmem:[%s6213_s12 + $0x350] sm:$0xff] }
 0x4b6   : > { %4324 = vst [vmem:[%s6937_s29 + $0x2c0] sm:$0xff] %v4196_v1  ;;  %4326 = vst [vmem:[%s6937_s29 + $0x2d0] sm:$0xff] %v4198_v38  ;;  %v4200_v55 = vmax.f32 %v4072_v58, 0.0  ;;  %v4202_v27 = vmax.f32 %v4074_v7, 0.0 }
 0x4b7   : > { %4325 = vst [vmem:[%s6937_s29 + $0x2c8] sm:$0xff] %v4197_v50  ;;  %4327 = vst [vmem:[%s6937_s29 + $0x2d8] sm:$0xff] %v4199_v41  ;;  %v4201_v45 = vmax.f32 %v4073_v9, 0.0  ;;  %v4203_v25 = vmax.f32 %v4075_v23, 0.0  ;;  %v3748_v40 = vpop.f32.mrb[0].mxu1  ;;  %v3941_v32 = vpop.f32.mrb[0].mxu0 }
 0x4b8   : > { %4328 = vst [vmem:[%s6937_s29 + $0x2e0] sm:$0xff] %v4200_v55  ;;  %4330 = vst [vmem:[%s6937_s29 + $0x2f0] sm:$0xff] %v4202_v27  ;;  %v3749_v12 = vadd.f32 %v3748_v40, %v6911_v43  ;;  %v3942_v0 = vadd.f32 %v3941_v32, %v6913_v52  ;;  %v3750_v14 = vpop.f32.mrb[1].mxu1  ;;  %v3943_v61 = vpop.f32.mrb[1].mxu0  ;;  %v5744_v50 = vld [vmem:[%s6213_s12 + $0x340] sm:$0xff]  ;;  %v5747_v40 = vld [vmem:[%s6213_s12 + $0x358] sm:$0xff] }
 0x4b9   : > { %4329 = vst [vmem:[%s6937_s29 + $0x2e8] sm:$0xff] %v4201_v45  ;;  %4331 = vst [vmem:[%s6937_s29 + $0x2f8] sm:$0xff] %v4203_v25  ;;  %v3751_v33 = vadd.f32 %v3750_v14, %v6915_v28  ;;  %v3944_v17 = vadd.f32 %v3943_v61, %v6917_v6  ;;  %v3752_v39 = vpop.f32.mrb[2].mxu1  ;;  %v3945_v46 = vpop.f32.mrb[2].mxu0  ;;  %v5746_v45 = vld [vmem:[%s6213_s12 + $0x348] sm:$0xff] }
 0x4ba   : > { %v4076_v53 = vadd.f32 %v5736_v10, %v3749_v12  ;;  %v4078_v11 = vadd.f32 %v5737_v47, %v3942_v0  ;;  %v3753_v26 = vadd.f32 %v3752_v39, %v6911_v43  ;;  %v3946_v63 = vadd.f32 %v3945_v46, %v6913_v52  ;;  %v3754_v30 = vpop.f32.mrb[3].mxu1  ;;  %v3947_v4 = vpop.f32.mrb[3].mxu0  ;;  %v5749_v39 = vld [vmem:[%s6213_s12 + $0x370] sm:$0xff]  ;;  %v5750_v47 = vld [vmem:[%s6213_s12 + $0x368] sm:$0xff] }
 0x4bb   : > { %v4077_v36 = vadd.f32 %v5738_v59, %v3751_v33  ;;  %v4079_v54 = vadd.f32 %v5739_v44, %v3944_v17  ;;  %v3755_v24 = vadd.f32 %v3754_v30, %v6915_v28  ;;  %v3948_v37 = vadd.f32 %v3947_v4, %v6917_v6  ;;  %v5748_v33 = vld [vmem:[%s6213_s12 + $0x360] sm:$0xff] }
 0x4bc   : > { %v4204_v22 = vmax.f32 %v4076_v53, 0.0  ;;  %v4206_v29 = vmax.f32 %v4078_v11, 0.0  ;;  %v4080_v31 = vadd.f32 %v5740_v2, %v3753_v26  ;;  %v4082_v5 = vadd.f32 %v5741_v16, %v3946_v63  ;;  %v5751_v26 = vld [vmem:[%s6213_s12 + $0x378] sm:$0xff] }
 0x4bd   : > { %v4205_v60 = vmax.f32 %v4077_v36, 0.0  ;;  %v4207_v48 = vmax.f32 %v4079_v54, 0.0  ;;  %v4081_v62 = vadd.f32 %v5742_v15, %v3755_v24  ;;  %v4083_v19 = vadd.f32 %v5743_v57, %v3948_v37  ;;  %v5753_v15 = vld [vmem:[%s6213_s12 + $0x390] sm:$0xff] }
 0x4be   : > { %4332 = vst [vmem:[%s6937_s29 + $0x300] sm:$0xff] %v4204_v22  ;;  %4334 = vst [vmem:[%s6937_s29 + $0x310] sm:$0xff] %v4206_v29  ;;  %v4208_v3 = vmax.f32 %v4080_v31, 0.0  ;;  %v4210_v13 = vmax.f32 %v4082_v5, 0.0 }
 0x4bf   : > { %4333 = vst [vmem:[%s6937_s29 + $0x308] sm:$0xff] %v4205_v60  ;;  %4335 = vst [vmem:[%s6937_s29 + $0x318] sm:$0xff] %v4207_v48  ;;  %v4209_v35 = vmax.f32 %v4081_v62, 0.0  ;;  %v4211_v56 = vmax.f32 %v4083_v19, 0.0  ;;  %v3758_v21 = vpop.f32.mrb[4].mxu1  ;;  %v3951_v34 = vpop.f32.mrb[4].mxu0 }
 0x4c0   : > { %4336 = vst [vmem:[%s6937_s29 + $0x320] sm:$0xff] %v4208_v3  ;;  %4338 = vst [vmem:[%s6937_s29 + $0x330] sm:$0xff] %v4210_v13  ;;  %v3759_v20 = vadd.f32 %v3758_v21, %v6911_v43  ;;  %v3952_v18 = vadd.f32 %v3951_v34, %v6913_v52  ;;  %v3760_v1 = vpop.f32.mrb[5].mxu1  ;;  %v3953_v38 = vpop.f32.mrb[5].mxu0  ;;  %v5752_v60 = vld [vmem:[%s6213_s12 + $0x380] sm:$0xff]  ;;  %v5755_v21 = vld [vmem:[%s6213_s12 + $0x398] sm:$0xff] }
 0x4c1   : > { %4337 = vst [vmem:[%s6937_s29 + $0x328] sm:$0xff] %v4209_v35  ;;  %4339 = vst [vmem:[%s6937_s29 + $0x338] sm:$0xff] %v4211_v56  ;;  %v3761_v51 = vadd.f32 %v3760_v1, %v6915_v28  ;;  %v3954_v58 = vadd.f32 %v3953_v38, %v6917_v6  ;;  %v3762_v8 = vpop.f32.mrb[6].mxu1  ;;  %v3955_v7 = vpop.f32.mrb[6].mxu0  ;;  %v5754_v35 = vld [vmem:[%s6213_s12 + $0x388] sm:$0xff] }
 0x4c2   : > { %v4084_v41 = vadd.f32 %v5744_v50, %v3759_v20  ;;  %v4086_v9 = vadd.f32 %v5745_v42, %v3952_v18  ;;  %v3763_v49 = vadd.f32 %v3762_v8, %v6911_v43  ;;  %v3956_v23 = vadd.f32 %v3955_v7, %v6913_v52  ;;  %v3764_v55 = vpop.f32.mrb[7].mxu1  ;;  %v3957_v27 = vpop.f32.mrb[7].mxu0  ;;  %v5757_v8 = vld [vmem:[%s6213_s12 + $0x3b0] sm:$0xff]  ;;  %v5758_v42 = vld [vmem:[%s6213_s12 + $0x3a8] sm:$0xff] }
 0x4c3   : > { %v4085_v25 = vadd.f32 %v5746_v45, %v3761_v51  ;;  %v4087_v32 = vadd.f32 %v5747_v40, %v3954_v58  ;;  %v3765_v12 = vadd.f32 %v3764_v55, %v6915_v28  ;;  %v3958_v0 = vadd.f32 %v3957_v27, %v6917_v6  ;;  %v5756_v51 = vld [vmem:[%s6213_s12 + $0x3a0] sm:$0xff] }
 0x4c4   : > { %v4212_v14 = vmax.f32 %v4084_v41, 0.0  ;;  %v4214_v61 = vmax.f32 %v4086_v9, 0.0  ;;  %v4088_v17 = vadd.f32 %v5748_v33, %v3763_v49  ;;  %v4090_v46 = vadd.f32 %v5749_v39, %v3956_v23  ;;  %v5759_v49 = vld [vmem:[%s6213_s12 + $0x3b8] sm:$0xff] }
 0x4c5   : > { %v4213_v10 = vmax.f32 %v4085_v25, 0.0  ;;  %v4215_v53 = vmax.f32 %v4087_v32, 0.0  ;;  %v4089_v11 = vadd.f32 %v5750_v47, %v3765_v12  ;;  %v4091_v63 = vadd.f32 %v5751_v26, %v3958_v0  ;;  %v5761_v47 = vld [vmem:[%s6213_s12 + $0x3d0] sm:$0xff] }
 0x4c6   : > { %4340 = vst [vmem:[%s6937_s29 + $0x340] sm:$0xff] %v4212_v14  ;;  %4342 = vst [vmem:[%s6937_s29 + $0x350] sm:$0xff] %v4214_v61  ;;  %v4216_v30 = vmax.f32 %v4088_v17, 0.0  ;;  %v4218_v4 = vmax.f32 %v4090_v46, 0.0 }
 0x4c7   : > { %4341 = vst [vmem:[%s6937_s29 + $0x348] sm:$0xff] %v4213_v10  ;;  %4343 = vst [vmem:[%s6937_s29 + $0x358] sm:$0xff] %v4215_v53  ;;  %v4217_v59 = vmax.f32 %v4089_v11, 0.0  ;;  %v4219_v36 = vmax.f32 %v4091_v63, 0.0  ;;  %v3768_v44 = vpop.f32.mrb[8].mxu1  ;;  %v3961_v54 = vpop.f32.mrb[8].mxu0 }
 0x4c8   : > { %4344 = vst [vmem:[%s6937_s29 + $0x360] sm:$0xff] %v4216_v30  ;;  %4346 = vst [vmem:[%s6937_s29 + $0x370] sm:$0xff] %v4218_v4  ;;  %v3769_v24 = vadd.f32 %v3768_v44, %v6911_v43  ;;  %v3962_v37 = vadd.f32 %v3961_v54, %v6913_v52  ;;  %v3770_v22 = vpop.f32.mrb[9].mxu1  ;;  %v3963_v29 = vpop.f32.mrb[9].mxu0  ;;  %v5760_v10 = vld [vmem:[%s6213_s12 + $0x3c0] sm:$0xff]  ;;  %v5763_v44 = vld [vmem:[%s6213_s12 + $0x3d8] sm:$0xff] }
 0x4c9   : > { %4345 = vst [vmem:[%s6937_s29 + $0x368] sm:$0xff] %v4217_v59  ;;  %4347 = vst [vmem:[%s6937_s29 + $0x378] sm:$0xff] %v4219_v36  ;;  %v3771_v2 = vadd.f32 %v3770_v22, %v6915_v28  ;;  %v3964_v31 = vadd.f32 %v3963_v29, %v6917_v6  ;;  %v3772_v16 = vpop.f32.mrb[10].mxu1  ;;  %v3965_v5 = vpop.f32.mrb[10].mxu0  ;;  %v5762_v59 = vld [vmem:[%s6213_s12 + $0x3c8] sm:$0xff]  ;;  %v5764_v29 = vld [vmem:[%s6213_s12 + $0x3e0] sm:$0xff] }
 0x4ca   : > { %v4092_v48 = vadd.f32 %v5752_v60, %v3769_v24  ;;  %v4094_v62 = vadd.f32 %v5753_v15, %v3962_v37  ;;  %v3773_v57 = vadd.f32 %v3772_v16, %v6911_v43  ;;  %v3966_v19 = vadd.f32 %v3965_v5, %v6913_v52  ;;  %v3774_v3 = vpop.f32.mrb[11].mxu1  ;;  %v3967_v13 = vpop.f32.mrb[11].mxu0  ;;  %v5766_v60 = vld [vmem:[%s6213_s12 + $0x3e8] sm:$0xff] }
 0x4cb   : > { %v4093_v56 = vadd.f32 %v5754_v35, %v3771_v2  ;;  %v4095_v34 = vadd.f32 %v5755_v21, %v3964_v31  ;;  %v3775_v20 = vadd.f32 %v3774_v3, %v6915_v28  ;;  %v3968_v18 = vadd.f32 %v3967_v13, %v6917_v6  ;;  %v5765_v2 = vld [vmem:[%s6213_s12 + $0x3f0] sm:$0xff] }
 0x4cc   : > { %v4220_v1 = vmax.f32 %v4092_v48, 0.0  ;;  %v4222_v38 = vmax.f32 %v4094_v62, 0.0  ;;  %v4096_v58 = vadd.f32 %v5756_v51, %v3773_v57  ;;  %v4098_v7 = vadd.f32 %v5757_v8, %v3966_v19 }
 0x4cd   : > { %v4221_v50 = vmax.f32 %v4093_v56, 0.0  ;;  %v4223_v41 = vmax.f32 %v4095_v34, 0.0  ;;  %v4097_v9 = vadd.f32 %v5758_v42, %v3775_v20  ;;  %v4099_v23 = vadd.f32 %v5759_v49, %v3968_v18 }
 0x4ce   : > { %4348 = vst [vmem:[%s6937_s29 + $0x380] sm:$0xff] %v4220_v1  ;;  %4350 = vst [vmem:[%s6937_s29 + $0x390] sm:$0xff] %v4222_v38  ;;  %v4224_v55 = vmax.f32 %v4096_v58, 0.0  ;;  %v4226_v27 = vmax.f32 %v4098_v7, 0.0 }
 0x4cf   : > { %4349 = vst [vmem:[%s6937_s29 + $0x388] sm:$0xff] %v4221_v50  ;;  %4351 = vst [vmem:[%s6937_s29 + $0x398] sm:$0xff] %v4223_v41  ;;  %v4225_v45 = vmax.f32 %v4097_v9, 0.0  ;;  %v4227_v25 = vmax.f32 %v4099_v23, 0.0  ;;  %v3778_v40 = vpop.f32.mrb[12].mxu1  ;;  %v3971_v32 = vpop.f32.mrb[12].mxu0 }
 0x4d0   : > { %4352 = vst [vmem:[%s6937_s29 + $0x3a0] sm:$0xff] %v4224_v55  ;;  %4354 = vst [vmem:[%s6937_s29 + $0x3b0] sm:$0xff] %v4226_v27  ;;  %v3779_v12 = vadd.f32 %v3778_v40, %v6911_v43  ;;  %v3972_v0 = vadd.f32 %v3971_v32, %v6913_v52  ;;  %v3780_v14 = vpop.f32.mrb[13].mxu1  ;;  %v3973_v61 = vpop.f32.mrb[13].mxu0 }
 0x4d1   : > { %4353 = vst [vmem:[%s6937_s29 + $0x3a8] sm:$0xff] %v4225_v45  ;;  %4355 = vst [vmem:[%s6937_s29 + $0x3b8] sm:$0xff] %v4227_v25  ;;  %v3781_v33 = vadd.f32 %v3780_v14, %v6915_v28  ;;  %v3974_v17 = vadd.f32 %v3973_v61, %v6917_v6  ;;  %v3782_v39 = vpop.f32.mrb[14].mxu1  ;;  %v3975_v46 = vpop.f32.mrb[14].mxu0 }
 0x4d2   : > { %v4100_v53 = vadd.f32 %v5760_v10, %v3779_v12  ;;  %v4102_v11 = vadd.f32 %v5761_v47, %v3972_v0  ;;  %v3783_v26 = vadd.f32 %v3782_v39, %v6911_v43  ;;  %v3976_v63 = vadd.f32 %v3975_v46, %v6913_v52  ;;  %v3784_v30 = vpop.f32.mrb[15].mxu1  ;;  %v3977_v4 = vpop.f32.mrb[15].mxu0 }
 0x4d3   : > { %v4101_v36 = vadd.f32 %v5762_v59, %v3781_v33  ;;  %v4103_v54 = vadd.f32 %v5763_v44, %v3974_v17  ;;  %v3785_v24 = vadd.f32 %v3784_v30, %v6915_v28  ;;  %v3978_v37 = vadd.f32 %v3977_v4, %v6917_v6  ;;  %v5767_v6 = vld [vmem:[%s6213_s12 + $0x3f8] sm:$0xff]  ;;  %s5971_s12 = smov [#allocation12]  }
 0x4d4   : > { %v4228_v43 = vmax.f32 %v4100_v53, 0.0  ;;  %v4230_v22 = vmax.f32 %v4102_v11, 0.0  ;;  %v4104_v52 = vadd.f32 %v5764_v29, %v3783_v26  ;;  %v4106_v31 = vadd.f32 %v5765_v2, %v3976_v63  ;;  %s5886_s30 = sshll.u32 %s5971_s12, 4  ;;  %s5887_s30 = int_to_ptr.vmem [resolvable:$false] %s5886_s30 }
 0x4d5   : > { %v4229_v16 = vmax.f32 %v4101_v36, 0.0  ;;  %v4231_v5 = vmax.f32 %v4103_v54, 0.0  ;;  %v4105_v28 = vadd.f32 %v5766_v60, %v3785_v24  ;;  %v4107_v48 = vadd.f32 %v5767_v6, %v3978_v37  ;;  %s5888_s9 = scalar_lea.vmem %s5887_s30, 32768  ;;  %p5889_p12 = scmp.lt.s32.totalorder %s7308_s17, %s5887_s30 }
 0x4d6   : > { %4356 = vst [vmem:[%s6937_s29 + $0x3c0] sm:$0xff] %v4228_v43  ;;  %4358 = vst [vmem:[%s6937_s29 + $0x3d0] sm:$0xff] %v4230_v22  ;;  %v4232_v15 = vmax.f32 %v4104_v52, 0.0  ;;  %v4234_v62 = vmax.f32 %v4106_v31, 0.0  ;;  %p5890_p2 = scmp.lt.s32.totalorder %s5888_s9, %s5882_s23 }
 0x4d7   : > { %4357 = vst [vmem:[%s6937_s29 + $0x3c8] sm:$0xff] %v4229_v16  ;;  %4359 = vst [vmem:[%s6937_s29 + $0x3d8] sm:$0xff] %v4231_v5  ;;  %v4233_v57 = vmax.f32 %v4105_v28, 0.0  ;;  %v4235_v19 = vmax.f32 %v4107_v48, 0.0 }
 0x4d8   : > { %4360 = vst [vmem:[%s6937_s29 + $0x3e0] sm:$0xff] %v4232_v15  ;;  %4362 = vst [vmem:[%s6937_s29 + $0x3f0] sm:$0xff] %v4234_v62  ;;  %p5891_p1 = por %p5890_p2, %p5889_p12 }
 0x4d9   : > { %4361 = vst [vmem:[%s6937_s29 + $0x3e8] sm:$0xff] %v4233_v57  ;;  %4363 = vst [vmem:[%s6937_s29 + $0x3f8] sm:$0xff] %v4235_v19 }
 0x4da   : > { %p5892_p4 = pnand %p5891_p1, %p5885_p7 }
 0x4dc   : > { %5895 = shalt.err (!%p5892_p4)
}
 0x4dd   : > { %s5896_s10 = scalar_lea.hbm %s7306_s18, 16384  ;;  %s5900_s13 = scalar_lea.hbm %s7365_s7, 32768 }
 0x4de   : > { %p5897_p9 = scmp.ne.s32.totalorder %s7306_s18, %s5896_s10  ;;  %p5901_p8 = scmp.lt.u32.totalorder %s7306_s18, %s7365_s7 }
 0x4df   : > { %p5902_p13 = scmp.lt.u32.totalorder %s5900_s13, %s5896_s10  ;;  %p5904_p10 = scmp.lt.u32.totalorder %s5896_s10, %s7306_s18 }
 0x4e0   : > { %p5898_p0 = pnand %p5897_p9, %p6159_p5 }
 0x4e1   : > { %p5903_p6 = por %p5902_p13, %p5901_p8 }
 0x4e2   : > { %p5899_p11 = pneg %p5898_p0 }
 0x4e3   : > { %p5905_p3 = por %p5904_p10, %p5903_p6 }
 0x4e5   : > { %p5906_p7 = pnand %p5905_p3, %p5899_p11 }
 0x4e7   : > { %5909 = shalt.err (!%p5906_p7)
}
 0x4e8   : > { %s5972_s28 = smov 512   ;;  %s5973_s15 = smov 32  }
 0x4e9   : > { %5414 = dma.vmem_to_hbm [thread:$0]  (%p6159_p5), %s7308_s17, 16384, %s7306_s18, %s4365_s16, %s5972_s28, %s5972_s28, %s5973_s15  }
 0x4ea PF: > { %s7385_s23 = sld [smem:[#allocation17_spill]]  ;;  %s4393_s12 = sand.u32 1, %s5944_s24  }
 0x4eb   : > { %p7387_p2 = scmp.ge.s32.totalorder %s5956_s27, 2  ;;  %s4394_s30 = scalar_lea.sflag [#allocation6], %s4393_s12 }
 0x4f0   : > { %p7386_p12 = scmp.ne.s32.totalorder %s7385_s23, 0 }
 0x4f2   : > { %p5431_p1 = pnand %p7387_p2, %p7386_p12 }
 0x4f4   : > { %5939 = dma.done.wait (!%p5431_p1), %s4394_s30, 16384  }
 0x4f5   : > { %5941 = vsyncadd (!%p5431_p1), %s4394_s30, 4294950912  ;;  %p22_p4 = scmp.ge.s32.totalorder %s6145_s8, 4   ;;  %s7388_s24 = smov %s5948_s25 }
 0x4f6   : > { %s7389_s25 = smov %s5952_s26  ;;  %s7390_s26 = smov %s6155_s19 }
 0x4f7   : > { %s7391_s27 = smov %s6145_s8  ;;  %24 = sbr.rel (!%p22_p4) target bundleno = 7 (0x7), region = 108 }
 0x4fe   :  { %4399 = vsyncpa [#allocation5], 1 }
 0x4ff   :  { %4401 = vsyncpa [#allocation5 + $0x1], 1 }
 0x500   :  { %4402 = vsyncpa [#allocation8], 1 }
 0x501   :  { %4403 = vsyncpa [#allocation11], 1 }
 0x502   :  { %4404 = vsyncpa [#allocation6], 1 }
 0x503   :  { %4406 = vsyncpa [#allocation6 + $0x1], 1 }

</bundles_post_ra>
